<compile_context>
chip_gen: v7x
topology: tpu7x:2x2x1
jax: 0.10.0
libtpu: 0.0.40
codegen_flags: <defaults>
</compile_context>

<pallas_src>
import functools
import math

import jax
import jax.numpy as jnp
from jax.experimental import pallas as pl
from jax.experimental.pallas import tpu as pltpu

_NEG_SLOPE = 0.2       # nn.LeakyReLU(0.2)
_BN_EPS = 1e-5         # nn.BatchNorm2d default eps
_MAX_ROW_TILE = 512    # rows per grid step (<= 4 MiB f32 x-tile at K=2048)
_LANE = 128


def _round_up(x: int, m: int) -> int:
    return -(-x // m) * m


def _pad_rows(m: int) -> int:
    """Pad the GEMM row count so the row tile divides it evenly."""
    if m <= _MAX_ROW_TILE:
        return _round_up(m, 8)
    return _round_up(m, _MAX_ROW_TILE)


def _row_tile(m_pad: int) -> int:
    return m_pad if m_pad <= _MAX_ROW_TILE else _MAX_ROW_TILE


# ---------------------------------------------------------------------------
# Kernel A: im2col GEMM + bias (+ optionally fused LeakyReLU)
# ---------------------------------------------------------------------------
def _conv_gemm_kernel(x_ref, w_ref, b_ref, o_ref, *, apply_lrelu):
    y = jnp.dot(x_ref[...], w_ref[...], preferred_element_type=jnp.float32)
    y = y + b_ref[...]
    if apply_lrelu:
        y = jnp.where(y >= 0.0, y, _NEG_SLOPE * y)
    o_ref[...] = y


def _conv_gemm(x2d, w2d, b2d, *, apply_lrelu):
    m_pad, k = x2d.shape
    cout = w2d.shape[1]
    tm = _row_tile(m_pad)
    return pl.pallas_call(
        functools.partial(_conv_gemm_kernel, apply_lrelu=apply_lrelu),
        out_shape=jax.ShapeDtypeStruct((m_pad, cout), jnp.float32),
        grid_spec=pltpu.PrefetchScalarGridSpec(
            num_scalar_prefetch=0,
            grid=(m_pad // tm,),
            in_specs=[
                pl.BlockSpec((tm, k), lambda i: (i, 0)),
                pl.BlockSpec((k, cout), lambda i: (0, 0)),   # weight, VMEM-resident
                pl.BlockSpec((1, cout), lambda i: (0, 0)),   # bias, VMEM-resident
            ],
            out_specs=pl.BlockSpec((tm, cout), lambda i: (i, 0)),
        ),
        compiler_params=pltpu.CompilerParams(
            dimension_semantics=("parallel",)),
    )(x2d, w2d, b2d)


# ---------------------------------------------------------------------------
# Kernel B: per-channel sum and sum-of-squares (BatchNorm batch statistics)
# ---------------------------------------------------------------------------
def _moments_kernel(x_ref, sum_ref, sq_ref):
    @pl.when(pl.program_id(0) == 0)
    def _():
        sum_ref[...] = jnp.zeros_like(sum_ref)
        sq_ref[...] = jnp.zeros_like(sq_ref)

    x = x_ref[...]
    sum_ref[...] += jnp.sum(x, axis=0, keepdims=True)
    sq_ref[...] += jnp.sum(x * x, axis=0, keepdims=True)


def _channel_moments(x2d):
    m_pad, c = x2d.shape
    tm = _row_tile(m_pad)
    return pl.pallas_call(
        _moments_kernel,
        out_shape=(jax.ShapeDtypeStruct((1, c), jnp.float32),
                   jax.ShapeDtypeStruct((1, c), jnp.float32)),
        grid_spec=pltpu.PrefetchScalarGridSpec(
            num_scalar_prefetch=0,
            grid=(m_pad // tm,),
            in_specs=[pl.BlockSpec((tm, c), lambda i: (i, 0))],
            out_specs=(pl.BlockSpec((1, c), lambda i: (0, 0)),
                       pl.BlockSpec((1, c), lambda i: (0, 0))),
        ),
        compiler_params=pltpu.CompilerParams(
            dimension_semantics=("arbitrary",)),   # accumulates into the outputs
    )(x2d)


# ---------------------------------------------------------------------------
# Kernel C: fused BatchNorm (batch stats) normalize + affine + LeakyReLU
# ---------------------------------------------------------------------------
def _bn_lrelu_kernel(x_ref, sum_ref, sq_ref, gamma_ref, beta_ref, o_ref, *,
                     inv_count):
    mean = sum_ref[...] * inv_count
    var = sq_ref[...] * inv_count - mean * mean          # biased variance
    scale = gamma_ref[...] * jax.lax.rsqrt(var + _BN_EPS)
    shift = beta_ref[...] - mean * scale
    y = x_ref[...] * scale + shift
    o_ref[...] = jnp.where(y >= 0.0, y, _NEG_SLOPE * y)


def _bn_lrelu(x2d, ch_sum, ch_sq, gamma2d, beta2d, true_rows):
    m_pad, c = x2d.shape
    tm = _row_tile(m_pad)
    vec = pl.BlockSpec((1, c), lambda i: (0, 0))
    return pl.pallas_call(
        functools.partial(_bn_lrelu_kernel, inv_count=1.0 / float(true_rows)),
        out_shape=jax.ShapeDtypeStruct((m_pad, c), jnp.float32),
        grid_spec=pltpu.PrefetchScalarGridSpec(
            num_scalar_prefetch=0,
            grid=(m_pad // tm,),
            in_specs=[pl.BlockSpec((tm, c), lambda i: (i, 0)),
                      vec, vec, vec, vec],
            out_specs=pl.BlockSpec((tm, c), lambda i: (i, 0)),
        ),
        compiler_params=pltpu.CompilerParams(
            dimension_semantics=("parallel",)),
    )(x2d, ch_sum, ch_sq, gamma2d, beta2d)


# ---------------------------------------------------------------------------
# Wrapper: im2col + one conv/BN/LeakyReLU block + full discriminator forward
# ---------------------------------------------------------------------------
def _im2col(x_nhwc, stride):
    """4x4 patches with padding=1 -> (N*Ho*Wo, 16*Cin) in (kh, kw, cin) order."""
    # TODO(synk): patch extraction stays in the XLA wrapper (layout plumbing);
    # an in-kernel gather via manual DMA is possible but unnecessary here.
    n, h, w, c = x_nhwc.shape
    xp = jnp.pad(x_nhwc, ((0, 0), (1, 1), (1, 1), (0, 0)))
    ho = (h + 2 - 4) // stride + 1
    wo = (w + 2 - 4) // stride + 1
    cols = []
    for kh in range(4):
        for kw in range(4):
            cols.append(jax.lax.slice(
                xp,
                (0, kh, kw, 0),
                (n, kh + (ho - 1) * stride + 1, kw + (wo - 1) * stride + 1, c),
                (1, stride, stride, 1)))
    patches = jnp.concatenate(cols, axis=-1)          # (N, Ho, Wo, 16*Cin)
    return patches.reshape(n * ho * wo, 16 * c), ho, wo


def _conv_layer(x_nhwc, w_hwio, bias, stride, *, bn=None, lrelu=True):
    """Conv2d(k=4, p=1) [+ BatchNorm2d (batch stats)] [+ LeakyReLU(0.2)]."""
    n = x_nhwc.shape[0]
    cout = w_hwio.shape[-1]
    cout_p = _round_up(cout, _LANE)                   # lane-dense output channels

    x2d, ho, wo = _im2col(x_nhwc, stride)
    m = x2d.shape[0]
    m_pad = _pad_rows(m)
    if m_pad != m:
        x2d = jnp.pad(x2d, ((0, m_pad - m), (0, 0)))  # zero rows -> zero conv rows

    # Weight / bias lane-padding is on jit-time constants (folded at compile).
    w2d = w_hwio.reshape(-1, cout)
    if cout_p != cout:
        w2d = jnp.pad(w2d, ((0, 0), (0, cout_p - cout)))
    b2d = jnp.pad(bias.reshape(1, cout), ((0, 0), (0, cout_p - cout)))

    fused_lrelu = lrelu and bn is None
    y2d = _conv_gemm(x2d, w2d, b2d, apply_lrelu=fused_lrelu)

    if bn is not None:
        gamma, beta = bn
        g2d = jnp.pad(gamma.reshape(1, cout), ((0, 0), (0, cout_p - cout)),
                      constant_values=1.0)
        be2d = jnp.pad(beta.reshape(1, cout), ((0, 0), (0, cout_p - cout)))
        # Padded rows / channels of y2d are exact zeros (no bias on BN layers),
        # so sums are unaffected; the true row count is used for the mean.
        ch_sum, ch_sq = _channel_moments(y2d)
        y2d = _bn_lrelu(y2d, ch_sum, ch_sq, g2d, be2d, m)

    return y2d[:m, :cout].reshape(n, ho, wo, cout)


def init_discriminator_params(key, input_nc, ndf=64, n_layers=3):
    """Mirror of NLayerDiscriminator.__init__ (norm_layer=BatchNorm2d => use_bias=False)."""
    layout = [(input_nc, ndf, 2, False)]              # conv0: bias + LeakyReLU, no norm
    nf_mult = 1
    for n in range(1, n_layers):
        nf_prev, nf_mult = nf_mult, min(2 ** n, 8)
        layout.append((ndf * nf_prev, ndf * nf_mult, 2, True))
    nf_prev, nf_mult = nf_mult, min(2 ** n_layers, 8)
    layout.append((ndf * nf_prev, ndf * nf_mult, 1, True))
    layout.append((ndf * nf_mult, 1, 1, False))       # final 1-channel conv, bias, no act

    params = []
    keys = jax.random.split(key, 2 * len(layout))
    for i, (cin, cout, stride, has_bn) in enumerate(layout):
        w = jax.random.normal(keys[2 * i], (4, 4, cin, cout), jnp.float32)
        w = w / math.sqrt(16 * cin)
        if has_bn:
            b = jnp.zeros((cout,), jnp.float32)       # use_bias=False under BatchNorm
            gamma = jnp.ones((cout,), jnp.float32)    # fresh BatchNorm2d affine params
            beta = jnp.zeros((cout,), jnp.float32)
        else:
            b = 0.01 * jax.random.normal(keys[2 * i + 1], (cout,), jnp.float32)
            gamma = beta = None
        params.append(dict(w=w, b=b, stride=stride, has_bn=has_bn,
                           gamma=gamma, beta=beta))
    return params


def nlayer_discriminator_forward(x_nchw, params):
    """PatchGAN forward; NCHW input (like PyTorch), NCHW output (N, 1, Ho, Wo)."""
    x = jnp.transpose(x_nchw, (0, 2, 3, 1)).astype(jnp.float32)   # NCHW -> NHWC
    last = len(params) - 1
    for i, p in enumerate(params):
        bn = (p["gamma"], p["beta"]) if p["has_bn"] else None
        x = _conv_layer(x, p["w"], p["b"], p["stride"], bn=bn, lrelu=(i != last))
    return jnp.transpose(x, (0, 3, 1, 2))                         # NHWC -> NCHW


# ---------------------------------------------------------------------------
# Pure-JAX reference (for the correctness assert)
# ---------------------------------------------------------------------------
def _reference_forward(x_nchw, params):
    x = jnp.transpose(x_nchw, (0, 2, 3, 1)).astype(jnp.float32)
    last = len(params) - 1
    for i, p in enumerate(params):
        y = jax.lax.conv_general_dilated(
            x, p["w"], window_strides=(p["stride"], p["stride"]),
            padding=((1, 1), (1, 1)),
            dimension_numbers=("NHWC", "HWIO", "NHWC"),
            precision=jax.lax.Precision.HIGHEST)
        y = y + p["b"].reshape(1, 1, 1, -1)
        if p["has_bn"]:
            mean = jnp.mean(y, axis=(0, 1, 2), keepdims=True)
            var = jnp.mean(y * y, axis=(0, 1, 2), keepdims=True) - mean * mean
            y = (y - mean) * jax.lax.rsqrt(var + _BN_EPS)
            y = y * p["gamma"].reshape(1, 1, 1, -1) + p["beta"].reshape(1, 1, 1, -1)
        if i != last:
            y = jnp.where(y >= 0.0, y, _NEG_SLOPE * y)
        x = y
    return jnp.transpose(x, (0, 3, 1, 2))


if __name__ == "__main__":
    key = jax.random.PRNGKey(0)
    k_x, k_p = jax.random.split(key)

    # Small config consistent with the module: batch=2, input_nc=4, 32x32 input,
    # ndf=16, n_layers=3.  (32x32 is the smallest spatial size for which the
    # default 5-conv PatchGAN stack still produces a non-empty output map.)
    x = jax.random.normal(k_x, (2, 4, 32, 32), dtype=jnp.float32)
    params = init_discriminator_params(k_p, input_nc=4, ndf=16, n_layers=3)

    fwd = jax.jit(lambda inp: nlayer_discriminator_forward(inp, params))
    out = fwd(x)
    jax.block_until_ready(out)

    assert out.shape == (2, 1, 2, 2), out.shape
    assert out.dtype == jnp.float32

    ref = _reference_forward(x, params)
    max_err = float(jnp.max(jnp.abs(out - ref)))
    assert max_err < 2e-2, f"mismatch vs reference: max abs err = {max_err}"

    print("KERNEL_OK")
</pallas_src>

<mosaic_0001>
module attributes {stable_mosaic.version = 11 : i64} {
  func.func @_conv_gemm_kernel(%arg0: i32, %arg1: memref<512x64xf32, #tpu.memory_space<vmem>>, %arg2: memref<64x128xf32, #tpu.memory_space<vmem>>, %arg3: memref<1x128xf32, #tpu.memory_space<vmem>>, %arg4: memref<512x128xf32, #tpu.memory_space<vmem>>) attributes {dimension_semantics = [#tpu.dimension_semantics<parallel>], iteration_bounds = array<i64: 1>, scalar_prefetch = 0 : i64, scratch_operands = 0 : i64, tpu.core_type = #tpu.core_type<tc>, window_params = [{transform_indices = @transform_0, window_bounds = array<i64: 512, 64>}, {pipeline_mode = #tpu.pipeline_mode<synchronous>, transform_indices = @transform_1, window_bounds = array<i64: 64, 128>}, {pipeline_mode = #tpu.pipeline_mode<synchronous>, transform_indices = @transform_2, window_bounds = array<i64: 1, 128>}, {transform_indices = @transform_3, window_bounds = array<i64: 512, 128>}]} {
    %c0 = arith.constant 0 : index
    %c0_0 = arith.constant 0 : index
    %0 = vector.load %arg1[%c0, %c0_0] : memref<512x64xf32, #tpu.memory_space<vmem>>, vector<512x64xf32>
    %c0_1 = arith.constant 0 : index
    %c0_2 = arith.constant 0 : index
    %1 = vector.load %arg2[%c0_1, %c0_2] : memref<64x128xf32, #tpu.memory_space<vmem>>, vector<64x128xf32>
    %cst = arith.constant dense<0.000000e+00> : vector<512x128xf32>
    %2 = tpu.matmul %0, %1, %cst {dimension_numbers = #tpu.dot_dimension_numbers<[1], [0], [0], [1], [0, 0, 1, 1], [], []>} : vector<512x64xf32>, vector<64x128xf32>, vector<512x128xf32> -> vector<512x128xf32>
    %c0_3 = arith.constant 0 : index
    %c0_4 = arith.constant 0 : index
    %3 = vector.load %arg3[%c0_3, %c0_4] : memref<1x128xf32, #tpu.memory_space<vmem>>, vector<1x128xf32>
    %4 = vector.broadcast %3 : vector<1x128xf32> to vector<512x128xf32>
    %5 = arith.addf %2, %4 : vector<512x128xf32>
    %cst_5 = arith.constant 0.000000e+00 : f32
    %6 = vector.broadcast %cst_5 : f32 to vector<512x128xf32>
    %7 = arith.cmpf oge, %5, %6 : vector<512x128xf32>
    %cst_6 = arith.constant 2.000000e-01 : f32
    %8 = vector.broadcast %cst_6 : f32 to vector<512x128xf32>
    %9 = arith.mulf %8, %5 : vector<512x128xf32>
    %10 = arith.select %7, %5, %9 : vector<512x128xi1>, vector<512x128xf32>
    %c0_7 = arith.constant 0 : index
    %c0_8 = arith.constant 0 : index
    %11 = vector.load %arg4[%c0_7, %c0_8] : memref<512x128xf32, #tpu.memory_space<vmem>>, vector<512x128xf32>
    tpu.vector_store %arg4[%c0_7, %c0_8], %10 {strides = array<i32>} : memref<512x128xf32, #tpu.memory_space<vmem>>, vector<512x128xf32>,
    return
  }
  func.func @transform_0(%arg0: i32) -> (i32, i32) {
    %c0_i32 = arith.constant 0 : i32
    %c0_i32_0 = arith.constant 0 : i32
    return %arg0, %c0_i32 : i32, i32
  }
  func.func @transform_1(%arg0: i32) -> (i32, i32) {
    %c0_i32 = arith.constant 0 : i32
    %c0_i32_0 = arith.constant 0 : i32
    %c0_i32_1 = arith.constant 0 : i32
    return %c0_i32, %c0_i32_0 : i32, i32
  }
  func.func @transform_2(%arg0: i32) -> (i32, i32) {
    %c0_i32 = arith.constant 0 : i32
    %c0_i32_0 = arith.constant 0 : i32
    %c0_i32_1 = arith.constant 0 : i32
    return %c0_i32, %c0_i32_0 : i32, i32
  }
  func.func @transform_3(%arg0: i32) -> (i32, i32) {
    %c0_i32 = arith.constant 0 : i32
    %c0_i32_0 = arith.constant 0 : i32
    return %arg0, %c0_i32 : i32, i32
  }
}

module attributes {stable_mosaic.version = 11 : i64} {
  func.func @_conv_gemm_kernel(%arg0: i32, %arg1: memref<128x256xf32, #tpu.memory_space<vmem>>, %arg2: memref<256x128xf32, #tpu.memory_space<vmem>>, %arg3: memref<1x128xf32, #tpu.memory_space<vmem>>, %arg4: memref<128x128xf32, #tpu.memory_space<vmem>>) attributes {dimension_semantics = [#tpu.dimension_semantics<parallel>], iteration_bounds = array<i64: 1>, scalar_prefetch = 0 : i64, scratch_operands = 0 : i64, tpu.core_type = #tpu.core_type<tc>, window_params = [{transform_indices = @transform_0, window_bounds = array<i64: 128, 256>}, {pipeline_mode = #tpu.pipeline_mode<synchronous>, transform_indices = @transform_1, window_bounds = array<i64: 256, 128>}, {pipeline_mode = #tpu.pipeline_mode<synchronous>, transform_indices = @transform_2, window_bounds = array<i64: 1, 128>}, {transform_indices = @transform_3, window_bounds = array<i64: 128, 128>}]} {
    %c0 = arith.constant 0 : index
    %c0_0 = arith.constant 0 : index
    %0 = vector.load %arg1[%c0, %c0_0] : memref<128x256xf32, #tpu.memory_space<vmem>>, vector<128x256xf32>
    %c0_1 = arith.constant 0 : index
    %c0_2 = arith.constant 0 : index
    %1 = vector.load %arg2[%c0_1, %c0_2] : memref<256x128xf32, #tpu.memory_space<vmem>>, vector<256x128xf32>
    %cst = arith.constant dense<0.000000e+00> : vector<128x128xf32>
    %2 = tpu.matmul %0, %1, %cst {dimension_numbers = #tpu.dot_dimension_numbers<[1], [0], [0], [1], [0, 0, 1, 1], [], []>} : vector<128x256xf32>, vector<256x128xf32>, vector<128x128xf32> -> vector<128x128xf32>
    %c0_3 = arith.constant 0 : index
    %c0_4 = arith.constant 0 : index
    %3 = vector.load %arg3[%c0_3, %c0_4] : memref<1x128xf32, #tpu.memory_space<vmem>>, vector<1x128xf32>
    %4 = vector.broadcast %3 : vector<1x128xf32> to vector<128x128xf32>
    %5 = arith.addf %2, %4 : vector<128x128xf32>
    %c0_5 = arith.constant 0 : index
    %c0_6 = arith.constant 0 : index
    %6 = vector.load %arg4[%c0_5, %c0_6] : memref<128x128xf32, #tpu.memory_space<vmem>>, vector<128x128xf32>
    tpu.vector_store %arg4[%c0_5, %c0_6], %5 {strides = array<i32>} : memref<128x128xf32, #tpu.memory_space<vmem>>, vector<128x128xf32>,
    return
  }
  func.func @transform_0(%arg0: i32) -> (i32, i32) {
    %c0_i32 = arith.constant 0 : i32
    %c0_i32_0 = arith.constant 0 : i32
    return %arg0, %c0_i32 : i32, i32
  }
  func.func @transform_1(%arg0: i32) -> (i32, i32) {
    %c0_i32 = arith.constant 0 : i32
    %c0_i32_0 = arith.constant 0 : i32
    %c0_i32_1 = arith.constant 0 : i32
    return %c0_i32, %c0_i32_0 : i32, i32
  }
  func.func @transform_2(%arg0: i32) -> (i32, i32) {
    %c0_i32 = arith.constant 0 : i32
    %c0_i32_0 = arith.constant 0 : i32
    %c0_i32_1 = arith.constant 0 : i32
    return %c0_i32, %c0_i32_0 : i32, i32
  }
  func.func @transform_3(%arg0: i32) -> (i32, i32) {
    %c0_i32 = arith.constant 0 : i32
    %c0_i32_0 = arith.constant 0 : i32
    return %arg0, %c0_i32 : i32, i32
  }
}

module attributes {stable_mosaic.version = 11 : i64} {
  func.func @_moments_kernel(%arg0: i32, %arg1: memref<128x128xf32, #tpu.memory_space<vmem>>, %arg2: memref<1x128xf32, #tpu.memory_space<vmem>>, %arg3: memref<1x128xf32, #tpu.memory_space<vmem>>) attributes {dimension_semantics = [#tpu.dimension_semantics<arbitrary>], iteration_bounds = array<i64: 1>, scalar_prefetch = 0 : i64, scratch_operands = 0 : i64, tpu.core_type = #tpu.core_type<tc>, window_params = [{transform_indices = @transform_0, window_bounds = array<i64: 128, 128>}, {pipeline_mode = #tpu.pipeline_mode<synchronous>, transform_indices = @transform_1, window_bounds = array<i64: 1, 128>}, {pipeline_mode = #tpu.pipeline_mode<synchronous>, transform_indices = @transform_2, window_bounds = array<i64: 1, 128>}]} {
    %c0_i32 = arith.constant 0 : i32
    %0 = arith.cmpi eq, %arg0, %c0_i32 : i32
    %1 = arith.extui %0 : i1 to i32
    %c0_i32_0 = arith.constant 0 : i32
    %2 = arith.cmpi ne, %1, %c0_i32_0 : i32
    scf.if %2 {
      %cst_11 = arith.constant 0.000000e+00 : f32
      %15 = vector.broadcast %cst_11 : f32 to vector<1x128xf32>
      %c0_12 = arith.constant 0 : index
      %c0_13 = arith.constant 0 : index
      %16 = vector.load %arg2[%c0_12, %c0_13] : memref<1x128xf32, #tpu.memory_space<vmem>>, vector<1x128xf32>
      tpu.vector_store %arg2[%c0_12, %c0_13], %15 {strides = array<i32>} : memref<1x128xf32, #tpu.memory_space<vmem>>, vector<1x128xf32>,
      %cst_14 = arith.constant 0.000000e+00 : f32
      %17 = vector.broadcast %cst_14 : f32 to vector<1x128xf32>
      %c0_15 = arith.constant 0 : index
      %c0_16 = arith.constant 0 : index
      %18 = vector.load %arg3[%c0_15, %c0_16] : memref<1x128xf32, #tpu.memory_space<vmem>>, vector<1x128xf32>
      tpu.vector_store %arg3[%c0_15, %c0_16], %17 {strides = array<i32>} : memref<1x128xf32, #tpu.memory_space<vmem>>, vector<1x128xf32>,
    } else {
    }
    %c0 = arith.constant 0 : index
    %c0_1 = arith.constant 0 : index
    %3 = vector.load %arg1[%c0, %c0_1] : memref<128x128xf32, #tpu.memory_space<vmem>>, vector<128x128xf32>
    %c0_2 = arith.constant 0 : index
    %c0_3 = arith.constant 0 : index
    %4 = vector.load %arg2[%c0_2, %c0_3] : memref<1x128xf32, #tpu.memory_space<vmem>>, vector<1x128xf32>
    %cst = arith.constant dense<0.000000e+00> : vector<128xf32>
    %5 = vector.multi_reduction <add>, %3, %cst [0] : vector<128x128xf32> to vector<128xf32>
    %6 = vector.shape_cast %5 : vector<128xf32> to vector<1x128xf32>
    %7 = arith.addf %4, %6 : vector<1x128xf32>
    %c0_4 = arith.constant 0 : index
    %c0_5 = arith.constant 0 : index
    %8 = vector.load %arg2[%c0_4, %c0_5] : memref<1x128xf32, #tpu.memory_space<vmem>>, vector<1x128xf32>
    tpu.vector_store %arg2[%c0_4, %c0_5], %7 {strides = array<i32>} : memref<1x128xf32, #tpu.memory_space<vmem>>, vector<1x128xf32>,
    %c0_6 = arith.constant 0 : index
    %c0_7 = arith.constant 0 : index
    %9 = vector.load %arg3[%c0_6, %c0_7] : memref<1x128xf32, #tpu.memory_space<vmem>>, vector<1x128xf32>
    %10 = arith.mulf %3, %3 : vector<128x128xf32>
    %cst_8 = arith.constant dense<0.000000e+00> : vector<128xf32>
    %11 = vector.multi_reduction <add>, %10, %cst_8 [0] : vector<128x128xf32> to vector<128xf32>
    %12 = vector.shape_cast %11 : vector<128xf32> to vector<1x128xf32>
    %13 = arith.addf %9, %12 : vector<1x128xf32>
    %c0_9 = arith.constant 0 : index
    %c0_10 = arith.constant 0 : index
    %14 = vector.load %arg3[%c0_9, %c0_10] : memref<1x128xf32, #tpu.memory_space<vmem>>, vector<1x128xf32>
    tpu.vector_store %arg3[%c0_9, %c0_10], %13 {strides = array<i32>} : memref<1x128xf32, #tpu.memory_space<vmem>>, vector<1x128xf32>,
    return
  }
  func.func @transform_0(%arg0: i32) -> (i32, i32) {
    %c0_i32 = arith.constant 0 : i32
    %c0_i32_0 = arith.constant 0 : i32
    return %arg0, %c0_i32 : i32, i32
  }
  func.func @transform_1(%arg0: i32) -> (i32, i32) {
    %c0_i32 = arith.constant 0 : i32
    %c0_i32_0 = arith.constant 0 : i32
    %c0_i32_1 = arith.constant 0 : i32
    return %c0_i32, %c0_i32_0 : i32, i32
  }
  func.func @transform_2(%arg0: i32) -> (i32, i32) {
    %c0_i32 = arith.constant 0 : i32
    %c0_i32_0 = arith.constant 0 : i32
    %c0_i32_1 = arith.constant 0 : i32
    return %c0_i32, %c0_i32_0 : i32, i32
  }
}

module attributes {stable_mosaic.version = 11 : i64} {
  func.func @_bn_lrelu_kernel(%arg0: i32, %arg1: memref<128x128xf32, #tpu.memory_space<vmem>>, %arg2: memref<1x128xf32, #tpu.memory_space<vmem>>, %arg3: memref<1x128xf32, #tpu.memory_space<vmem>>, %arg4: memref<1x128xf32, #tpu.memory_space<vmem>>, %arg5: memref<1x128xf32, #tpu.memory_space<vmem>>, %arg6: memref<128x128xf32, #tpu.memory_space<vmem>>) attributes {dimension_semantics = [#tpu.dimension_semantics<parallel>], iteration_bounds = array<i64: 1>, scalar_prefetch = 0 : i64, scratch_operands = 0 : i64, tpu.core_type = #tpu.core_type<tc>, window_params = [{transform_indices = @transform_0, window_bounds = array<i64: 128, 128>}, {pipeline_mode = #tpu.pipeline_mode<synchronous>, transform_indices = @transform_1, window_bounds = array<i64: 1, 128>}, {pipeline_mode = #tpu.pipeline_mode<synchronous>, transform_indices = @transform_2, window_bounds = array<i64: 1, 128>}, {pipeline_mode = #tpu.pipeline_mode<synchronous>, transform_indices = @transform_3, window_bounds = array<i64: 1, 128>}, {pipeline_mode = #tpu.pipeline_mode<synchronous>, transform_indices = @transform_4, window_bounds = array<i64: 1, 128>}, {transform_indices = @transform_5, window_bounds = array<i64: 128, 128>}]} {
    %c0 = arith.constant 0 : index
    %c0_0 = arith.constant 0 : index
    %0 = vector.load %arg2[%c0, %c0_0] : memref<1x128xf32, #tpu.memory_space<vmem>>, vector<1x128xf32>
    %cst = arith.constant 7.812500e-03 : f32
    %1 = vector.broadcast %cst : f32 to vector<1x128xf32>
    %2 = arith.mulf %0, %1 : vector<1x128xf32>
    %c0_1 = arith.constant 0 : index
    %c0_2 = arith.constant 0 : index
    %3 = vector.load %arg3[%c0_1, %c0_2] : memref<1x128xf32, #tpu.memory_space<vmem>>, vector<1x128xf32>
    %cst_3 = arith.constant 7.812500e-03 : f32
    %4 = vector.broadcast %cst_3 : f32 to vector<1x128xf32>
    %5 = arith.mulf %3, %4 : vector<1x128xf32>
    %6 = arith.mulf %2, %2 : vector<1x128xf32>
    %7 = arith.subf %5, %6 : vector<1x128xf32>
    %c0_4 = arith.constant 0 : index
    %c0_5 = arith.constant 0 : index
    %8 = vector.load %arg4[%c0_4, %c0_5] : memref<1x128xf32, #tpu.memory_space<vmem>>, vector<1x128xf32>
    %cst_6 = arith.constant 9.99999974E-6 : f32
    %9 = vector.broadcast %cst_6 : f32 to vector<1x128xf32>
    %10 = arith.addf %7, %9 : vector<1x128xf32>
    %11 = math.rsqrt %10 : vector<1x128xf32>
    %12 = arith.mulf %8, %11 : vector<1x128xf32>
    %c0_7 = arith.constant 0 : index
    %c0_8 = arith.constant 0 : index
    %13 = vector.load %arg5[%c0_7, %c0_8] : memref<1x128xf32, #tpu.memory_space<vmem>>, vector<1x128xf32>
    %14 = arith.mulf %2, %12 : vector<1x128xf32>
    %15 = arith.subf %13, %14 : vector<1x128xf32>
    %c0_9 = arith.constant 0 : index
    %c0_10 = arith.constant 0 : index
    %16 = vector.load %arg1[%c0_9, %c0_10] : memref<128x128xf32, #tpu.memory_space<vmem>>, vector<128x128xf32>
    %17 = vector.broadcast %12 : vector<1x128xf32> to vector<128x128xf32>
    %18 = arith.mulf %16, %17 : vector<128x128xf32>
    %19 = vector.broadcast %15 : vector<1x128xf32> to vector<128x128xf32>
    %20 = arith.addf %18, %19 : vector<128x128xf32>
    %cst_11 = arith.constant 0.000000e+00 : f32
    %21 = vector.broadcast %cst_11 : f32 to vector<128x128xf32>
    %22 = arith.cmpf oge, %20, %21 : vector<128x128xf32>
    %cst_12 = arith.constant 2.000000e-01 : f32
    %23 = vector.broadcast %cst_12 : f32 to vector<128x128xf32>
    %24 = arith.mulf %23, %20 : vector<128x128xf32>
    %25 = arith.select %22, %20, %24 : vector<128x128xi1>, vector<128x128xf32>
    %c0_13 = arith.constant 0 : index
    %c0_14 = arith.constant 0 : index
    %26 = vector.load %arg6[%c0_13, %c0_14] : memref<128x128xf32, #tpu.memory_space<vmem>>, vector<128x128xf32>
    tpu.vector_store %arg6[%c0_13, %c0_14], %25 {strides = array<i32>} : memref<128x128xf32, #tpu.memory_space<vmem>>, vector<128x128xf32>,
    return
  }
  func.func @transform_0(%arg0: i32) -> (i32, i32) {
    %c0_i32 = arith.constant 0 : i32
    %c0_i32_0 = arith.constant 0 : i32
    return %arg0, %c0_i32 : i32, i32
  }
  func.func @transform_1(%arg0: i32) -> (i32, i32) {
    %c0_i32 = arith.constant 0 : i32
    %c0_i32_0 = arith.constant 0 : i32
    %c0_i32_1 = arith.constant 0 : i32
    return %c0_i32, %c0_i32_0 : i32, i32
  }
  func.func @transform_2(%arg0: i32) -> (i32, i32) {
    %c0_i32 = arith.constant 0 : i32
    %c0_i32_0 = arith.constant 0 : i32
    %c0_i32_1 = arith.constant 0 : i32
    return %c0_i32, %c0_i32_0 : i32, i32
  }
  func.func @transform_3(%arg0: i32) -> (i32, i32) {
    %c0_i32 = arith.constant 0 : i32
    %c0_i32_0 = arith.constant 0 : i32
    %c0_i32_1 = arith.constant 0 : i32
    return %c0_i32, %c0_i32_0 : i32, i32
  }
  func.func @transform_4(%arg0: i32) -> (i32, i32) {
    %c0_i32 = arith.constant 0 : i32
    %c0_i32_0 = arith.constant 0 : i32
    %c0_i32_1 = arith.constant 0 : i32
    return %c0_i32, %c0_i32_0 : i32, i32
  }
  func.func @transform_5(%arg0: i32) -> (i32, i32) {
    %c0_i32 = arith.constant 0 : i32
    %c0_i32_0 = arith.constant 0 : i32
    return %arg0, %c0_i32 : i32, i32
  }
}

module attributes {stable_mosaic.version = 11 : i64} {
  func.func @_bn_lrelu_kernel(%arg0: i32, %arg1: memref<32x128xf32, #tpu.memory_space<vmem>>, %arg2: memref<1x128xf32, #tpu.memory_space<vmem>>, %arg3: memref<1x128xf32, #tpu.memory_space<vmem>>, %arg4: memref<1x128xf32, #tpu.memory_space<vmem>>, %arg5: memref<1x128xf32, #tpu.memory_space<vmem>>, %arg6: memref<32x128xf32, #tpu.memory_space<vmem>>) attributes {dimension_semantics = [#tpu.dimension_semantics<parallel>], iteration_bounds = array<i64: 1>, scalar_prefetch = 0 : i64, scratch_operands = 0 : i64, tpu.core_type = #tpu.core_type<tc>, window_params = [{transform_indices = @transform_0, window_bounds = array<i64: 32, 128>}, {pipeline_mode = #tpu.pipeline_mode<synchronous>, transform_indices = @transform_1, window_bounds = array<i64: 1, 128>}, {pipeline_mode = #tpu.pipeline_mode<synchronous>, transform_indices = @transform_2, window_bounds = array<i64: 1, 128>}, {pipeline_mode = #tpu.pipeline_mode<synchronous>, transform_indices = @transform_3, window_bounds = array<i64: 1, 128>}, {pipeline_mode = #tpu.pipeline_mode<synchronous>, transform_indices = @transform_4, window_bounds = array<i64: 1, 128>}, {transform_indices = @transform_5, window_bounds = array<i64: 32, 128>}]} {
    %c0 = arith.constant 0 : index
    %c0_0 = arith.constant 0 : index
    %0 = vector.load %arg2[%c0, %c0_0] : memref<1x128xf32, #tpu.memory_space<vmem>>, vector<1x128xf32>
    %cst = arith.constant 3.125000e-02 : f32
    %1 = vector.broadcast %cst : f32 to vector<1x128xf32>
    %2 = arith.mulf %0, %1 : vector<1x128xf32>
    %c0_1 = arith.constant 0 : index
    %c0_2 = arith.constant 0 : index
    %3 = vector.load %arg3[%c0_1, %c0_2] : memref<1x128xf32, #tpu.memory_space<vmem>>, vector<1x128xf32>
    %cst_3 = arith.constant 3.125000e-02 : f32
    %4 = vector.broadcast %cst_3 : f32 to vector<1x128xf32>
    %5 = arith.mulf %3, %4 : vector<1x128xf32>
    %6 = arith.mulf %2, %2 : vector<1x128xf32>
    %7 = arith.subf %5, %6 : vector<1x128xf32>
    %c0_4 = arith.constant 0 : index
    %c0_5 = arith.constant 0 : index
    %8 = vector.load %arg4[%c0_4, %c0_5] : memref<1x128xf32, #tpu.memory_space<vmem>>, vector<1x128xf32>
    %cst_6 = arith.constant 9.99999974E-6 : f32
    %9 = vector.broadcast %cst_6 : f32 to vector<1x128xf32>
    %10 = arith.addf %7, %9 : vector<1x128xf32>
    %11 = math.rsqrt %10 : vector<1x128xf32>
    %12 = arith.mulf %8, %11 : vector<1x128xf32>
    %c0_7 = arith.constant 0 : index
    %c0_8 = arith.constant 0 : index
    %13 = vector.load %arg5[%c0_7, %c0_8] : memref<1x128xf32, #tpu.memory_space<vmem>>, vector<1x128xf32>
    %14 = arith.mulf %2, %12 : vector<1x128xf32>
    %15 = arith.subf %13, %14 : vector<1x128xf32>
    %c0_9 = arith.constant 0 : index
    %c0_10 = arith.constant 0 : index
    %16 = vector.load %arg1[%c0_9, %c0_10] : memref<32x128xf32, #tpu.memory_space<vmem>>, vector<32x128xf32>
    %17 = vector.broadcast %12 : vector<1x128xf32> to vector<32x128xf32>
    %18 = arith.mulf %16, %17 : vector<32x128xf32>
    %19 = vector.broadcast %15 : vector<1x128xf32> to vector<32x128xf32>
    %20 = arith.addf %18, %19 : vector<32x128xf32>
    %cst_11 = arith.constant 0.000000e+00 : f32
    %21 = vector.broadcast %cst_11 : f32 to vector<32x128xf32>
    %22 = arith.cmpf oge, %20, %21 : vector<32x128xf32>
    %cst_12 = arith.constant 2.000000e-01 : f32
    %23 = vector.broadcast %cst_12 : f32 to vector<32x128xf32>
    %24 = arith.mulf %23, %20 : vector<32x128xf32>
    %25 = arith.select %22, %20, %24 : vector<32x128xi1>, vector<32x128xf32>
    %c0_13 = arith.constant 0 : index
    %c0_14 = arith.constant 0 : index
    %26 = vector.load %arg6[%c0_13, %c0_14] : memref<32x128xf32, #tpu.memory_space<vmem>>, vector<32x128xf32>
    tpu.vector_store %arg6[%c0_13, %c0_14], %25 {strides = array<i32>} : memref<32x128xf32, #tpu.memory_space<vmem>>, vector<32x128xf32>,
    return
  }
  func.func @transform_0(%arg0: i32) -> (i32, i32) {
    %c0_i32 = arith.constant 0 : i32
    %c0_i32_0 = arith.constant 0 : i32
    return %arg0, %c0_i32 : i32, i32
  }
  func.func @transform_1(%arg0: i32) -> (i32, i32) {
    %c0_i32 = arith.constant 0 : i32
    %c0_i32_0 = arith.constant 0 : i32
    %c0_i32_1 = arith.constant 0 : i32
    return %c0_i32, %c0_i32_0 : i32, i32
  }
  func.func @transform_2(%arg0: i32) -> (i32, i32) {
    %c0_i32 = arith.constant 0 : i32
    %c0_i32_0 = arith.constant 0 : i32
    %c0_i32_1 = arith.constant 0 : i32
    return %c0_i32, %c0_i32_0 : i32, i32
  }
  func.func @transform_3(%arg0: i32) -> (i32, i32) {
    %c0_i32 = arith.constant 0 : i32
    %c0_i32_0 = arith.constant 0 : i32
    %c0_i32_1 = arith.constant 0 : i32
    return %c0_i32, %c0_i32_0 : i32, i32
  }
  func.func @transform_4(%arg0: i32) -> (i32, i32) {
    %c0_i32 = arith.constant 0 : i32
    %c0_i32_0 = arith.constant 0 : i32
    %c0_i32_1 = arith.constant 0 : i32
    return %c0_i32, %c0_i32_0 : i32, i32
  }
  func.func @transform_5(%arg0: i32) -> (i32, i32) {
    %c0_i32 = arith.constant 0 : i32
    %c0_i32_0 = arith.constant 0 : i32
    return %arg0, %c0_i32 : i32, i32
  }
}

module attributes {stable_mosaic.version = 11 : i64} {
  func.func @_moments_kernel(%arg0: i32, %arg1: memref<32x128xf32, #tpu.memory_space<vmem>>, %arg2: memref<1x128xf32, #tpu.memory_space<vmem>>, %arg3: memref<1x128xf32, #tpu.memory_space<vmem>>) attributes {dimension_semantics = [#tpu.dimension_semantics<arbitrary>], iteration_bounds = array<i64: 1>, scalar_prefetch = 0 : i64, scratch_operands = 0 : i64, tpu.core_type = #tpu.core_type<tc>, window_params = [{transform_indices = @transform_0, window_bounds = array<i64: 32, 128>}, {pipeline_mode = #tpu.pipeline_mode<synchronous>, transform_indices = @transform_1, window_bounds = array<i64: 1, 128>}, {pipeline_mode = #tpu.pipeline_mode<synchronous>, transform_indices = @transform_2, window_bounds = array<i64: 1, 128>}]} {
    %c0_i32 = arith.constant 0 : i32
    %0 = arith.cmpi eq, %arg0, %c0_i32 : i32
    %1 = arith.extui %0 : i1 to i32
    %c0_i32_0 = arith.constant 0 : i32
    %2 = arith.cmpi ne, %1, %c0_i32_0 : i32
    scf.if %2 {
      %cst_11 = arith.constant 0.000000e+00 : f32
      %15 = vector.broadcast %cst_11 : f32 to vector<1x128xf32>
      %c0_12 = arith.constant 0 : index
      %c0_13 = arith.constant 0 : index
      %16 = vector.load %arg2[%c0_12, %c0_13] : memref<1x128xf32, #tpu.memory_space<vmem>>, vector<1x128xf32>
      tpu.vector_store %arg2[%c0_12, %c0_13], %15 {strides = array<i32>} : memref<1x128xf32, #tpu.memory_space<vmem>>, vector<1x128xf32>,
      %cst_14 = arith.constant 0.000000e+00 : f32
      %17 = vector.broadcast %cst_14 : f32 to vector<1x128xf32>
      %c0_15 = arith.constant 0 : index
      %c0_16 = arith.constant 0 : index
      %18 = vector.load %arg3[%c0_15, %c0_16] : memref<1x128xf32, #tpu.memory_space<vmem>>, vector<1x128xf32>
      tpu.vector_store %arg3[%c0_15, %c0_16], %17 {strides = array<i32>} : memref<1x128xf32, #tpu.memory_space<vmem>>, vector<1x128xf32>,
    } else {
    }
    %c0 = arith.constant 0 : index
    %c0_1 = arith.constant 0 : index
    %3 = vector.load %arg1[%c0, %c0_1] : memref<32x128xf32, #tpu.memory_space<vmem>>, vector<32x128xf32>
    %c0_2 = arith.constant 0 : index
    %c0_3 = arith.constant 0 : index
    %4 = vector.load %arg2[%c0_2, %c0_3] : memref<1x128xf32, #tpu.memory_space<vmem>>, vector<1x128xf32>
    %cst = arith.constant dense<0.000000e+00> : vector<128xf32>
    %5 = vector.multi_reduction <add>, %3, %cst [0] : vector<32x128xf32> to vector<128xf32>
    %6 = vector.shape_cast %5 : vector<128xf32> to vector<1x128xf32>
    %7 = arith.addf %4, %6 : vector<1x128xf32>
    %c0_4 = arith.constant 0 : index
    %c0_5 = arith.constant 0 : index
    %8 = vector.load %arg2[%c0_4, %c0_5] : memref<1x128xf32, #tpu.memory_space<vmem>>, vector<1x128xf32>
    tpu.vector_store %arg2[%c0_4, %c0_5], %7 {strides = array<i32>} : memref<1x128xf32, #tpu.memory_space<vmem>>, vector<1x128xf32>,
    %c0_6 = arith.constant 0 : index
    %c0_7 = arith.constant 0 : index
    %9 = vector.load %arg3[%c0_6, %c0_7] : memref<1x128xf32, #tpu.memory_space<vmem>>, vector<1x128xf32>
    %10 = arith.mulf %3, %3 : vector<32x128xf32>
    %cst_8 = arith.constant dense<0.000000e+00> : vector<128xf32>
    %11 = vector.multi_reduction <add>, %10, %cst_8 [0] : vector<32x128xf32> to vector<128xf32>
    %12 = vector.shape_cast %11 : vector<128xf32> to vector<1x128xf32>
    %13 = arith.addf %9, %12 : vector<1x128xf32>
    %c0_9 = arith.constant 0 : index
    %c0_10 = arith.constant 0 : index
    %14 = vector.load %arg3[%c0_9, %c0_10] : memref<1x128xf32, #tpu.memory_space<vmem>>, vector<1x128xf32>
    tpu.vector_store %arg3[%c0_9, %c0_10], %13 {strides = array<i32>} : memref<1x128xf32, #tpu.memory_space<vmem>>, vector<1x128xf32>,
    return
  }
  func.func @transform_0(%arg0: i32) -> (i32, i32) {
    %c0_i32 = arith.constant 0 : i32
    %c0_i32_0 = arith.constant 0 : i32
    return %arg0, %c0_i32 : i32, i32
  }
  func.func @transform_1(%arg0: i32) -> (i32, i32) {
    %c0_i32 = arith.constant 0 : i32
    %c0_i32_0 = arith.constant 0 : i32
    %c0_i32_1 = arith.constant 0 : i32
    return %c0_i32, %c0_i32_0 : i32, i32
  }
  func.func @transform_2(%arg0: i32) -> (i32, i32) {
    %c0_i32 = arith.constant 0 : i32
    %c0_i32_0 = arith.constant 0 : i32
    %c0_i32_1 = arith.constant 0 : i32
    return %c0_i32, %c0_i32_0 : i32, i32
  }
}

module attributes {stable_mosaic.version = 11 : i64} {
  func.func @_conv_gemm_kernel(%arg0: i32, %arg1: memref<32x512xf32, #tpu.memory_space<vmem>>, %arg2: memref<512x128xf32, #tpu.memory_space<vmem>>, %arg3: memref<1x128xf32, #tpu.memory_space<vmem>>, %arg4: memref<32x128xf32, #tpu.memory_space<vmem>>) attributes {dimension_semantics = [#tpu.dimension_semantics<parallel>], iteration_bounds = array<i64: 1>, scalar_prefetch = 0 : i64, scratch_operands = 0 : i64, tpu.core_type = #tpu.core_type<tc>, window_params = [{transform_indices = @transform_0, window_bounds = array<i64: 32, 512>}, {pipeline_mode = #tpu.pipeline_mode<synchronous>, transform_indices = @transform_1, window_bounds = array<i64: 512, 128>}, {pipeline_mode = #tpu.pipeline_mode<synchronous>, transform_indices = @transform_2, window_bounds = array<i64: 1, 128>}, {transform_indices = @transform_3, window_bounds = array<i64: 32, 128>}]} {
    %c0 = arith.constant 0 : index
    %c0_0 = arith.constant 0 : index
    %0 = vector.load %arg1[%c0, %c0_0] : memref<32x512xf32, #tpu.memory_space<vmem>>, vector<32x512xf32>
    %c0_1 = arith.constant 0 : index
    %c0_2 = arith.constant 0 : index
    %1 = vector.load %arg2[%c0_1, %c0_2] : memref<512x128xf32, #tpu.memory_space<vmem>>, vector<512x128xf32>
    %cst = arith.constant dense<0.000000e+00> : vector<32x128xf32>
    %2 = tpu.matmul %0, %1, %cst {dimension_numbers = #tpu.dot_dimension_numbers<[1], [0], [0], [1], [0, 0, 1, 1], [], []>} : vector<32x512xf32>, vector<512x128xf32>, vector<32x128xf32> -> vector<32x128xf32>
    %c0_3 = arith.constant 0 : index
    %c0_4 = arith.constant 0 : index
    %3 = vector.load %arg3[%c0_3, %c0_4] : memref<1x128xf32, #tpu.memory_space<vmem>>, vector<1x128xf32>
    %4 = vector.broadcast %3 : vector<1x128xf32> to vector<32x128xf32>
    %5 = arith.addf %2, %4 : vector<32x128xf32>
    %c0_5 = arith.constant 0 : index
    %c0_6 = arith.constant 0 : index
    %6 = vector.load %arg4[%c0_5, %c0_6] : memref<32x128xf32, #tpu.memory_space<vmem>>, vector<32x128xf32>
    tpu.vector_store %arg4[%c0_5, %c0_6], %5 {strides = array<i32>} : memref<32x128xf32, #tpu.memory_space<vmem>>, vector<32x128xf32>,
    return
  }
  func.func @transform_0(%arg0: i32) -> (i32, i32) {
    %c0_i32 = arith.constant 0 : i32
    %c0_i32_0 = arith.constant 0 : i32
    return %arg0, %c0_i32 : i32, i32
  }
  func.func @transform_1(%arg0: i32) -> (i32, i32) {
    %c0_i32 = arith.constant 0 : i32
    %c0_i32_0 = arith.constant 0 : i32
    %c0_i32_1 = arith.constant 0 : i32
    return %c0_i32, %c0_i32_0 : i32, i32
  }
  func.func @transform_2(%arg0: i32) -> (i32, i32) {
    %c0_i32 = arith.constant 0 : i32
    %c0_i32_0 = arith.constant 0 : i32
    %c0_i32_1 = arith.constant 0 : i32
    return %c0_i32, %c0_i32_0 : i32, i32
  }
  func.func @transform_3(%arg0: i32) -> (i32, i32) {
    %c0_i32 = arith.constant 0 : i32
    %c0_i32_0 = arith.constant 0 : i32
    return %arg0, %c0_i32 : i32, i32
  }
}

module attributes {stable_mosaic.version = 11 : i64} {
  func.func @_conv_gemm_kernel(%arg0: i32, %arg1: memref<24x1024xf32, #tpu.memory_space<vmem>>, %arg2: memref<1024x128xf32, #tpu.memory_space<vmem>>, %arg3: memref<1x128xf32, #tpu.memory_space<vmem>>, %arg4: memref<24x128xf32, #tpu.memory_space<vmem>>) attributes {dimension_semantics = [#tpu.dimension_semantics<parallel>], iteration_bounds = array<i64: 1>, scalar_prefetch = 0 : i64, scratch_operands = 0 : i64, tpu.core_type = #tpu.core_type<tc>, window_params = [{transform_indices = @transform_0, window_bounds = array<i64: 24, 1024>}, {pipeline_mode = #tpu.pipeline_mode<synchronous>, transform_indices = @transform_1, window_bounds = array<i64: 1024, 128>}, {pipeline_mode = #tpu.pipeline_mode<synchronous>, transform_indices = @transform_2, window_bounds = array<i64: 1, 128>}, {transform_indices = @transform_3, window_bounds = array<i64: 24, 128>}]} {
    %c0 = arith.constant 0 : index
    %c0_0 = arith.constant 0 : index
    %0 = vector.load %arg1[%c0, %c0_0] : memref<24x1024xf32, #tpu.memory_space<vmem>>, vector<24x1024xf32>
    %c0_1 = arith.constant 0 : index
    %c0_2 = arith.constant 0 : index
    %1 = vector.load %arg2[%c0_1, %c0_2] : memref<1024x128xf32, #tpu.memory_space<vmem>>, vector<1024x128xf32>
    %cst = arith.constant dense<0.000000e+00> : vector<24x128xf32>
    %2 = tpu.matmul %0, %1, %cst {dimension_numbers = #tpu.dot_dimension_numbers<[1], [0], [0], [1], [0, 0, 1, 1], [], []>} : vector<24x1024xf32>, vector<1024x128xf32>, vector<24x128xf32> -> vector<24x128xf32>
    %c0_3 = arith.constant 0 : index
    %c0_4 = arith.constant 0 : index
    %3 = vector.load %arg3[%c0_3, %c0_4] : memref<1x128xf32, #tpu.memory_space<vmem>>, vector<1x128xf32>
    %4 = vector.broadcast %3 : vector<1x128xf32> to vector<24x128xf32>
    %5 = arith.addf %2, %4 : vector<24x128xf32>
    %c0_5 = arith.constant 0 : index
    %c0_6 = arith.constant 0 : index
    %6 = vector.load %arg4[%c0_5, %c0_6] : memref<24x128xf32, #tpu.memory_space<vmem>>, vector<24x128xf32>
    tpu.vector_store %arg4[%c0_5, %c0_6], %5 {strides = array<i32>} : memref<24x128xf32, #tpu.memory_space<vmem>>, vector<24x128xf32>,
    return
  }
  func.func @transform_0(%arg0: i32) -> (i32, i32) {
    %c0_i32 = arith.constant 0 : i32
    %c0_i32_0 = arith.constant 0 : i32
    return %arg0, %c0_i32 : i32, i32
  }
  func.func @transform_1(%arg0: i32) -> (i32, i32) {
    %c0_i32 = arith.constant 0 : i32
    %c0_i32_0 = arith.constant 0 : i32
    %c0_i32_1 = arith.constant 0 : i32
    return %c0_i32, %c0_i32_0 : i32, i32
  }
  func.func @transform_2(%arg0: i32) -> (i32, i32) {
    %c0_i32 = arith.constant 0 : i32
    %c0_i32_0 = arith.constant 0 : i32
    %c0_i32_1 = arith.constant 0 : i32
    return %c0_i32, %c0_i32_0 : i32, i32
  }
  func.func @transform_3(%arg0: i32) -> (i32, i32) {
    %c0_i32 = arith.constant 0 : i32
    %c0_i32_0 = arith.constant 0 : i32
    return %arg0, %c0_i32 : i32, i32
  }
}

module attributes {stable_mosaic.version = 11 : i64} {
  func.func @_moments_kernel(%arg0: i32, %arg1: memref<24x128xf32, #tpu.memory_space<vmem>>, %arg2: memref<1x128xf32, #tpu.memory_space<vmem>>, %arg3: memref<1x128xf32, #tpu.memory_space<vmem>>) attributes {dimension_semantics = [#tpu.dimension_semantics<arbitrary>], iteration_bounds = array<i64: 1>, scalar_prefetch = 0 : i64, scratch_operands = 0 : i64, tpu.core_type = #tpu.core_type<tc>, window_params = [{transform_indices = @transform_0, window_bounds = array<i64: 24, 128>}, {pipeline_mode = #tpu.pipeline_mode<synchronous>, transform_indices = @transform_1, window_bounds = array<i64: 1, 128>}, {pipeline_mode = #tpu.pipeline_mode<synchronous>, transform_indices = @transform_2, window_bounds = array<i64: 1, 128>}]} {
    %c0_i32 = arith.constant 0 : i32
    %0 = arith.cmpi eq, %arg0, %c0_i32 : i32
    %1 = arith.extui %0 : i1 to i32
    %c0_i32_0 = arith.constant 0 : i32
    %2 = arith.cmpi ne, %1, %c0_i32_0 : i32
    scf.if %2 {
      %cst_11 = arith.constant 0.000000e+00 : f32
      %15 = vector.broadcast %cst_11 : f32 to vector<1x128xf32>
      %c0_12 = arith.constant 0 : index
      %c0_13 = arith.constant 0 : index
      %16 = vector.load %arg2[%c0_12, %c0_13] : memref<1x128xf32, #tpu.memory_space<vmem>>, vector<1x128xf32>
      tpu.vector_store %arg2[%c0_12, %c0_13], %15 {strides = array<i32>} : memref<1x128xf32, #tpu.memory_space<vmem>>, vector<1x128xf32>,
      %cst_14 = arith.constant 0.000000e+00 : f32
      %17 = vector.broadcast %cst_14 : f32 to vector<1x128xf32>
      %c0_15 = arith.constant 0 : index
      %c0_16 = arith.constant 0 : index
      %18 = vector.load %arg3[%c0_15, %c0_16] : memref<1x128xf32, #tpu.memory_space<vmem>>, vector<1x128xf32>
      tpu.vector_store %arg3[%c0_15, %c0_16], %17 {strides = array<i32>} : memref<1x128xf32, #tpu.memory_space<vmem>>, vector<1x128xf32>,
    } else {
    }
    %c0 = arith.constant 0 : index
    %c0_1 = arith.constant 0 : index
    %3 = vector.load %arg1[%c0, %c0_1] : memref<24x128xf32, #tpu.memory_space<vmem>>, vector<24x128xf32>
    %c0_2 = arith.constant 0 : index
    %c0_3 = arith.constant 0 : index
    %4 = vector.load %arg2[%c0_2, %c0_3] : memref<1x128xf32, #tpu.memory_space<vmem>>, vector<1x128xf32>
    %cst = arith.constant dense<0.000000e+00> : vector<128xf32>
    %5 = vector.multi_reduction <add>, %3, %cst [0] : vector<24x128xf32> to vector<128xf32>
    %6 = vector.shape_cast %5 : vector<128xf32> to vector<1x128xf32>
    %7 = arith.addf %4, %6 : vector<1x128xf32>
    %c0_4 = arith.constant 0 : index
    %c0_5 = arith.constant 0 : index
    %8 = vector.load %arg2[%c0_4, %c0_5] : memref<1x128xf32, #tpu.memory_space<vmem>>, vector<1x128xf32>
    tpu.vector_store %arg2[%c0_4, %c0_5], %7 {strides = array<i32>} : memref<1x128xf32, #tpu.memory_space<vmem>>, vector<1x128xf32>,
    %c0_6 = arith.constant 0 : index
    %c0_7 = arith.constant 0 : index
    %9 = vector.load %arg3[%c0_6, %c0_7] : memref<1x128xf32, #tpu.memory_space<vmem>>, vector<1x128xf32>
    %10 = arith.mulf %3, %3 : vector<24x128xf32>
    %cst_8 = arith.constant dense<0.000000e+00> : vector<128xf32>
    %11 = vector.multi_reduction <add>, %10, %cst_8 [0] : vector<24x128xf32> to vector<128xf32>
    %12 = vector.shape_cast %11 : vector<128xf32> to vector<1x128xf32>
    %13 = arith.addf %9, %12 : vector<1x128xf32>
    %c0_9 = arith.constant 0 : index
    %c0_10 = arith.constant 0 : index
    %14 = vector.load %arg3[%c0_9, %c0_10] : memref<1x128xf32, #tpu.memory_space<vmem>>, vector<1x128xf32>
    tpu.vector_store %arg3[%c0_9, %c0_10], %13 {strides = array<i32>} : memref<1x128xf32, #tpu.memory_space<vmem>>, vector<1x128xf32>,
    return
  }
  func.func @transform_0(%arg0: i32) -> (i32, i32) {
    %c0_i32 = arith.constant 0 : i32
    %c0_i32_0 = arith.constant 0 : i32
    return %arg0, %c0_i32 : i32, i32
  }
  func.func @transform_1(%arg0: i32) -> (i32, i32) {
    %c0_i32 = arith.constant 0 : i32
    %c0_i32_0 = arith.constant 0 : i32
    %c0_i32_1 = arith.constant 0 : i32
    return %c0_i32, %c0_i32_0 : i32, i32
  }
  func.func @transform_2(%arg0: i32) -> (i32, i32) {
    %c0_i32 = arith.constant 0 : i32
    %c0_i32_0 = arith.constant 0 : i32
    %c0_i32_1 = arith.constant 0 : i32
    return %c0_i32, %c0_i32_0 : i32, i32
  }
}

module attributes {stable_mosaic.version = 11 : i64} {
  func.func @_bn_lrelu_kernel(%arg0: i32, %arg1: memref<24x128xf32, #tpu.memory_space<vmem>>, %arg2: memref<1x128xf32, #tpu.memory_space<vmem>>, %arg3: memref<1x128xf32, #tpu.memory_space<vmem>>, %arg4: memref<1x128xf32, #tpu.memory_space<vmem>>, %arg5: memref<1x128xf32, #tpu.memory_space<vmem>>, %arg6: memref<24x128xf32, #tpu.memory_space<vmem>>) attributes {dimension_semantics = [#tpu.dimension_semantics<parallel>], iteration_bounds = array<i64: 1>, scalar_prefetch = 0 : i64, scratch_operands = 0 : i64, tpu.core_type = #tpu.core_type<tc>, window_params = [{transform_indices = @transform_0, window_bounds = array<i64: 24, 128>}, {pipeline_mode = #tpu.pipeline_mode<synchronous>, transform_indices = @transform_1, window_bounds = array<i64: 1, 128>}, {pipeline_mode = #tpu.pipeline_mode<synchronous>, transform_indices = @transform_2, window_bounds = array<i64: 1, 128>}, {pipeline_mode = #tpu.pipeline_mode<synchronous>, transform_indices = @transform_3, window_bounds = array<i64: 1, 128>}, {pipeline_mode = #tpu.pipeline_mode<synchronous>, transform_indices = @transform_4, window_bounds = array<i64: 1, 128>}, {transform_indices = @transform_5, window_bounds = array<i64: 24, 128>}]} {
    %c0 = arith.constant 0 : index
    %c0_0 = arith.constant 0 : index
    %0 = vector.load %arg2[%c0, %c0_0] : memref<1x128xf32, #tpu.memory_space<vmem>>, vector<1x128xf32>
    %cst = arith.constant 0.055555556 : f32
    %1 = vector.broadcast %cst : f32 to vector<1x128xf32>
    %2 = arith.mulf %0, %1 : vector<1x128xf32>
    %c0_1 = arith.constant 0 : index
    %c0_2 = arith.constant 0 : index
    %3 = vector.load %arg3[%c0_1, %c0_2] : memref<1x128xf32, #tpu.memory_space<vmem>>, vector<1x128xf32>
    %cst_3 = arith.constant 0.055555556 : f32
    %4 = vector.broadcast %cst_3 : f32 to vector<1x128xf32>
    %5 = arith.mulf %3, %4 : vector<1x128xf32>
    %6 = arith.mulf %2, %2 : vector<1x128xf32>
    %7 = arith.subf %5, %6 : vector<1x128xf32>
    %c0_4 = arith.constant 0 : index
    %c0_5 = arith.constant 0 : index
    %8 = vector.load %arg4[%c0_4, %c0_5] : memref<1x128xf32, #tpu.memory_space<vmem>>, vector<1x128xf32>
    %cst_6 = arith.constant 9.99999974E-6 : f32
    %9 = vector.broadcast %cst_6 : f32 to vector<1x128xf32>
    %10 = arith.addf %7, %9 : vector<1x128xf32>
    %11 = math.rsqrt %10 : vector<1x128xf32>
    %12 = arith.mulf %8, %11 : vector<1x128xf32>
    %c0_7 = arith.constant 0 : index
    %c0_8 = arith.constant 0 : index
    %13 = vector.load %arg5[%c0_7, %c0_8] : memref<1x128xf32, #tpu.memory_space<vmem>>, vector<1x128xf32>
    %14 = arith.mulf %2, %12 : vector<1x128xf32>
    %15 = arith.subf %13, %14 : vector<1x128xf32>
    %c0_9 = arith.constant 0 : index
    %c0_10 = arith.constant 0 : index
    %16 = vector.load %arg1[%c0_9, %c0_10] : memref<24x128xf32, #tpu.memory_space<vmem>>, vector<24x128xf32>
    %17 = vector.broadcast %12 : vector<1x128xf32> to vector<24x128xf32>
    %18 = arith.mulf %16, %17 : vector<24x128xf32>
    %19 = vector.broadcast %15 : vector<1x128xf32> to vector<24x128xf32>
    %20 = arith.addf %18, %19 : vector<24x128xf32>
    %cst_11 = arith.constant 0.000000e+00 : f32
    %21 = vector.broadcast %cst_11 : f32 to vector<24x128xf32>
    %22 = arith.cmpf oge, %20, %21 : vector<24x128xf32>
    %cst_12 = arith.constant 2.000000e-01 : f32
    %23 = vector.broadcast %cst_12 : f32 to vector<24x128xf32>
    %24 = arith.mulf %23, %20 : vector<24x128xf32>
    %25 = arith.select %22, %20, %24 : vector<24x128xi1>, vector<24x128xf32>
    %c0_13 = arith.constant 0 : index
    %c0_14 = arith.constant 0 : index
    %26 = vector.load %arg6[%c0_13, %c0_14] : memref<24x128xf32, #tpu.memory_space<vmem>>, vector<24x128xf32>
    tpu.vector_store %arg6[%c0_13, %c0_14], %25 {strides = array<i32>} : memref<24x128xf32, #tpu.memory_space<vmem>>, vector<24x128xf32>,
    return
  }
  func.func @transform_0(%arg0: i32) -> (i32, i32) {
    %c0_i32 = arith.constant 0 : i32
    %c0_i32_0 = arith.constant 0 : i32
    return %arg0, %c0_i32 : i32, i32
  }
  func.func @transform_1(%arg0: i32) -> (i32, i32) {
    %c0_i32 = arith.constant 0 : i32
    %c0_i32_0 = arith.constant 0 : i32
    %c0_i32_1 = arith.constant 0 : i32
    return %c0_i32, %c0_i32_0 : i32, i32
  }
  func.func @transform_2(%arg0: i32) -> (i32, i32) {
    %c0_i32 = arith.constant 0 : i32
    %c0_i32_0 = arith.constant 0 : i32
    %c0_i32_1 = arith.constant 0 : i32
    return %c0_i32, %c0_i32_0 : i32, i32
  }
  func.func @transform_3(%arg0: i32) -> (i32, i32) {
    %c0_i32 = arith.constant 0 : i32
    %c0_i32_0 = arith.constant 0 : i32
    %c0_i32_1 = arith.constant 0 : i32
    return %c0_i32, %c0_i32_0 : i32, i32
  }
  func.func @transform_4(%arg0: i32) -> (i32, i32) {
    %c0_i32 = arith.constant 0 : i32
    %c0_i32_0 = arith.constant 0 : i32
    %c0_i32_1 = arith.constant 0 : i32
    return %c0_i32, %c0_i32_0 : i32, i32
  }
  func.func @transform_5(%arg0: i32) -> (i32, i32) {
    %c0_i32 = arith.constant 0 : i32
    %c0_i32_0 = arith.constant 0 : i32
    return %arg0, %c0_i32 : i32, i32
  }
}

module attributes {stable_mosaic.version = 11 : i64} {
  func.func @_conv_gemm_kernel(%arg0: i32, %arg1: memref<8x2048xf32, #tpu.memory_space<vmem>>, %arg2: memref<2048x128xf32, #tpu.memory_space<vmem>>, %arg3: memref<1x128xf32, #tpu.memory_space<vmem>>, %arg4: memref<8x128xf32, #tpu.memory_space<vmem>>) attributes {dimension_semantics = [#tpu.dimension_semantics<parallel>], iteration_bounds = array<i64: 1>, scalar_prefetch = 0 : i64, scratch_operands = 0 : i64, tpu.core_type = #tpu.core_type<tc>, window_params = [{transform_indices = @transform_0, window_bounds = array<i64: 8, 2048>}, {pipeline_mode = #tpu.pipeline_mode<synchronous>, transform_indices = @transform_1, window_bounds = array<i64: 2048, 128>}, {pipeline_mode = #tpu.pipeline_mode<synchronous>, transform_indices = @transform_2, window_bounds = array<i64: 1, 128>}, {transform_indices = @transform_3, window_bounds = array<i64: 8, 128>}]} {
    %c0 = arith.constant 0 : index
    %c0_0 = arith.constant 0 : index
    %0 = vector.load %arg1[%c0, %c0_0] : memref<8x2048xf32, #tpu.memory_space<vmem>>, vector<8x2048xf32>
    %c0_1 = arith.constant 0 : index
    %c0_2 = arith.constant 0 : index
    %1 = vector.load %arg2[%c0_1, %c0_2] : memref<2048x128xf32, #tpu.memory_space<vmem>>, vector<2048x128xf32>
    %cst = arith.constant dense<0.000000e+00> : vector<8x128xf32>
    %2 = tpu.matmul %0, %1, %cst {dimension_numbers = #tpu.dot_dimension_numbers<[1], [0], [0], [1], [0, 0, 1, 1], [], []>} : vector<8x2048xf32>, vector<2048x128xf32>, vector<8x128xf32> -> vector<8x128xf32>
    %c0_3 = arith.constant 0 : index
    %c0_4 = arith.constant 0 : index
    %3 = vector.load %arg3[%c0_3, %c0_4] : memref<1x128xf32, #tpu.memory_space<vmem>>, vector<1x128xf32>
    %4 = vector.broadcast %3 : vector<1x128xf32> to vector<8x128xf32>
    %5 = arith.addf %2, %4 : vector<8x128xf32>
    %c0_5 = arith.constant 0 : index
    %c0_6 = arith.constant 0 : index
    %6 = vector.load %arg4[%c0_5, %c0_6] : memref<8x128xf32, #tpu.memory_space<vmem>>, vector<8x128xf32>
    tpu.vector_store %arg4[%c0_5, %c0_6], %5 {strides = array<i32>} : memref<8x128xf32, #tpu.memory_space<vmem>>, vector<8x128xf32>,
    return
  }
  func.func @transform_0(%arg0: i32) -> (i32, i32) {
    %c0_i32 = arith.constant 0 : i32
    %c0_i32_0 = arith.constant 0 : i32
    return %arg0, %c0_i32 : i32, i32
  }
  func.func @transform_1(%arg0: i32) -> (i32, i32) {
    %c0_i32 = arith.constant 0 : i32
    %c0_i32_0 = arith.constant 0 : i32
    %c0_i32_1 = arith.constant 0 : i32
    return %c0_i32, %c0_i32_0 : i32, i32
  }
  func.func @transform_2(%arg0: i32) -> (i32, i32) {
    %c0_i32 = arith.constant 0 : i32
    %c0_i32_0 = arith.constant 0 : i32
    %c0_i32_1 = arith.constant 0 : i32
    return %c0_i32, %c0_i32_0 : i32, i32
  }
  func.func @transform_3(%arg0: i32) -> (i32, i32) {
    %c0_i32 = arith.constant 0 : i32
    %c0_i32_0 = arith.constant 0 : i32
    return %arg0, %c0_i32 : i32, i32
  }
}

</mosaic_0001>

<bundles_post_ra>
// kernel: _lambda_.11
= control target key start
LH: loop header
LB: loop body
LE: loop exit
PB: predicated region body
PF: predicated region fallthrough
CT: control target
= control target key end

     0   :  { %vm93_vm0 = vcmask 523264   ;;  %s1765_s1 = inlined_call_operand.vmem [shape: f32[64,128], index: 1, kind: input, shape index: {}]   ;;  %s1766_s0 = inlined_call_operand.vmem [shape: f32[512,64], index: 0, kind: input, shape index: {}]   ;;  %s1767_s2 = inlined_call_operand.vmem [shape: f32[1,128], index: 2, kind: input, shape index: {}]   ;;  %s1768_s3 = inlined_call_operand.vmem [shape: f32[512,128], index: 3, kind: output, shape index: {}]  }
   0x1   :  { %v78_v0 = vld [vmem:[%s1765_s1] sm:$0xff]  ;;  %v79_v1 = vld [vmem:[%s1765_s1 + $0x8] sm:$0xff]  ;;  %v80_v2 = vld [vmem:[%s1765_s1 + $0x10] sm:$0xff] }
   0x2   :  { %v1180_v3 = vpack.c.bf16 %v79_v1, %v78_v0  ;;  %v81_v4 = vld [vmem:[%s1765_s1 + $0x18] sm:$0xff]  ;;  %v82_v6 = vld [vmem:[%s1765_s1 + $0x20] sm:$0xff]  ;;  %v83_v7 = vld [vmem:[%s1765_s1 + $0x28] sm:$0xff] }
   0x3   :  { %v1184_v5 = vpack.c.bf16 %v81_v4, %v80_v2  ;;  %v14_v8 = vld [vmem:[%s1766_s0] sm:$0xff]  ;;  %v1188_v10 = vpack.c.bf16 %v83_v7, %v82_v6  ;;  %v84_v11 = vld [vmem:[%s1765_s1 + $0x30] sm:$0xff]  ;;  %v85_v12 = vld [vmem:[%s1765_s1 + $0x38] sm:$0xff] }
   0x4   :  { %1181 = vmatprep.subr.bf16.mxu0 %v1180_v3  ;;  %1196 = vmatprep.subr.bf16.mxu1 %v1180_v3  ;;  %v46_v9 = vld [vmem:[%s1766_s0 + $0x100] sm:$0xff]  ;;  %v1192_v13 = vpack.c.bf16 %v85_v12, %v84_v11  ;;  %v15_v14 = vld [vmem:[%s1766_s0 + $0x8] sm:$0xff]  ;;  %v16_v16 = vld [vmem:[%s1766_s0 + $0x10] sm:$0xff] }
   0x5   :  { %1183 = vmatpush3.bf16.msra.mxu0 %v1180_v3  ;;  %1200 = vmatpush3.bf16.msra.mxu1 %v1180_v3  ;;  %v47_v15 = vld [vmem:[%s1766_s0 + $0x108] sm:$0xff]  ;;  %v48_v17 = vld [vmem:[%s1766_s0 + $0x110] sm:$0xff]  ;;  %v17_v18 = vld [vmem:[%s1766_s0 + $0x18] sm:$0xff] }
   0x6   :  { %1185 = vmatprep.subr.bf16.mxu0 %v1184_v5  ;;  %1197 = vmatprep.subr.bf16.mxu1 %v1184_v5  ;;  %v49_v19 = vld [vmem:[%s1766_s0 + $0x118] sm:$0xff]  ;;  %v18_v20 = vld [vmem:[%s1766_s0 + $0x20] sm:$0xff]  ;;  %v19_v22 = vld [vmem:[%s1766_s0 + $0x28] sm:$0xff] }
   0x7   :  { %1084 = vmatprep.mubr.msk.f32.mxu0 %vm93_vm0, %v14_v8  ;;  %1132 = vmatprep.mubr.msk.f32.mxu1 %vm93_vm0, %v46_v9  ;;  %v50_v21 = vld [vmem:[%s1766_s0 + $0x120] sm:$0xff]  ;;  %v51_v23 = vld [vmem:[%s1766_s0 + $0x128] sm:$0xff]  ;;  %v20_v24 = vld [vmem:[%s1766_s0 + $0x30] sm:$0xff] }
   0x8   :  { %v52_v25 = vld [vmem:[%s1766_s0 + $0x130] sm:$0xff]  ;;  %v21_v26 = vld [vmem:[%s1766_s0 + $0x38] sm:$0xff]  ;;  %v22_v28 = vld [vmem:[%s1766_s0 + $0x40] sm:$0xff] }
   0x9   :  { %1187 = vmatpush3.bf16.msra.mxu0 %v1184_v5  ;;  %1201 = vmatpush3.bf16.msra.mxu1 %v1184_v5  ;;  %v53_v27 = vld [vmem:[%s1766_s0 + $0x138] sm:$0xff]  ;;  %v54_v29 = vld [vmem:[%s1766_s0 + $0x140] sm:$0xff]  ;;  %v23_v30 = vld [vmem:[%s1766_s0 + $0x48] sm:$0xff] }
   0xa   :  { %1189 = vmatprep.subr.bf16.mxu0 %v1188_v10  ;;  %1198 = vmatprep.subr.bf16.mxu1 %v1188_v10  ;;  %v55_v31 = vld [vmem:[%s1766_s0 + $0x148] sm:$0xff]  ;;  %v24_v32 = vld [vmem:[%s1766_s0 + $0x50] sm:$0xff]  ;;  %v25_v34 = vld [vmem:[%s1766_s0 + $0x58] sm:$0xff] }
   0xb   :  { %v56_v33 = vld [vmem:[%s1766_s0 + $0x150] sm:$0xff]  ;;  %v57_v35 = vld [vmem:[%s1766_s0 + $0x158] sm:$0xff]  ;;  %v26_v36 = vld [vmem:[%s1766_s0 + $0x60] sm:$0xff] }
   0xc   :  { %v58_v37 = vld [vmem:[%s1766_s0 + $0x160] sm:$0xff]  ;;  %v27_v38 = vld [vmem:[%s1766_s0 + $0x68] sm:$0xff]  ;;  %v28_v40 = vld [vmem:[%s1766_s0 + $0x70] sm:$0xff] }
   0xd   :  { %1191 = vmatpush3.bf16.msra.mxu0 %v1188_v10  ;;  %1202 = vmatpush3.bf16.msra.mxu1 %v1188_v10  ;;  %v59_v39 = vld [vmem:[%s1766_s0 + $0x168] sm:$0xff]  ;;  %v60_v41 = vld [vmem:[%s1766_s0 + $0x170] sm:$0xff]  ;;  %v29_v42 = vld [vmem:[%s1766_s0 + $0x78] sm:$0xff] }
   0xe   :  { %1193 = vmatprep.subr.bf16.mxu0 %v1192_v13  ;;  %1199 = vmatprep.subr.bf16.mxu1 %v1192_v13  ;;  %v61_v43 = vld [vmem:[%s1766_s0 + $0x178] sm:$0xff]  ;;  %v30_v44 = vld [vmem:[%s1766_s0 + $0x80] sm:$0xff]  ;;  %v31_v46 = vld [vmem:[%s1766_s0 + $0x88] sm:$0xff] }
   0xf   :  { %v62_v45 = vld [vmem:[%s1766_s0 + $0x180] sm:$0xff]  ;;  %v63_v47 = vld [vmem:[%s1766_s0 + $0x188] sm:$0xff]  ;;  %v32_v48 = vld [vmem:[%s1766_s0 + $0x90] sm:$0xff] }
  0x10   :  { %v64_v49 = vld [vmem:[%s1766_s0 + $0x190] sm:$0xff]  ;;  %v33_v50 = vld [vmem:[%s1766_s0 + $0x98] sm:$0xff]  ;;  %v34_v52 = vld [vmem:[%s1766_s0 + $0xa0] sm:$0xff] }
  0x11   :  { %1195 = vmatpush3.bf16.msra.mxu0 %v1192_v13  ;;  %1203 = vmatpush3.bf16.msra.mxu1 %v1192_v13  ;;  %v65_v51 = vld [vmem:[%s1766_s0 + $0x198] sm:$0xff]  ;;  %v66_v53 = vld [vmem:[%s1766_s0 + $0x1a0] sm:$0xff]  ;;  %v35_v54 = vld [vmem:[%s1766_s0 + $0xa8] sm:$0xff] }
  0x12   :  { %v67_v55 = vld [vmem:[%s1766_s0 + $0x1a8] sm:$0xff]  ;;  %v36_v56 = vld [vmem:[%s1766_s0 + $0xb0] sm:$0xff]  ;;  %v37_v58 = vld [vmem:[%s1766_s0 + $0xb8] sm:$0xff] }
  0x13   :  { %v68_v57 = vld [vmem:[%s1766_s0 + $0x1b0] sm:$0xff]  ;;  %v69_v59 = vld [vmem:[%s1766_s0 + $0x1b8] sm:$0xff]  ;;  %v38_v60 = vld [vmem:[%s1766_s0 + $0xc0] sm:$0xff] }
  0x14   :  { %1085 = vmatmul.mubr.msk.f32.vlgmr.msra.gmra.mrb[0].mxu0 %vm93_vm0, %v15_v14  ;;  %1133 = vmatmul.mubr.msk.f32.vlgmr.msra.gmra.mrb[0].mxu1 %vm93_vm0, %v47_v15  ;;  %v70_v61 = vld [vmem:[%s1766_s0 + $0x1c0] sm:$0xff]  ;;  %v39_v62 = vld [vmem:[%s1766_s0 + $0xc8] sm:$0xff]  ;;  %v40_v0 = vld [vmem:[%s1766_s0 + $0xd0] sm:$0xff] }
  0x15   :  { %1087 = vmatprep.mubr.msk.f32.mxu0 %vm93_vm0, %v16_v16  ;;  %1135 = vmatprep.mubr.msk.f32.mxu1 %vm93_vm0, %v48_v17  ;;  %v71_v63 = vld [vmem:[%s1766_s0 + $0x1c8] sm:$0xff]  ;;  %v72_v1 = vld [vmem:[%s1766_s0 + $0x1d0] sm:$0xff]  ;;  %v41_v2 = vld [vmem:[%s1766_s0 + $0xd8] sm:$0xff] }
  0x16   :  { %v73_v3 = vld [vmem:[%s1766_s0 + $0x1d8] sm:$0xff]  ;;  %v42_v4 = vld [vmem:[%s1766_s0 + $0xe0] sm:$0xff]  ;;  %v43_v6 = vld [vmem:[%s1766_s0 + $0xe8] sm:$0xff] }
  0x17   :  { %v74_v5 = vld [vmem:[%s1766_s0 + $0x1e0] sm:$0xff]  ;;  %v75_v7 = vld [vmem:[%s1766_s0 + $0x1e8] sm:$0xff]  ;;  %v44_v8 = vld [vmem:[%s1766_s0 + $0xf0] sm:$0xff] }
  0x18   :  { %1088 = vmatmul.mubr.msk.f32.gmra.mrb[2].mxu0 %vm93_vm0, %v17_v18  ;;  %1136 = vmatmul.mubr.msk.f32.gmra.mrb[2].mxu1 %vm93_vm0, %v49_v19  ;;  %v76_v9 = vld [vmem:[%s1766_s0 + $0x1f0] sm:$0xff]  ;;  %v45_v10 = vld [vmem:[%s1766_s0 + $0xf8] sm:$0xff]  ;;  %v1507_v12 = vld [vmem:[%s1767_s2] ss:$0 sm:$0xff] }
  0x19   :  { %1090 = vmatprep.mubr.msk.f32.mxu0 %vm93_vm0, %v18_v20  ;;  %1138 = vmatprep.mubr.msk.f32.mxu1 %vm93_vm0, %v50_v21  ;;  %v77_v11 = vld [vmem:[%s1766_s0 + $0x1f8] sm:$0xff] }
  0x1c   :  { %1091 = vmatmul.mubr.msk.f32.gmra.mrb[4].mxu0 %vm93_vm0, %v19_v22  ;;  %1139 = vmatmul.mubr.msk.f32.gmra.mrb[4].mxu1 %vm93_vm0, %v51_v23 }
  0x1d   :  { %1093 = vmatprep.mubr.msk.f32.mxu0 %vm93_vm0, %v20_v24  ;;  %1141 = vmatprep.mubr.msk.f32.mxu1 %vm93_vm0, %v52_v25 }
  0x20   :  { %1094 = vmatmul.mubr.msk.f32.gmra.mrb[6].mxu0 %vm93_vm0, %v21_v26  ;;  %1142 = vmatmul.mubr.msk.f32.gmra.mrb[6].mxu1 %vm93_vm0, %v53_v27 }
  0x21   :  { %1096 = vmatprep.mubr.msk.f32.mxu0 %vm93_vm0, %v22_v28  ;;  %1144 = vmatprep.mubr.msk.f32.mxu1 %vm93_vm0, %v54_v29 }
  0x24   :  { %1097 = vmatmul.mubr.msk.f32.gmra.mrb[8].mxu0 %vm93_vm0, %v23_v30  ;;  %1145 = vmatmul.mubr.msk.f32.gmra.mrb[8].mxu1 %vm93_vm0, %v55_v31 }
  0x25   :  { %1099 = vmatprep.mubr.msk.f32.mxu0 %vm93_vm0, %v24_v32  ;;  %1147 = vmatprep.mubr.msk.f32.mxu1 %vm93_vm0, %v56_v33 }
  0x28   :  { %1100 = vmatmul.mubr.msk.f32.gmra.mrb[10].mxu0 %vm93_vm0, %v25_v34  ;;  %1148 = vmatmul.mubr.msk.f32.gmra.mrb[10].mxu1 %vm93_vm0, %v57_v35 }
  0x29   :  { %1102 = vmatprep.mubr.msk.f32.mxu0 %vm93_vm0, %v26_v36  ;;  %1150 = vmatprep.mubr.msk.f32.mxu1 %vm93_vm0, %v58_v37 }
  0x2c   :  { %1103 = vmatmul.mubr.msk.f32.gmra.mrb[12].mxu0 %vm93_vm0, %v27_v38  ;;  %1151 = vmatmul.mubr.msk.f32.gmra.mrb[12].mxu1 %vm93_vm0, %v59_v39 }
  0x2d   :  { %1105 = vmatprep.mubr.msk.f32.mxu0 %vm93_vm0, %v28_v40  ;;  %1153 = vmatprep.mubr.msk.f32.mxu1 %vm93_vm0, %v60_v41 }
  0x30   :  { %1106 = vmatmul.mubr.msk.f32.gmra.mrb[14].mxu0 %vm93_vm0, %v29_v42  ;;  %1154 = vmatmul.mubr.msk.f32.gmra.mrb[14].mxu1 %vm93_vm0, %v61_v43 }
  0x31   :  { %1108 = vmatprep.mubr.msk.f32.mxu0 %vm93_vm0, %v30_v44  ;;  %1156 = vmatprep.mubr.msk.f32.mxu1 %vm93_vm0, %v62_v45 }
  0x34   :  { %1109 = vmatmul.mubr.msk.f32.gmra.mrb[16].mxu0 %vm93_vm0, %v31_v46  ;;  %1157 = vmatmul.mubr.msk.f32.gmra.mrb[16].mxu1 %vm93_vm0, %v63_v47 }
  0x35   :  { %1111 = vmatprep.mubr.msk.f32.mxu0 %vm93_vm0, %v32_v48  ;;  %1159 = vmatprep.mubr.msk.f32.mxu1 %vm93_vm0, %v64_v49 }
  0x38   :  { %1112 = vmatmul.mubr.msk.f32.gmra.mrb[18].mxu0 %vm93_vm0, %v33_v50  ;;  %1160 = vmatmul.mubr.msk.f32.gmra.mrb[18].mxu1 %vm93_vm0, %v65_v51 }
  0x39   :  { %1114 = vmatprep.mubr.msk.f32.mxu0 %vm93_vm0, %v34_v52  ;;  %1162 = vmatprep.mubr.msk.f32.mxu1 %vm93_vm0, %v66_v53 }
  0x3c   :  { %1115 = vmatmul.mubr.msk.f32.gmra.mrb[20].mxu0 %vm93_vm0, %v35_v54  ;;  %1163 = vmatmul.mubr.msk.f32.gmra.mrb[20].mxu1 %vm93_vm0, %v67_v55 }
  0x3d   :  { %1117 = vmatprep.mubr.msk.f32.mxu0 %vm93_vm0, %v36_v56  ;;  %1165 = vmatprep.mubr.msk.f32.mxu1 %vm93_vm0, %v68_v57 }
  0x40   :  { %1118 = vmatmul.mubr.msk.f32.gmra.mrb[22].mxu0 %vm93_vm0, %v37_v58  ;;  %1166 = vmatmul.mubr.msk.f32.gmra.mrb[22].mxu1 %vm93_vm0, %v69_v59 }
  0x41   :  { %1120 = vmatprep.mubr.msk.f32.mxu0 %vm93_vm0, %v38_v60  ;;  %1168 = vmatprep.mubr.msk.f32.mxu1 %vm93_vm0, %v70_v61 }
  0x44   :  { %1121 = vmatmul.mubr.msk.f32.gmra.mrb[24].mxu0 %vm93_vm0, %v39_v62  ;;  %1169 = vmatmul.mubr.msk.f32.gmra.mrb[24].mxu1 %vm93_vm0, %v71_v63 }
  0x45   :  { %1123 = vmatprep.mubr.msk.f32.mxu0 %vm93_vm0, %v40_v0  ;;  %1171 = vmatprep.mubr.msk.f32.mxu1 %vm93_vm0, %v72_v1 }
  0x48   :  { %1124 = vmatmul.mubr.msk.f32.gmra.mrb[26].mxu0 %vm93_vm0, %v41_v2  ;;  %1172 = vmatmul.mubr.msk.f32.gmra.mrb[26].mxu1 %vm93_vm0, %v73_v3 }
  0x49   :  { %1126 = vmatprep.mubr.msk.f32.mxu0 %vm93_vm0, %v42_v4  ;;  %1174 = vmatprep.mubr.msk.f32.mxu1 %vm93_vm0, %v74_v5 }
  0x4c   :  { %1127 = vmatmul.mubr.msk.f32.gmra.mrb[28].mxu0 %vm93_vm0, %v43_v6  ;;  %1175 = vmatmul.mubr.msk.f32.gmra.mrb[28].mxu1 %vm93_vm0, %v75_v7 }
  0x4d   :  { %1129 = vmatprep.mubr.msk.f32.mxu0 %vm93_vm0, %v44_v8  ;;  %1177 = vmatprep.mubr.msk.f32.mxu1 %vm93_vm0, %v76_v9 }
  0x50   :  { %1130 = vmatmul.mubr.msk.f32.gmra.mrb[30].mxu0 %vm93_vm0, %v45_v10  ;;  %1178 = vmatmul.mubr.msk.f32.gmra.mrb[30].mxu1 %vm93_vm0, %v77_v11 }
  0xe7   :  { %v1086_v13 = vpop.f32.mrb[0].mxu0  ;;  %v1134_v14 = vpop.f32.mrb[0].mxu1 }
  0xe8   :  { %v358_v15 = vadd.f32 %v1086_v13, %v1507_v12  ;;  %v518_v16 = vadd.f32 %v1134_v14, %v1507_v12  ;;  %v352_v17 = vpop.f32.mrb[1].mxu0  ;;  %v512_v18 = vpop.f32.mrb[1].mxu1 }
  0xe9   :  { %v353_v19 = vadd.f32 %v1507_v12, %v352_v17  ;;  %v513_v20 = vadd.f32 %v1507_v12, %v512_v18 }
  0xea   :  { %vm672_vm1 = vcmp.ge.f32.partialorder %v358_v15, 0.0  ;;  %v736_v21 = vmul.f32 0.2, %v358_v15  ;;  %vm704_vm2 = vcmp.ge.f32.partialorder %v518_v16, 0.0  ;;  %v768_v22 = vmul.f32 0.2, %v518_v16 }
  0xeb   :  { %vm671_vm3 = vcmp.ge.f32.partialorder %v353_v19, 0.0  ;;  %v735_v23 = vmul.f32 0.2, %v353_v19  ;;  %vm703_vm4 = vcmp.ge.f32.partialorder %v513_v20, 0.0  ;;  %v767_v24 = vmul.f32 0.2, %v513_v20 }
  0xec   :  { %v800_v25 = vsel %vm672_vm1, %v358_v15, %v736_v21  ;;  %v832_v26 = vsel %vm704_vm2, %v518_v16, %v768_v22  ;;  %v1089_v27 = vpop.f32.mrb[2].mxu0  ;;  %v1137_v28 = vpop.f32.mrb[2].mxu1 }
  0xed   :  { %864 = vst [vmem:[%s1768_s3 + $0x8] sm:$0xff] %v800_v25  ;;  %896 = vst [vmem:[%s1768_s3 + $0x108] sm:$0xff] %v832_v26  ;;  %v799_v29 = vsel %vm671_vm3, %v353_v19, %v735_v23  ;;  %v831_v30 = vsel %vm703_vm4, %v513_v20, %v767_v24  ;;  %v368_v31 = vadd.f32 %v1089_v27, %v1507_v12  ;;  %v362_v33 = vpop.f32.mrb[3].mxu0  ;;  %v522_v34 = vpop.f32.mrb[3].mxu1 }
  0xee   :  { %v528_v32 = vadd.f32 %v1137_v28, %v1507_v12  ;;  %863 = vst [vmem:[%s1768_s3] sm:$0xff] %v799_v29  ;;  %895 = vst [vmem:[%s1768_s3 + $0x100] sm:$0xff] %v831_v30  ;;  %v363_v35 = vadd.f32 %v1507_v12, %v362_v33  ;;  %v523_v36 = vadd.f32 %v1507_v12, %v522_v34 }
  0xef   :  { %vm674_vm5 = vcmp.ge.f32.partialorder %v368_v31, 0.0  ;;  %v738_v37 = vmul.f32 0.2, %v368_v31  ;;  %v1092_v43 = vpop.f32.mrb[4].mxu0  ;;  %v1140_v44 = vpop.f32.mrb[4].mxu1 }
  0xf0   :  { %vm706_vm6 = vcmp.ge.f32.partialorder %v528_v32, 0.0  ;;  %v770_v38 = vmul.f32 0.2, %v528_v32  ;;  %vm673_vm7 = vcmp.ge.f32.partialorder %v363_v35, 0.0  ;;  %v737_v39 = vmul.f32 0.2, %v363_v35 }
  0xf1   :  { %vm705_vm8 = vcmp.ge.f32.partialorder %v523_v36, 0.0  ;;  %v769_v40 = vmul.f32 0.2, %v523_v36  ;;  %v802_v41 = vsel %vm674_vm5, %v368_v31, %v738_v37  ;;  %v378_v47 = vadd.f32 %v1092_v43, %v1507_v12  ;;  %v372_v49 = vpop.f32.mrb[5].mxu0  ;;  %v532_v50 = vpop.f32.mrb[5].mxu1 }
  0xf2   :  { %v834_v42 = vsel %vm706_vm6, %v528_v32, %v770_v38  ;;  %866 = vst [vmem:[%s1768_s3 + $0x18] sm:$0xff] %v802_v41  ;;  %v801_v45 = vsel %vm673_vm7, %v363_v35, %v737_v39  ;;  %v538_v48 = vadd.f32 %v1140_v44, %v1507_v12  ;;  %v373_v51 = vadd.f32 %v1507_v12, %v372_v49 }
  0xf3   :  { %898 = vst [vmem:[%s1768_s3 + $0x118] sm:$0xff] %v834_v42  ;;  %v833_v46 = vsel %vm705_vm8, %v523_v36, %v769_v40  ;;  %865 = vst [vmem:[%s1768_s3 + $0x10] sm:$0xff] %v801_v45  ;;  %v533_v52 = vadd.f32 %v1507_v12, %v532_v50  ;;  %v1095_v53 = vpop.f32.mrb[6].mxu0  ;;  %v1143_v54 = vpop.f32.mrb[6].mxu1  ;;  %vm676_vm9 = vcmp.ge.f32.partialorder %v378_v47, 0.0 }
  0xf4   :  { %897 = vst [vmem:[%s1768_s3 + $0x110] sm:$0xff] %v833_v46  ;;  %v740_v55 = vmul.f32 0.2, %v378_v47  ;;  %vm708_vm10 = vcmp.ge.f32.partialorder %v538_v48, 0.0  ;;  %v772_v56 = vmul.f32 0.2, %v538_v48  ;;  %v388_v61 = vadd.f32 %v1095_v53, %v1507_v12 }
  0xf5   :  { %vm675_vm11 = vcmp.ge.f32.partialorder %v373_v51, 0.0  ;;  %v739_v57 = vmul.f32 0.2, %v373_v51  ;;  %vm707_vm12 = vcmp.ge.f32.partialorder %v533_v52, 0.0  ;;  %v771_v58 = vmul.f32 0.2, %v533_v52 }
  0xf6   :  { %v804_v59 = vsel %vm676_vm9, %v378_v47, %v740_v55  ;;  %v836_v60 = vsel %vm708_vm10, %v538_v48, %v772_v56  ;;  %v548_v62 = vadd.f32 %v1143_v54, %v1507_v12  ;;  %v382_v63 = vpop.f32.mrb[7].mxu0  ;;  %v542_v0 = vpop.f32.mrb[7].mxu1  ;;  %vm678_vm13 = vcmp.ge.f32.partialorder %v388_v61, 0.0 }
  0xf7   :  { %868 = vst [vmem:[%s1768_s3 + $0x28] sm:$0xff] %v804_v59  ;;  %900 = vst [vmem:[%s1768_s3 + $0x128] sm:$0xff] %v836_v60  ;;  %v803_v1 = vsel %vm675_vm11, %v373_v51, %v739_v57  ;;  %v835_v2 = vsel %vm707_vm12, %v533_v52, %v771_v58  ;;  %v383_v3 = vadd.f32 %v1507_v12, %v382_v63  ;;  %v1098_v5 = vpop.f32.mrb[8].mxu0  ;;  %v1146_v6 = vpop.f32.mrb[8].mxu1  ;;  %v742_v7 = vmul.f32 0.2, %v388_v61 }
  0xf8   :  { %v543_v4 = vadd.f32 %v1507_v12, %v542_v0  ;;  %867 = vst [vmem:[%s1768_s3 + $0x20] sm:$0xff] %v803_v1  ;;  %899 = vst [vmem:[%s1768_s3 + $0x120] sm:$0xff] %v835_v2  ;;  %vm710_vm14 = vcmp.ge.f32.partialorder %v548_v62, 0.0  ;;  %v774_v8 = vmul.f32 0.2, %v548_v62  ;;  %v398_v14 = vadd.f32 %v1098_v5, %v1507_v12  ;;  %v392_v16 = vpop.f32.mrb[9].mxu0 }
  0xf9   :  { %vm677_vm15 = vcmp.ge.f32.partialorder %v383_v3, 0.0  ;;  %v741_v9 = vmul.f32 0.2, %v383_v3  ;;  %v806_v11 = vsel %vm678_vm13, %v388_v61, %v742_v7  ;;  %v558_v15 = vadd.f32 %v1146_v6, %v1507_v12  ;;  %v552_v17 = vpop.f32.mrb[9].mxu1 }
  0xfa   :  { %vm709_vm0 = vcmp.ge.f32.partialorder %v543_v4, 0.0  ;;  %v773_v10 = vmul.f32 0.2, %v543_v4  ;;  %v838_v13 = vsel %vm710_vm14, %v548_v62, %v774_v8  ;;  %870 = vst [vmem:[%s1768_s3 + $0x38] sm:$0xff] %v806_v11  ;;  %v393_v20 = vadd.f32 %v1507_v12, %v392_v16 }
  0xfb   :  { %902 = vst [vmem:[%s1768_s3 + $0x138] sm:$0xff] %v838_v13  ;;  %v805_v18 = vsel %vm677_vm15, %v383_v3, %v741_v9  ;;  %v553_v21 = vadd.f32 %v1507_v12, %v552_v17  ;;  %v1101_v22 = vpop.f32.mrb[10].mxu0  ;;  %v1149_v23 = vpop.f32.mrb[10].mxu1  ;;  %vm680_vm1 = vcmp.ge.f32.partialorder %v398_v14, 0.0  ;;  %v744_v24 = vmul.f32 0.2, %v398_v14 }
  0xfc   :  { %v837_v19 = vsel %vm709_vm0, %v543_v4, %v773_v10  ;;  %869 = vst [vmem:[%s1768_s3 + $0x30] sm:$0xff] %v805_v18  ;;  %vm712_vm2 = vcmp.ge.f32.partialorder %v558_v15, 0.0  ;;  %v776_v25 = vmul.f32 0.2, %v558_v15  ;;  %vm679_vm3 = vcmp.ge.f32.partialorder %v393_v20, 0.0  ;;  %v402_v32 = vpop.f32.mrb[11].mxu0 }
  0xfd   :  { %901 = vst [vmem:[%s1768_s3 + $0x130] sm:$0xff] %v837_v19  ;;  %v743_v26 = vmul.f32 0.2, %v393_v20  ;;  %vm711_vm4 = vcmp.ge.f32.partialorder %v553_v21, 0.0  ;;  %v775_v27 = vmul.f32 0.2, %v553_v21  ;;  %v808_v28 = vsel %vm680_vm1, %v398_v14, %v744_v24 }
  0xfe   :  { %v840_v29 = vsel %vm712_vm2, %v558_v15, %v776_v25  ;;  %v408_v30 = vadd.f32 %v1101_v22, %v1507_v12  ;;  %v568_v31 = vadd.f32 %v1149_v23, %v1507_v12  ;;  %v562_v33 = vpop.f32.mrb[11].mxu1  ;;  %872 = vst [vmem:[%s1768_s3 + $0x48] sm:$0xff] %v808_v28  ;;  %v403_v36 = vadd.f32 %v1507_v12, %v402_v32 }
  0xff   :  { %904 = vst [vmem:[%s1768_s3 + $0x148] sm:$0xff] %v840_v29  ;;  %v807_v34 = vsel %vm679_vm3, %v393_v20, %v743_v26  ;;  %v839_v35 = vsel %vm711_vm4, %v553_v21, %v775_v27  ;;  %v563_v37 = vadd.f32 %v1507_v12, %v562_v33  ;;  %v1104_v38 = vpop.f32.mrb[12].mxu0  ;;  %v1152_v39 = vpop.f32.mrb[12].mxu1 }
 0x100   :  { %871 = vst [vmem:[%s1768_s3 + $0x40] sm:$0xff] %v807_v34  ;;  %903 = vst [vmem:[%s1768_s3 + $0x140] sm:$0xff] %v839_v35  ;;  %vm682_vm5 = vcmp.ge.f32.partialorder %v408_v30, 0.0  ;;  %v746_v40 = vmul.f32 0.2, %v408_v30  ;;  %vm714_vm6 = vcmp.ge.f32.partialorder %v568_v31, 0.0  ;;  %v418_v46 = vadd.f32 %v1104_v38, %v1507_v12 }
 0x101   :  { %v778_v41 = vmul.f32 0.2, %v568_v31  ;;  %vm681_vm7 = vcmp.ge.f32.partialorder %v403_v36, 0.0  ;;  %v745_v42 = vmul.f32 0.2, %v403_v36  ;;  %vm713_vm8 = vcmp.ge.f32.partialorder %v563_v37, 0.0 }
 0x102   :  { %v777_v43 = vmul.f32 0.2, %v563_v37  ;;  %v810_v44 = vsel %vm682_vm5, %v408_v30, %v746_v40  ;;  %v578_v47 = vadd.f32 %v1152_v39, %v1507_v12  ;;  %v412_v48 = vpop.f32.mrb[13].mxu0  ;;  %v572_v49 = vpop.f32.mrb[13].mxu1  ;;  %vm684_vm9 = vcmp.ge.f32.partialorder %v418_v46, 0.0 }
 0x103   :  { %v842_v45 = vsel %vm714_vm6, %v568_v31, %v778_v41  ;;  %874 = vst [vmem:[%s1768_s3 + $0x58] sm:$0xff] %v810_v44  ;;  %v809_v50 = vsel %vm681_vm7, %v403_v36, %v745_v42  ;;  %v413_v52 = vadd.f32 %v1507_v12, %v412_v48  ;;  %v573_v53 = vadd.f32 %v1507_v12, %v572_v49  ;;  %v1107_v54 = vpop.f32.mrb[14].mxu0  ;;  %v1155_v55 = vpop.f32.mrb[14].mxu1 }
 0x104   :  { %906 = vst [vmem:[%s1768_s3 + $0x158] sm:$0xff] %v842_v45  ;;  %v841_v51 = vsel %vm713_vm8, %v563_v37, %v777_v43  ;;  %873 = vst [vmem:[%s1768_s3 + $0x50] sm:$0xff] %v809_v50  ;;  %v748_v56 = vmul.f32 0.2, %v418_v46  ;;  %vm716_vm10 = vcmp.ge.f32.partialorder %v578_v47, 0.0  ;;  %v428_v62 = vadd.f32 %v1107_v54, %v1507_v12  ;;  %v422_v0 = vpop.f32.mrb[15].mxu0 }
 0x105   :  { %905 = vst [vmem:[%s1768_s3 + $0x150] sm:$0xff] %v841_v51  ;;  %v780_v57 = vmul.f32 0.2, %v578_v47  ;;  %vm683_vm11 = vcmp.ge.f32.partialorder %v413_v52, 0.0  ;;  %v747_v58 = vmul.f32 0.2, %v413_v52  ;;  %v588_v63 = vadd.f32 %v1155_v55, %v1507_v12 }
 0x106   :  { %vm715_vm12 = vcmp.ge.f32.partialorder %v573_v53, 0.0  ;;  %v779_v59 = vmul.f32 0.2, %v573_v53  ;;  %v812_v60 = vsel %vm684_vm9, %v418_v46, %v748_v56  ;;  %v582_v1 = vpop.f32.mrb[15].mxu1  ;;  %v423_v4 = vadd.f32 %v1507_v12, %v422_v0 }
 0x107   :  { %v844_v61 = vsel %vm716_vm10, %v578_v47, %v780_v57  ;;  %876 = vst [vmem:[%s1768_s3 + $0x68] sm:$0xff] %v812_v60  ;;  %v811_v2 = vsel %vm683_vm11, %v413_v52, %v747_v58  ;;  %v583_v5 = vadd.f32 %v1507_v12, %v582_v1  ;;  %v1110_v6 = vpop.f32.mrb[16].mxu0  ;;  %v1158_v7 = vpop.f32.mrb[16].mxu1  ;;  %vm686_vm13 = vcmp.ge.f32.partialorder %v428_v62, 0.0 }
 0x108   :  { %908 = vst [vmem:[%s1768_s3 + $0x168] sm:$0xff] %v844_v61  ;;  %v843_v3 = vsel %vm715_vm12, %v573_v53, %v779_v59  ;;  %875 = vst [vmem:[%s1768_s3 + $0x60] sm:$0xff] %v811_v2  ;;  %v750_v8 = vmul.f32 0.2, %v428_v62  ;;  %vm718_vm14 = vcmp.ge.f32.partialorder %v588_v63, 0.0  ;;  %vm685_vm15 = vcmp.ge.f32.partialorder %v423_v4, 0.0 }
 0x109   :  { %907 = vst [vmem:[%s1768_s3 + $0x160] sm:$0xff] %v843_v3  ;;  %v782_v9 = vmul.f32 0.2, %v588_v63  ;;  %v749_v10 = vmul.f32 0.2, %v423_v4  ;;  %vm717_vm0 = vcmp.ge.f32.partialorder %v583_v5, 0.0  ;;  %v438_v15 = vadd.f32 %v1110_v6, %v1507_v12 }
 0x10a   :  { %v781_v11 = vmul.f32 0.2, %v583_v5  ;;  %v814_v13 = vsel %vm686_vm13, %v428_v62, %v750_v8  ;;  %v598_v16 = vadd.f32 %v1158_v7, %v1507_v12  ;;  %v432_v17 = vpop.f32.mrb[17].mxu0  ;;  %v592_v18 = vpop.f32.mrb[17].mxu1 }
 0x10b   :  { %v846_v14 = vsel %vm718_vm14, %v588_v63, %v782_v9  ;;  %878 = vst [vmem:[%s1768_s3 + $0x78] sm:$0xff] %v814_v13  ;;  %v813_v19 = vsel %vm685_vm15, %v423_v4, %v749_v10  ;;  %v433_v21 = vadd.f32 %v1507_v12, %v432_v17  ;;  %v593_v22 = vadd.f32 %v1507_v12, %v592_v18  ;;  %v1113_v23 = vpop.f32.mrb[18].mxu0  ;;  %v1161_v24 = vpop.f32.mrb[18].mxu1 }
 0x10c   :  { %910 = vst [vmem:[%s1768_s3 + $0x178] sm:$0xff] %v846_v14  ;;  %v845_v20 = vsel %vm717_vm0, %v583_v5, %v781_v11  ;;  %877 = vst [vmem:[%s1768_s3 + $0x70] sm:$0xff] %v813_v19  ;;  %vm688_vm1 = vcmp.ge.f32.partialorder %v438_v15, 0.0  ;;  %v752_v25 = vmul.f32 0.2, %v438_v15  ;;  %vm720_vm2 = vcmp.ge.f32.partialorder %v598_v16, 0.0 }
 0x10d   :  { %909 = vst [vmem:[%s1768_s3 + $0x170] sm:$0xff] %v845_v20  ;;  %v784_v26 = vmul.f32 0.2, %v598_v16  ;;  %vm687_vm3 = vcmp.ge.f32.partialorder %v433_v21, 0.0  ;;  %v751_v27 = vmul.f32 0.2, %v433_v21  ;;  %v448_v31 = vadd.f32 %v1113_v23, %v1507_v12 }
 0x10e   :  { %vm719_vm4 = vcmp.ge.f32.partialorder %v593_v22, 0.0  ;;  %v783_v28 = vmul.f32 0.2, %v593_v22  ;;  %v816_v29 = vsel %vm688_vm1, %v438_v15, %v752_v25  ;;  %v608_v32 = vadd.f32 %v1161_v24, %v1507_v12  ;;  %v442_v33 = vpop.f32.mrb[19].mxu0  ;;  %v602_v34 = vpop.f32.mrb[19].mxu1 }
 0x10f   :  { %v848_v30 = vsel %vm720_vm2, %v598_v16, %v784_v26  ;;  %880 = vst [vmem:[%s1768_s3 + $0x88] sm:$0xff] %v816_v29  ;;  %v815_v35 = vsel %vm687_vm3, %v433_v21, %v751_v27  ;;  %v443_v37 = vadd.f32 %v1507_v12, %v442_v33  ;;  %v603_v38 = vadd.f32 %v1507_v12, %v602_v34  ;;  %v1116_v39 = vpop.f32.mrb[20].mxu0  ;;  %v1164_v40 = vpop.f32.mrb[20].mxu1 }
 0x110   :  { %912 = vst [vmem:[%s1768_s3 + $0x188] sm:$0xff] %v848_v30  ;;  %v847_v36 = vsel %vm719_vm4, %v593_v22, %v783_v28  ;;  %879 = vst [vmem:[%s1768_s3 + $0x80] sm:$0xff] %v815_v35  ;;  %vm690_vm5 = vcmp.ge.f32.partialorder %v448_v31, 0.0  ;;  %v754_v41 = vmul.f32 0.2, %v448_v31  ;;  %vm722_vm6 = vcmp.ge.f32.partialorder %v608_v32, 0.0 }
 0x111   :  { %911 = vst [vmem:[%s1768_s3 + $0x180] sm:$0xff] %v847_v36  ;;  %v786_v42 = vmul.f32 0.2, %v608_v32  ;;  %vm689_vm7 = vcmp.ge.f32.partialorder %v443_v37, 0.0  ;;  %v753_v43 = vmul.f32 0.2, %v443_v37  ;;  %v458_v47 = vadd.f32 %v1116_v39, %v1507_v12 }
 0x112   :  { %vm721_vm8 = vcmp.ge.f32.partialorder %v603_v38, 0.0  ;;  %v785_v44 = vmul.f32 0.2, %v603_v38  ;;  %v818_v45 = vsel %vm690_vm5, %v448_v31, %v754_v41  ;;  %v618_v48 = vadd.f32 %v1164_v40, %v1507_v12  ;;  %v452_v49 = vpop.f32.mrb[21].mxu0  ;;  %v612_v50 = vpop.f32.mrb[21].mxu1 }
 0x113   :  { %v850_v46 = vsel %vm722_vm6, %v608_v32, %v786_v42  ;;  %882 = vst [vmem:[%s1768_s3 + $0x98] sm:$0xff] %v818_v45  ;;  %v817_v51 = vsel %vm689_vm7, %v443_v37, %v753_v43  ;;  %v453_v53 = vadd.f32 %v1507_v12, %v452_v49  ;;  %v613_v54 = vadd.f32 %v1507_v12, %v612_v50  ;;  %v1119_v55 = vpop.f32.mrb[22].mxu0  ;;  %v1167_v56 = vpop.f32.mrb[22].mxu1 }
 0x114   :  { %914 = vst [vmem:[%s1768_s3 + $0x198] sm:$0xff] %v850_v46  ;;  %v849_v52 = vsel %vm721_vm8, %v603_v38, %v785_v44  ;;  %881 = vst [vmem:[%s1768_s3 + $0x90] sm:$0xff] %v817_v51  ;;  %vm692_vm9 = vcmp.ge.f32.partialorder %v458_v47, 0.0  ;;  %v756_v57 = vmul.f32 0.2, %v458_v47  ;;  %vm724_vm10 = vcmp.ge.f32.partialorder %v618_v48, 0.0 }
 0x115   :  { %913 = vst [vmem:[%s1768_s3 + $0x190] sm:$0xff] %v849_v52  ;;  %v788_v58 = vmul.f32 0.2, %v618_v48  ;;  %vm691_vm11 = vcmp.ge.f32.partialorder %v453_v53, 0.0  ;;  %v755_v59 = vmul.f32 0.2, %v453_v53  ;;  %v468_v63 = vadd.f32 %v1119_v55, %v1507_v12 }
 0x116   :  { %vm723_vm12 = vcmp.ge.f32.partialorder %v613_v54, 0.0  ;;  %v787_v60 = vmul.f32 0.2, %v613_v54  ;;  %v820_v61 = vsel %vm692_vm9, %v458_v47, %v756_v57  ;;  %v628_v0 = vadd.f32 %v1167_v56, %v1507_v12  ;;  %v462_v1 = vpop.f32.mrb[23].mxu0  ;;  %v622_v2 = vpop.f32.mrb[23].mxu1 }
 0x117   :  { %v852_v62 = vsel %vm724_vm10, %v618_v48, %v788_v58  ;;  %884 = vst [vmem:[%s1768_s3 + $0xa8] sm:$0xff] %v820_v61  ;;  %v819_v3 = vsel %vm691_vm11, %v453_v53, %v755_v59  ;;  %v463_v5 = vadd.f32 %v1507_v12, %v462_v1  ;;  %v623_v6 = vadd.f32 %v1507_v12, %v622_v2  ;;  %v1122_v7 = vpop.f32.mrb[24].mxu0  ;;  %v1170_v8 = vpop.f32.mrb[24].mxu1 }
 0x118   :  { %916 = vst [vmem:[%s1768_s3 + $0x1a8] sm:$0xff] %v852_v62  ;;  %v851_v4 = vsel %vm723_vm12, %v613_v54, %v787_v60  ;;  %883 = vst [vmem:[%s1768_s3 + $0xa0] sm:$0xff] %v819_v3  ;;  %vm694_vm13 = vcmp.ge.f32.partialorder %v468_v63, 0.0  ;;  %v758_v9 = vmul.f32 0.2, %v468_v63  ;;  %vm726_vm14 = vcmp.ge.f32.partialorder %v628_v0, 0.0 }
 0x119   :  { %915 = vst [vmem:[%s1768_s3 + $0x1a0] sm:$0xff] %v851_v4  ;;  %v790_v10 = vmul.f32 0.2, %v628_v0  ;;  %vm693_vm15 = vcmp.ge.f32.partialorder %v463_v5, 0.0  ;;  %v757_v11 = vmul.f32 0.2, %v463_v5  ;;  %v478_v16 = vadd.f32 %v1122_v7, %v1507_v12 }
 0x11a   :  { %vm725_vm0 = vcmp.ge.f32.partialorder %v623_v6, 0.0  ;;  %v789_v13 = vmul.f32 0.2, %v623_v6  ;;  %v822_v14 = vsel %vm694_vm13, %v468_v63, %v758_v9  ;;  %v638_v17 = vadd.f32 %v1170_v8, %v1507_v12  ;;  %v472_v18 = vpop.f32.mrb[25].mxu0  ;;  %v632_v19 = vpop.f32.mrb[25].mxu1 }
 0x11b   :  { %v854_v15 = vsel %vm726_vm14, %v628_v0, %v790_v10  ;;  %886 = vst [vmem:[%s1768_s3 + $0xb8] sm:$0xff] %v822_v14  ;;  %v821_v20 = vsel %vm693_vm15, %v463_v5, %v757_v11  ;;  %v473_v22 = vadd.f32 %v1507_v12, %v472_v18  ;;  %v633_v23 = vadd.f32 %v1507_v12, %v632_v19  ;;  %v1125_v24 = vpop.f32.mrb[26].mxu0  ;;  %v1173_v25 = vpop.f32.mrb[26].mxu1 }
 0x11c   :  { %918 = vst [vmem:[%s1768_s3 + $0x1b8] sm:$0xff] %v854_v15  ;;  %v853_v21 = vsel %vm725_vm0, %v623_v6, %v789_v13  ;;  %885 = vst [vmem:[%s1768_s3 + $0xb0] sm:$0xff] %v821_v20  ;;  %vm696_vm1 = vcmp.ge.f32.partialorder %v478_v16, 0.0  ;;  %v760_v26 = vmul.f32 0.2, %v478_v16  ;;  %vm728_vm2 = vcmp.ge.f32.partialorder %v638_v17, 0.0 }
 0x11d   :  { %917 = vst [vmem:[%s1768_s3 + $0x1b0] sm:$0xff] %v853_v21  ;;  %v792_v27 = vmul.f32 0.2, %v638_v17  ;;  %vm695_vm3 = vcmp.ge.f32.partialorder %v473_v22, 0.0  ;;  %v759_v28 = vmul.f32 0.2, %v473_v22  ;;  %v488_v32 = vadd.f32 %v1125_v24, %v1507_v12 }
 0x11e   :  { %vm727_vm4 = vcmp.ge.f32.partialorder %v633_v23, 0.0  ;;  %v791_v29 = vmul.f32 0.2, %v633_v23  ;;  %v824_v30 = vsel %vm696_vm1, %v478_v16, %v760_v26  ;;  %v648_v33 = vadd.f32 %v1173_v25, %v1507_v12  ;;  %v482_v34 = vpop.f32.mrb[27].mxu0  ;;  %v642_v35 = vpop.f32.mrb[27].mxu1 }
 0x11f   :  { %v856_v31 = vsel %vm728_vm2, %v638_v17, %v792_v27  ;;  %888 = vst [vmem:[%s1768_s3 + $0xc8] sm:$0xff] %v824_v30  ;;  %v823_v36 = vsel %vm695_vm3, %v473_v22, %v759_v28  ;;  %v483_v38 = vadd.f32 %v1507_v12, %v482_v34  ;;  %v643_v39 = vadd.f32 %v1507_v12, %v642_v35  ;;  %v1128_v40 = vpop.f32.mrb[28].mxu0  ;;  %v1176_v41 = vpop.f32.mrb[28].mxu1 }
 0x120   :  { %920 = vst [vmem:[%s1768_s3 + $0x1c8] sm:$0xff] %v856_v31  ;;  %v855_v37 = vsel %vm727_vm4, %v633_v23, %v791_v29  ;;  %887 = vst [vmem:[%s1768_s3 + $0xc0] sm:$0xff] %v823_v36  ;;  %vm698_vm5 = vcmp.ge.f32.partialorder %v488_v32, 0.0  ;;  %v762_v42 = vmul.f32 0.2, %v488_v32  ;;  %vm730_vm6 = vcmp.ge.f32.partialorder %v648_v33, 0.0 }
 0x121   :  { %919 = vst [vmem:[%s1768_s3 + $0x1c0] sm:$0xff] %v855_v37  ;;  %v794_v43 = vmul.f32 0.2, %v648_v33  ;;  %vm697_vm7 = vcmp.ge.f32.partialorder %v483_v38, 0.0  ;;  %v761_v44 = vmul.f32 0.2, %v483_v38  ;;  %v498_v48 = vadd.f32 %v1128_v40, %v1507_v12 }
 0x122   :  { %vm729_vm8 = vcmp.ge.f32.partialorder %v643_v39, 0.0  ;;  %v793_v45 = vmul.f32 0.2, %v643_v39  ;;  %v826_v46 = vsel %vm698_vm5, %v488_v32, %v762_v42  ;;  %v658_v49 = vadd.f32 %v1176_v41, %v1507_v12  ;;  %v492_v50 = vpop.f32.mrb[29].mxu0  ;;  %v652_v51 = vpop.f32.mrb[29].mxu1 }
 0x123   :  { %v858_v47 = vsel %vm730_vm6, %v648_v33, %v794_v43  ;;  %890 = vst [vmem:[%s1768_s3 + $0xd8] sm:$0xff] %v826_v46  ;;  %v825_v52 = vsel %vm697_vm7, %v483_v38, %v761_v44  ;;  %v493_v54 = vadd.f32 %v1507_v12, %v492_v50  ;;  %v653_v55 = vadd.f32 %v1507_v12, %v652_v51  ;;  %v1131_v56 = vpop.f32.mrb[30].mxu0  ;;  %v1179_v57 = vpop.f32.mrb[30].mxu1 }
 0x124   :  { %922 = vst [vmem:[%s1768_s3 + $0x1d8] sm:$0xff] %v858_v47  ;;  %v857_v53 = vsel %vm729_vm8, %v643_v39, %v793_v45  ;;  %889 = vst [vmem:[%s1768_s3 + $0xd0] sm:$0xff] %v825_v52  ;;  %vm700_vm9 = vcmp.ge.f32.partialorder %v498_v48, 0.0  ;;  %v764_v58 = vmul.f32 0.2, %v498_v48  ;;  %vm732_vm10 = vcmp.ge.f32.partialorder %v658_v49, 0.0 }
 0x125   :  { %921 = vst [vmem:[%s1768_s3 + $0x1d0] sm:$0xff] %v857_v53  ;;  %v796_v59 = vmul.f32 0.2, %v658_v49  ;;  %vm699_vm11 = vcmp.ge.f32.partialorder %v493_v54, 0.0  ;;  %v763_v60 = vmul.f32 0.2, %v493_v54  ;;  %v508_v0 = vadd.f32 %v1131_v56, %v1507_v12 }
 0x126   :  { %vm731_vm12 = vcmp.ge.f32.partialorder %v653_v55, 0.0  ;;  %v795_v61 = vmul.f32 0.2, %v653_v55  ;;  %v828_v62 = vsel %vm700_vm9, %v498_v48, %v764_v58  ;;  %v668_v1 = vadd.f32 %v1179_v57, %v1507_v12  ;;  %v502_v2 = vpop.f32.mrb[31].mxu0  ;;  %v662_v3 = vpop.f32.mrb[31].mxu1 }
 0x127   :  { %v860_v63 = vsel %vm732_vm10, %v658_v49, %v796_v59  ;;  %892 = vst [vmem:[%s1768_s3 + $0xe8] sm:$0xff] %v828_v62  ;;  %v827_v4 = vsel %vm699_vm11, %v493_v54, %v763_v60  ;;  %v503_v6 = vadd.f32 %v1507_v12, %v502_v2  ;;  %v663_v7 = vadd.f32 %v1507_v12, %v662_v3 }
 0x128   :  { %924 = vst [vmem:[%s1768_s3 + $0x1e8] sm:$0xff] %v860_v63  ;;  %v859_v5 = vsel %vm731_vm12, %v653_v55, %v795_v61  ;;  %891 = vst [vmem:[%s1768_s3 + $0xe0] sm:$0xff] %v827_v4  ;;  %vm702_vm13 = vcmp.ge.f32.partialorder %v508_v0, 0.0  ;;  %v766_v8 = vmul.f32 0.2, %v508_v0  ;;  %vm734_vm14 = vcmp.ge.f32.partialorder %v668_v1, 0.0 }
 0x129   :  { %923 = vst [vmem:[%s1768_s3 + $0x1e0] sm:$0xff] %v859_v5  ;;  %v798_v9 = vmul.f32 0.2, %v668_v1  ;;  %vm701_vm15 = vcmp.ge.f32.partialorder %v503_v6, 0.0  ;;  %v765_v10 = vmul.f32 0.2, %v503_v6 }
 0x12a   :  { %vm733_vm0 = vcmp.ge.f32.partialorder %v663_v7, 0.0  ;;  %v797_v11 = vmul.f32 0.2, %v663_v7  ;;  %v830_v13 = vsel %vm702_vm13, %v508_v0, %v766_v8 }
 0x12b   :  { %v862_v14 = vsel %vm734_vm14, %v668_v1, %v798_v9  ;;  %894 = vst [vmem:[%s1768_s3 + $0xf8] sm:$0xff] %v830_v13  ;;  %v829_v12 = vsel %vm701_vm15, %v503_v6, %v765_v10 }
 0x12c   :  { %926 = vst [vmem:[%s1768_s3 + $0x1f8] sm:$0xff] %v862_v14  ;;  %v861_v15 = vsel %vm733_vm0, %v663_v7, %v797_v11  ;;  %893 = vst [vmem:[%s1768_s3 + $0xf0] sm:$0xff] %v829_v12 }
 0x12d   :  { %925 = vst [vmem:[%s1768_s3 + $0x1f0] sm:$0xff] %v861_v15 }

// kernel: _lambda_.13
= control target key start
LH: loop header
LB: loop body
LE: loop exit
PB: predicated region body
PF: predicated region fallthrough
CT: control target
= control target key end

     0   :  { %v105_v0 = vmov 0.0   ;;  %s187_s1 = inlined_call_operand.vmem [shape: f32[1,128], index: 1, kind: output, shape index: {0}]   ;;  %s188_s2 = inlined_call_operand.vmem [shape: f32[1,128], index: 2, kind: output, shape index: {1}]   ;;  %s189_s0 = inlined_call_operand.vmem [shape: f32[128,128], index: 0, kind: input, shape index: {}]  }
   0x1   :  { %14 = vst [vmem:[%s187_s1] sm:$0x1] %v105_v0  ;;  %15 = vst [vmem:[%s188_s2] sm:$0x1] %v105_v0  ;;  %v16_v1 = vld [vmem:[%s189_s0] sm:$0xff]  ;;  %v17_v2 = vld [vmem:[%s189_s0 + $0x8] sm:$0xff] }
   0x2   :  { %v18_v3 = vld [vmem:[%s189_s0 + $0x10] sm:$0xff]  ;;  %v19_v4 = vld [vmem:[%s189_s0 + $0x18] sm:$0xff]  ;;  %v33_v5 = vadd.f32 %v17_v2, %v16_v1  ;;  %v57_v6 = vmul.f32 %v16_v1, %v16_v1  ;;  %v58_v7 = vmul.f32 %v17_v2, %v17_v2  ;;  %v20_v9 = vld [vmem:[%s189_s0 + $0x20] sm:$0xff] }
   0x3   :  { %v59_v8 = vmul.f32 %v18_v3, %v18_v3  ;;  %v60_v11 = vmul.f32 %v19_v4, %v19_v4  ;;  %v21_v13 = vld [vmem:[%s189_s0 + $0x28] sm:$0xff]  ;;  %v61_v15 = vmul.f32 %v20_v9, %v20_v9  ;;  %v22_v17 = vld [vmem:[%s189_s0 + $0x30] sm:$0xff]  ;;  %v23_v21 = vld [vmem:[%s189_s0 + $0x38] sm:$0xff] }
   0x4   :  { %v34_v10 = vadd.f32 %v33_v5, %v18_v3  ;;  %v73_v12 = vadd.f32 %v58_v7, %v57_v6  ;;  %v62_v19 = vmul.f32 %v21_v13, %v21_v13  ;;  %v63_v23 = vmul.f32 %v22_v17, %v22_v17  ;;  %v24_v25 = vld [vmem:[%s189_s0 + $0x40] sm:$0xff]  ;;  %v25_v29 = vld [vmem:[%s189_s0 + $0x48] sm:$0xff]  ;;  %v26_v33 = vld [vmem:[%s189_s0 + $0x50] sm:$0xff] }
   0x5   :  { %v64_v27 = vmul.f32 %v23_v21, %v23_v21  ;;  %v65_v31 = vmul.f32 %v24_v25, %v24_v25  ;;  %v66_v35 = vmul.f32 %v25_v29, %v25_v29  ;;  %v27_v37 = vld [vmem:[%s189_s0 + $0x58] sm:$0xff]  ;;  %v67_v39 = vmul.f32 %v26_v33, %v26_v33  ;;  %v28_v41 = vld [vmem:[%s189_s0 + $0x60] sm:$0xff]  ;;  %v29_v45 = vld [vmem:[%s189_s0 + $0x68] sm:$0xff] }
   0x6   :  { %v35_v14 = vadd.f32 %v34_v10, %v19_v4  ;;  %v74_v16 = vadd.f32 %v73_v12, %v59_v8  ;;  %v68_v43 = vmul.f32 %v27_v37, %v27_v37  ;;  %v69_v47 = vmul.f32 %v28_v41, %v28_v41  ;;  %v30_v49 = vld [vmem:[%s189_s0 + $0x70] sm:$0xff]  ;;  %v31_v53 = vld [vmem:[%s189_s0 + $0x78] sm:$0xff] }
   0x7   :  { %v70_v51 = vmul.f32 %v29_v45, %v29_v45  ;;  %v71_v55 = vmul.f32 %v30_v49, %v30_v49  ;;  %v72_v58 = vmul.f32 %v31_v53, %v31_v53 }
   0x8   :  { %v36_v18 = vadd.f32 %v35_v14, %v20_v9  ;;  %v75_v20 = vadd.f32 %v74_v16, %v60_v11  ;;  %v32_v7 = vld [vmem:[%s187_s1] sm:$0x1] }
   0x9   :  { %v56_v12 = vld [vmem:[%s188_s2] sm:$0x1] }
   0xa   :  { %v37_v22 = vadd.f32 %v36_v18, %v21_v13  ;;  %v76_v24 = vadd.f32 %v75_v20, %v61_v15 }
   0xc   :  { %v38_v26 = vadd.f32 %v37_v22, %v22_v17  ;;  %v77_v28 = vadd.f32 %v76_v24, %v62_v19 }
   0xe   :  { %v39_v30 = vadd.f32 %v38_v26, %v23_v21  ;;  %v78_v32 = vadd.f32 %v77_v28, %v63_v23 }
  0x10   :  { %v40_v34 = vadd.f32 %v39_v30, %v24_v25  ;;  %v79_v36 = vadd.f32 %v78_v32, %v64_v27 }
  0x12   :  { %v41_v38 = vadd.f32 %v40_v34, %v25_v29  ;;  %v80_v40 = vadd.f32 %v79_v36, %v65_v31 }
  0x14   :  { %v42_v42 = vadd.f32 %v41_v38, %v26_v33  ;;  %v81_v44 = vadd.f32 %v80_v40, %v66_v35 }
  0x16   :  { %v43_v46 = vadd.f32 %v42_v42, %v27_v37  ;;  %v82_v48 = vadd.f32 %v81_v44, %v67_v39 }
  0x18   :  { %v44_v50 = vadd.f32 %v43_v46, %v28_v41  ;;  %v83_v52 = vadd.f32 %v82_v48, %v68_v43 }
  0x1a   :  { %v45_v54 = vadd.f32 %v44_v50, %v29_v45  ;;  %v84_v56 = vadd.f32 %v83_v52, %v69_v47 }
  0x1c   :  { %v46_v57 = vadd.f32 %v45_v54, %v30_v49  ;;  %v85_v59 = vadd.f32 %v84_v56, %v70_v51 }
  0x1e   :  { %v47_v60 = vadd.f32 %v46_v57, %v31_v53  ;;  %v86_v61 = vadd.f32 %v85_v59, %v71_v55 }
  0x20   :  { %v48_v62 = vrot.slane %v47_v60, 4  ;;  %v87_v63 = vadd.f32 %v86_v61, %v72_v58 }
  0x22   :  { %v49_v0 = vadd.f32 %v48_v62, %v47_v60  ;;  %v88_v1 = vrot.slane %v87_v63, 4 }
  0x24   :  { %v50_v2 = vrot.slane %v49_v0, 2  ;;  %v89_v3 = vadd.f32 %v88_v1, %v87_v63 }
  0x26   :  { %v51_v4 = vadd.f32 %v50_v2, %v49_v0  ;;  %v90_v5 = vrot.slane %v89_v3, 2 }
  0x28   :  { %v52_v6 = vrot.slane %v51_v4, 1  ;;  %v91_v8 = vadd.f32 %v90_v5, %v89_v3 }
  0x2a   :  { %v53_v9 = vadd.f32 %v52_v6, %v51_v4  ;;  %v92_v10 = vrot.slane %v91_v8, 1 }
  0x2c   :  { %v54_v11 = vadd.f32 %v53_v9, %v32_v7  ;;  %v93_v13 = vadd.f32 %v92_v10, %v91_v8 }
  0x2e   :  { %55 = vst [vmem:[%s187_s1] sm:$0x1] %v54_v11  ;;  %v94_v14 = vadd.f32 %v93_v13, %v56_v12 }
  0x30   :  { %95 = vst [vmem:[%s188_s2] sm:$0x1] %v94_v14 }

// kernel: _lambda_.12
= control target key start
LH: loop header
LB: loop body
LE: loop exit
PB: predicated region body
PF: predicated region fallthrough
CT: control target
= control target key end

     0   :  { %s660_s1 = inlined_call_operand.vmem [shape: f32[256,128], index: 1, kind: input, shape index: {}]   ;;  %s661_s0 = inlined_call_operand.vmem [shape: f32[128,256], index: 0, kind: input, shape index: {}]   ;;  %s662_s2 = inlined_call_operand.vmem [shape: f32[1,128], index: 2, kind: input, shape index: {}]   ;;  %s663_s3 = inlined_call_operand.vmem [shape: f32[128,128], index: 3, kind: output, shape index: {}]  }
   0x1   :  { %v62_v0 = vld [vmem:[%s660_s1 + $0x80] sm:$0xff]  ;;  %v63_v1 = vld [vmem:[%s660_s1 + $0x88] sm:$0xff]  ;;  %v64_v5 = vld [vmem:[%s660_s1 + $0x90] sm:$0xff] }
   0x2   :  { %v46_v2 = vld [vmem:[%s660_s1] sm:$0xff]  ;;  %v331_v3 = vpack.c.bf16 %v63_v1, %v62_v0  ;;  %v47_v4 = vld [vmem:[%s660_s1 + $0x8] sm:$0xff]  ;;  %v65_v6 = vld [vmem:[%s660_s1 + $0x98] sm:$0xff] }
   0x3   :  { %v333_v7 = vpack.c.bf16 %v47_v4, %v46_v2  ;;  %v335_v8 = vpack.c.bf16 %v65_v6, %v64_v5  ;;  %v48_v9 = vld [vmem:[%s660_s1 + $0x10] sm:$0xff]  ;;  %v49_v10 = vld [vmem:[%s660_s1 + $0x18] sm:$0xff]  ;;  %v66_v11 = vld [vmem:[%s660_s1 + $0xa0] sm:$0xff] }
   0x4   :  { %332 = vmatprep.subr.bf16.mxu0 %v331_v3  ;;  %363 = vmatprep.subr.bf16.mxu1 %v331_v3  ;;  %v67_v12 = vld [vmem:[%s660_s1 + $0xa8] sm:$0xff]  ;;  %v337_v13 = vpack.c.bf16 %v49_v10, %v48_v9  ;;  %v50_v15 = vld [vmem:[%s660_s1 + $0x20] sm:$0xff]  ;;  %v68_v17 = vld [vmem:[%s660_s1 + $0xb0] sm:$0xff] }
   0x5   :  { %334 = vmatpush3.bf16.msra.mxu0 %v333_v7  ;;  %371 = vmatpush3.bf16.msra.mxu1 %v333_v7  ;;  %v339_v14 = vpack.c.bf16 %v67_v12, %v66_v11  ;;  %v51_v16 = vld [vmem:[%s660_s1 + $0x28] sm:$0xff]  ;;  %v69_v18 = vld [vmem:[%s660_s1 + $0xb8] sm:$0xff]  ;;  %v52_v21 = vld [vmem:[%s660_s1 + $0x30] sm:$0xff] }
   0x6   :  { %336 = vmatprep.subr.bf16.mxu0 %v335_v8  ;;  %364 = vmatprep.subr.bf16.mxu1 %v335_v8  ;;  %v341_v19 = vpack.c.bf16 %v51_v16, %v50_v15  ;;  %v343_v20 = vpack.c.bf16 %v69_v18, %v68_v17  ;;  %v53_v22 = vld [vmem:[%s660_s1 + $0x38] sm:$0xff]  ;;  %v70_v23 = vld [vmem:[%s660_s1 + $0xc0] sm:$0xff]  ;;  %v71_v24 = vld [vmem:[%s660_s1 + $0xc8] sm:$0xff] }
   0x7   :  { %v15_v25 = vld [vmem:[%s661_s0 + $0x8] sm:$0xff]  ;;  %v345_v27 = vpack.c.bf16 %v53_v22, %v52_v21  ;;  %v347_v28 = vpack.c.bf16 %v71_v24, %v70_v23  ;;  %v54_v29 = vld [vmem:[%s660_s1 + $0x40] sm:$0xff]  ;;  %v72_v31 = vld [vmem:[%s660_s1 + $0xd0] sm:$0xff] }
   0x8   :  { %149 = vmatprep.mubr.f32.mxu0 %v15_v25  ;;  %v31_v26 = vld [vmem:[%s661_s0 + $0x88] sm:$0xff]  ;;  %v73_v32 = vld [vmem:[%s660_s1 + $0xd8] sm:$0xff]  ;;  %v56_v35 = vld [vmem:[%s660_s1 + $0x50] sm:$0xff] }
   0x9   :  { %338 = vmatpush3.bf16.msra.mxu0 %v337_v13  ;;  %372 = vmatpush3.bf16.msra.mxu1 %v337_v13  ;;  %v55_v30 = vld [vmem:[%s660_s1 + $0x48] sm:$0xff]  ;;  %v351_v34 = vpack.c.bf16 %v73_v32, %v72_v31  ;;  %v57_v36 = vld [vmem:[%s660_s1 + $0x58] sm:$0xff]  ;;  %v74_v37 = vld [vmem:[%s660_s1 + $0xe0] sm:$0xff] }
   0xa   :  { %340 = vmatprep.subr.bf16.mxu0 %v339_v14  ;;  %365 = vmatprep.subr.bf16.mxu1 %v339_v14  ;;  %v349_v33 = vpack.c.bf16 %v55_v30, %v54_v29  ;;  %v75_v38 = vld [vmem:[%s660_s1 + $0xe8] sm:$0xff]  ;;  %v353_v39 = vpack.c.bf16 %v57_v36, %v56_v35  ;;  %v58_v41 = vld [vmem:[%s660_s1 + $0x60] sm:$0xff]  ;;  %v76_v43 = vld [vmem:[%s660_s1 + $0xf0] sm:$0xff] }
   0xb   :  { %189 = vmatprep.mubr.f32.mxu1 %v31_v26  ;;  %v355_v40 = vpack.c.bf16 %v75_v38, %v74_v37  ;;  %v59_v42 = vld [vmem:[%s660_s1 + $0x68] sm:$0xff]  ;;  %v77_v44 = vld [vmem:[%s660_s1 + $0xf8] sm:$0xff]  ;;  %v60_v47 = vld [vmem:[%s660_s1 + $0x70] sm:$0xff] }
   0xc   :  { %v357_v45 = vpack.c.bf16 %v59_v42, %v58_v41  ;;  %v359_v46 = vpack.c.bf16 %v77_v44, %v76_v43  ;;  %v61_v48 = vld [vmem:[%s660_s1 + $0x78] sm:$0xff]  ;;  %v14_v50 = vld [vmem:[%s661_s0] sm:$0xff]  ;;  %v16_v54 = vld [vmem:[%s661_s0 + $0x10] sm:$0xff] }
   0xd   :  { %342 = vmatpush3.bf16.msra.mxu0 %v341_v19  ;;  %373 = vmatpush3.bf16.msra.mxu1 %v341_v19  ;;  %v361_v49 = vpack.c.bf16 %v61_v48, %v60_v47  ;;  %v30_v51 = vld [vmem:[%s661_s0 + $0x80] sm:$0xff]  ;;  %v17_v52 = vld [vmem:[%s661_s0 + $0x18] sm:$0xff]  ;;  %v32_v55 = vld [vmem:[%s661_s0 + $0x90] sm:$0xff] }
   0xe   :  { %344 = vmatprep.subr.bf16.mxu0 %v343_v20  ;;  %366 = vmatprep.subr.bf16.mxu1 %v343_v20  ;;  %v33_v53 = vld [vmem:[%s661_s0 + $0x98] sm:$0xff]  ;;  %v19_v56 = vld [vmem:[%s661_s0 + $0x28] sm:$0xff]  ;;  %v18_v58 = vld [vmem:[%s661_s0 + $0x20] sm:$0xff] }
   0xf   :  { %v35_v57 = vld [vmem:[%s661_s0 + $0xa8] sm:$0xff]  ;;  %v34_v59 = vld [vmem:[%s661_s0 + $0xa0] sm:$0xff]  ;;  %v21_v60 = vld [vmem:[%s661_s0 + $0x38] sm:$0xff] }
  0x10   :  { %v37_v61 = vld [vmem:[%s661_s0 + $0xb8] sm:$0xff]  ;;  %v20_v62 = vld [vmem:[%s661_s0 + $0x30] sm:$0xff]  ;;  %v23_v0 = vld [vmem:[%s661_s0 + $0x48] sm:$0xff] }
  0x11   :  { %346 = vmatpush3.bf16.msra.mxu0 %v345_v27  ;;  %374 = vmatpush3.bf16.msra.mxu1 %v345_v27  ;;  %v36_v63 = vld [vmem:[%s661_s0 + $0xb0] sm:$0xff]  ;;  %v39_v1 = vld [vmem:[%s661_s0 + $0xc8] sm:$0xff]  ;;  %v22_v2 = vld [vmem:[%s661_s0 + $0x40] sm:$0xff] }
  0x12   :  { %348 = vmatprep.subr.bf16.mxu0 %v347_v28  ;;  %367 = vmatprep.subr.bf16.mxu1 %v347_v28  ;;  %v38_v3 = vld [vmem:[%s661_s0 + $0xc0] sm:$0xff]  ;;  %v25_v4 = vld [vmem:[%s661_s0 + $0x58] sm:$0xff]  ;;  %v24_v6 = vld [vmem:[%s661_s0 + $0x50] sm:$0xff] }
  0x13   :  { %v41_v5 = vld [vmem:[%s661_s0 + $0xd8] sm:$0xff]  ;;  %v40_v7 = vld [vmem:[%s661_s0 + $0xd0] sm:$0xff]  ;;  %v27_v8 = vld [vmem:[%s661_s0 + $0x68] sm:$0xff] }
  0x14   :  { %v43_v9 = vld [vmem:[%s661_s0 + $0xe8] sm:$0xff]  ;;  %v26_v10 = vld [vmem:[%s661_s0 + $0x60] sm:$0xff]  ;;  %v29_v12 = vld [vmem:[%s661_s0 + $0x78] sm:$0xff] }
  0x15   :  { %350 = vmatpush3.bf16.msra.mxu0 %v349_v33  ;;  %375 = vmatpush3.bf16.msra.mxu1 %v349_v33  ;;  %v42_v11 = vld [vmem:[%s661_s0 + $0xe0] sm:$0xff]  ;;  %v45_v13 = vld [vmem:[%s661_s0 + $0xf8] sm:$0xff]  ;;  %v28_v14 = vld [vmem:[%s661_s0 + $0x70] sm:$0xff] }
  0x16   :  { %352 = vmatprep.subr.bf16.mxu0 %v351_v34  ;;  %368 = vmatprep.subr.bf16.mxu1 %v351_v34  ;;  %v44_v15 = vld [vmem:[%s661_s0 + $0xf0] sm:$0xff]  ;;  %v594_v18 = vld [vmem:[%s662_s2] ss:$0 sm:$0xff] }
  0x19   :  { %354 = vmatpush3.bf16.msra.mxu0 %v353_v39  ;;  %376 = vmatpush3.bf16.msra.mxu1 %v353_v39 }
  0x1a   :  { %356 = vmatprep.subr.bf16.mxu0 %v355_v40  ;;  %369 = vmatprep.subr.bf16.mxu1 %v355_v40 }
  0x1d   :  { %358 = vmatpush3.bf16.msra.mxu0 %v357_v45  ;;  %377 = vmatpush3.bf16.msra.mxu1 %v357_v45 }
  0x1e   :  { %360 = vmatprep.subr.bf16.mxu0 %v359_v46  ;;  %370 = vmatprep.subr.bf16.mxu1 %v359_v46 }
  0x21   :  { %362 = vmatpush3.bf16.msra.mxu0 %v361_v49  ;;  %378 = vmatpush3.bf16.msra.mxu1 %v361_v49 }
  0x24   :  { %150 = vmatmul.mubr.f32.vlgmr.msra.gmra.mrb[0].mxu0 %v14_v50  ;;  %190 = vmatmul.mubr.f32.vlgmr.msra.gmra.mrb[0].mxu1 %v30_v51 }
  0x25   :  { %154 = vmatprep.mubr.f32.mxu0 %v17_v52  ;;  %194 = vmatprep.mubr.f32.mxu1 %v33_v53 }
  0x28   :  { %155 = vmatmul.mubr.f32.gmra.mrb[2].mxu0 %v16_v54  ;;  %195 = vmatmul.mubr.f32.gmra.mrb[2].mxu1 %v32_v55 }
  0x29   :  { %159 = vmatprep.mubr.f32.mxu0 %v19_v56  ;;  %199 = vmatprep.mubr.f32.mxu1 %v35_v57 }
  0x2c   :  { %160 = vmatmul.mubr.f32.gmra.mrb[4].mxu0 %v18_v58  ;;  %200 = vmatmul.mubr.f32.gmra.mrb[4].mxu1 %v34_v59 }
  0x2d   :  { %164 = vmatprep.mubr.f32.mxu0 %v21_v60  ;;  %204 = vmatprep.mubr.f32.mxu1 %v37_v61 }
  0x30   :  { %165 = vmatmul.mubr.f32.gmra.mrb[6].mxu0 %v20_v62  ;;  %205 = vmatmul.mubr.f32.gmra.mrb[6].mxu1 %v36_v63 }
  0x31   :  { %169 = vmatprep.mubr.f32.mxu0 %v23_v0  ;;  %209 = vmatprep.mubr.f32.mxu1 %v39_v1 }
  0x34   :  { %170 = vmatmul.mubr.f32.gmra.mrb[8].mxu0 %v22_v2  ;;  %210 = vmatmul.mubr.f32.gmra.mrb[8].mxu1 %v38_v3 }
  0x35   :  { %174 = vmatprep.mubr.f32.mxu0 %v25_v4  ;;  %214 = vmatprep.mubr.f32.mxu1 %v41_v5 }
  0x38   :  { %175 = vmatmul.mubr.f32.gmra.mrb[10].mxu0 %v24_v6  ;;  %215 = vmatmul.mubr.f32.gmra.mrb[10].mxu1 %v40_v7 }
  0x39   :  { %179 = vmatprep.mubr.f32.mxu0 %v27_v8  ;;  %219 = vmatprep.mubr.f32.mxu1 %v43_v9 }
  0x3c   :  { %180 = vmatmul.mubr.f32.gmra.mrb[12].mxu0 %v26_v10  ;;  %220 = vmatmul.mubr.f32.gmra.mrb[12].mxu1 %v42_v11 }
  0x3d   :  { %184 = vmatprep.mubr.f32.mxu0 %v29_v12  ;;  %224 = vmatprep.mubr.f32.mxu1 %v45_v13 }
  0x40   :  { %185 = vmatmul.mubr.f32.gmra.mrb[14].mxu0 %v28_v14  ;;  %225 = vmatmul.mubr.f32.gmra.mrb[14].mxu1 %v44_v15 }
  0xf7   :  { %v283_v16 = vpop.f32.mrb[0].mxu0  ;;  %v307_v17 = vpop.f32.mrb[0].mxu1 }
  0xf8   :  { %v284_v19 = vpop.f32.mrb[1].mxu0  ;;  %v308_v20 = vpop.f32.mrb[1].mxu1 }
  0xf9   :  { %v285_v21 = vadd.f32 %v284_v19, %v283_v16  ;;  %v309_v22 = vadd.f32 %v308_v20, %v307_v17 }
  0xfb   :  { %v152_v23 = vadd.f32 %v285_v21, %v594_v18  ;;  %v192_v24 = vadd.f32 %v309_v22, %v594_v18  ;;  %v286_v25 = vpop.f32.mrb[2].mxu0  ;;  %v310_v26 = vpop.f32.mrb[2].mxu1 }
  0xfc   :  { %v287_v27 = vpop.f32.mrb[3].mxu0  ;;  %v311_v28 = vpop.f32.mrb[3].mxu1 }
  0xfd   :  { %230 = vst [vmem:[%s663_s3] sm:$0xff] %v152_v23  ;;  %238 = vst [vmem:[%s663_s3 + $0x40] sm:$0xff] %v192_v24  ;;  %v288_v29 = vadd.f32 %v287_v27, %v286_v25  ;;  %v312_v30 = vadd.f32 %v311_v28, %v310_v26 }
  0xff   :  { %v157_v31 = vadd.f32 %v288_v29, %v594_v18  ;;  %v197_v32 = vadd.f32 %v312_v30, %v594_v18  ;;  %v289_v33 = vpop.f32.mrb[4].mxu0  ;;  %v313_v34 = vpop.f32.mrb[4].mxu1 }
 0x100   :  { %v290_v35 = vpop.f32.mrb[5].mxu0  ;;  %v314_v36 = vpop.f32.mrb[5].mxu1 }
 0x101   :  { %231 = vst [vmem:[%s663_s3 + $0x8] sm:$0xff] %v157_v31  ;;  %239 = vst [vmem:[%s663_s3 + $0x48] sm:$0xff] %v197_v32  ;;  %v291_v37 = vadd.f32 %v290_v35, %v289_v33  ;;  %v315_v38 = vadd.f32 %v314_v36, %v313_v34 }
 0x103   :  { %v162_v39 = vadd.f32 %v291_v37, %v594_v18  ;;  %v202_v40 = vadd.f32 %v315_v38, %v594_v18  ;;  %v292_v41 = vpop.f32.mrb[6].mxu0  ;;  %v316_v42 = vpop.f32.mrb[6].mxu1 }
 0x104   :  { %v293_v43 = vpop.f32.mrb[7].mxu0  ;;  %v317_v44 = vpop.f32.mrb[7].mxu1 }
 0x105   :  { %232 = vst [vmem:[%s663_s3 + $0x10] sm:$0xff] %v162_v39  ;;  %240 = vst [vmem:[%s663_s3 + $0x50] sm:$0xff] %v202_v40  ;;  %v294_v45 = vadd.f32 %v293_v43, %v292_v41  ;;  %v318_v46 = vadd.f32 %v317_v44, %v316_v42 }
 0x107   :  { %v167_v47 = vadd.f32 %v294_v45, %v594_v18  ;;  %v207_v48 = vadd.f32 %v318_v46, %v594_v18  ;;  %v295_v49 = vpop.f32.mrb[8].mxu0  ;;  %v319_v50 = vpop.f32.mrb[8].mxu1 }
 0x108   :  { %v296_v51 = vpop.f32.mrb[9].mxu0  ;;  %v320_v52 = vpop.f32.mrb[9].mxu1 }
 0x109   :  { %233 = vst [vmem:[%s663_s3 + $0x18] sm:$0xff] %v167_v47  ;;  %241 = vst [vmem:[%s663_s3 + $0x58] sm:$0xff] %v207_v48  ;;  %v297_v53 = vadd.f32 %v296_v51, %v295_v49  ;;  %v321_v54 = vadd.f32 %v320_v52, %v319_v50 }
 0x10b   :  { %v172_v55 = vadd.f32 %v297_v53, %v594_v18  ;;  %v212_v56 = vadd.f32 %v321_v54, %v594_v18  ;;  %v298_v57 = vpop.f32.mrb[10].mxu0  ;;  %v322_v58 = vpop.f32.mrb[10].mxu1 }
 0x10c   :  { %v299_v59 = vpop.f32.mrb[11].mxu0  ;;  %v323_v60 = vpop.f32.mrb[11].mxu1 }
 0x10d   :  { %234 = vst [vmem:[%s663_s3 + $0x20] sm:$0xff] %v172_v55  ;;  %242 = vst [vmem:[%s663_s3 + $0x60] sm:$0xff] %v212_v56  ;;  %v300_v61 = vadd.f32 %v299_v59, %v298_v57  ;;  %v324_v62 = vadd.f32 %v323_v60, %v322_v58 }
 0x10f   :  { %v177_v63 = vadd.f32 %v300_v61, %v594_v18  ;;  %v217_v0 = vadd.f32 %v324_v62, %v594_v18  ;;  %v301_v1 = vpop.f32.mrb[12].mxu0  ;;  %v325_v2 = vpop.f32.mrb[12].mxu1 }
 0x110   :  { %v302_v3 = vpop.f32.mrb[13].mxu0  ;;  %v326_v4 = vpop.f32.mrb[13].mxu1 }
 0x111   :  { %235 = vst [vmem:[%s663_s3 + $0x28] sm:$0xff] %v177_v63  ;;  %243 = vst [vmem:[%s663_s3 + $0x68] sm:$0xff] %v217_v0  ;;  %v303_v5 = vadd.f32 %v302_v3, %v301_v1  ;;  %v327_v6 = vadd.f32 %v326_v4, %v325_v2 }
 0x113   :  { %v182_v7 = vadd.f32 %v303_v5, %v594_v18  ;;  %v222_v8 = vadd.f32 %v327_v6, %v594_v18  ;;  %v304_v9 = vpop.f32.mrb[14].mxu0  ;;  %v328_v10 = vpop.f32.mrb[14].mxu1 }
 0x114   :  { %v305_v11 = vpop.f32.mrb[15].mxu0  ;;  %v329_v12 = vpop.f32.mrb[15].mxu1 }
 0x115   :  { %236 = vst [vmem:[%s663_s3 + $0x30] sm:$0xff] %v182_v7  ;;  %244 = vst [vmem:[%s663_s3 + $0x70] sm:$0xff] %v222_v8  ;;  %v306_v13 = vadd.f32 %v305_v11, %v304_v9  ;;  %v330_v14 = vadd.f32 %v329_v12, %v328_v10 }
 0x117   :  { %v187_v15 = vadd.f32 %v306_v13, %v594_v18  ;;  %v227_v16 = vadd.f32 %v330_v14, %v594_v18 }
 0x119   :  { %237 = vst [vmem:[%s663_s3 + $0x38] sm:$0xff] %v187_v15  ;;  %245 = vst [vmem:[%s663_s3 + $0x78] sm:$0xff] %v227_v16 }

// kernel: _lambda_.14
= control target key start
LH: loop header
LB: loop body
LE: loop exit
PB: predicated region body
PF: predicated region fallthrough
CT: control target
= control target key end

     0   :  { %v50_v7 = vlaneseq  ;;  %s340_s1 = inlined_call_operand.vmem [shape: f32[1,128], index: 1, kind: input, shape index: {}]   ;;  %s341_s2 = inlined_call_operand.vmem [shape: f32[1,128], index: 2, kind: input, shape index: {}]   ;;  %s342_s3 = inlined_call_operand.vmem [shape: f32[1,128], index: 3, kind: input, shape index: {}]   ;;  %s343_s0 = inlined_call_operand.vmem [shape: f32[128,128], index: 0, kind: input, shape index: {}]   ;;  %s344_s4 = inlined_call_operand.vmem [shape: f32[1,128], index: 4, kind: input, shape index: {}]   ;;  %s345_s5 = inlined_call_operand.vmem [shape: f32[128,128], index: 5, kind: output, shape index: {}]  }
   0x1   :  { %v20_v0 = vld [vmem:[%s340_s1] sm:$0x1]  ;;  %v34_v15 = vld [vmem:[%s343_s0 + $0x8] sm:$0xff]  ;;  %v35_v16 = vld [vmem:[%s343_s0 + $0x10] sm:$0xff] }
   0x2   :  { %v22_v1 = vld [vmem:[%s341_s2] sm:$0x1]  ;;  %v21_v2 = vmul.f32 0.0078125, %v20_v0  ;;  %v51_v8 = vshrl.u32 %v50_v7, 7  ;;  %v36_v17 = vld [vmem:[%s343_s0 + $0x18] sm:$0xff]  ;;  %v38_v21 = vld [vmem:[%s343_s0 + $0x28] sm:$0xff] }
   0x3   :  { %v23_v3 = vmul.f32 0.0078125, %v22_v1  ;;  %v26_v9 = vld [vmem:[%s342_s3] sm:$0x1]  ;;  %v39_v22 = vld [vmem:[%s343_s0 + $0x30] sm:$0xff]  ;;  %v40_v23 = vld [vmem:[%s343_s0 + $0x38] sm:$0xff] }
   0x4   :  { %v24_v4 = vmul.f32 %v21_v2, %v21_v2  ;;  %v52_v10 = vsub.s32 0, %v51_v8  ;;  %v30_v13 = vld [vmem:[%s344_s4] sm:$0x1]  ;;  %v42_v25 = vld [vmem:[%s343_s0 + $0x48] sm:$0xff]  ;;  %v43_v26 = vld [vmem:[%s343_s0 + $0x50] sm:$0xff] }
   0x5   :  { %v33_v14 = vld [vmem:[%s343_s0] sm:$0xff]  ;;  %v44_v31 = vld [vmem:[%s343_s0 + $0x58] sm:$0xff]  ;;  %v46_v33 = vld [vmem:[%s343_s0 + $0x68] sm:$0xff] }
   0x6   :  { %v25_v5 = vsub.f32 %v23_v3, %v24_v4  ;;  %v37_v18 = vld [vmem:[%s343_s0 + $0x20] sm:$0xff] }
   0x7   :  { %v41_v24 = vld [vmem:[%s343_s0 + $0x40] sm:$0xff] }
   0x8   :  { %v27_v6 = vadd.f32 1e-05, %v25_v5  ;;  %v45_v32 = vld [vmem:[%s343_s0 + $0x60] sm:$0xff] }
   0xa   :  { %161 = vrsqrt.f32 %v27_v6 }
  0x14   :  { %v162_v11 = vpop.eup %161 }
  0x15   :  { %v29_v12 = vmul.f32 %v162_v11, %v26_v9 }
  0x17   :  { %v31_v19 = vmul.f32 %v29_v12, %v21_v2  ;;  %v220_v20 = vrot.slane %v29_v12, %v52_v10  ;;  %v47_v12 = vld [vmem:[%s343_s0 + $0x70] sm:$0xff] }
  0x19   :  { %v32_v27 = vsub.f32 %v30_v13, %v31_v19  ;;  %v55_v28 = vmul.f32 %v220_v20, %v33_v14  ;;  %v56_v29 = vmul.f32 %v220_v20, %v34_v15  ;;  %v57_v30 = vmul.f32 %v220_v20, %v35_v16  ;;  %v48_v13 = vld [vmem:[%s343_s0 + $0x78] sm:$0xff] }
  0x1a   :  { %v58_v34 = vmul.f32 %v220_v20, %v36_v17  ;;  %v59_v35 = vmul.f32 %v220_v20, %v37_v18  ;;  %v60_v36 = vmul.f32 %v220_v20, %v38_v21  ;;  %v61_v37 = vmul.f32 %v220_v20, %v39_v22 }
  0x1b   :  { %v256_v38 = vrot.slane %v32_v27, %v52_v10  ;;  %v62_v39 = vmul.f32 %v220_v20, %v40_v23  ;;  %v63_v40 = vmul.f32 %v220_v20, %v41_v24  ;;  %v64_v41 = vmul.f32 %v220_v20, %v42_v25 }
  0x1c   :  { %v65_v42 = vmul.f32 %v220_v20, %v43_v26  ;;  %v66_v43 = vmul.f32 %v220_v20, %v44_v31  ;;  %v67_v44 = vmul.f32 %v220_v20, %v45_v32  ;;  %v265_v45 = vmul.f32 %v220_v20, %v46_v33 }
  0x1d   :  { %v77_v46 = vadd.f32 %v256_v38, %v55_v28  ;;  %v78_v47 = vadd.f32 %v256_v38, %v56_v29  ;;  %v79_v48 = vadd.f32 %v256_v38, %v57_v30  ;;  %v80_v49 = vadd.f32 %v256_v38, %v58_v34 }
  0x1e   :  { %v81_v50 = vadd.f32 %v256_v38, %v59_v35  ;;  %v82_v51 = vadd.f32 %v256_v38, %v60_v36  ;;  %v83_v52 = vadd.f32 %v256_v38, %v61_v37  ;;  %v84_v53 = vadd.f32 %v256_v38, %v62_v39 }
  0x1f   :  { %vm93_vm0 = vcmp.ge.f32.partialorder %v77_v46, 0.0  ;;  %v109_v54 = vmul.f32 0.2, %v77_v46  ;;  %vm94_vm1 = vcmp.ge.f32.partialorder %v78_v47, 0.0  ;;  %v110_v55 = vmul.f32 0.2, %v78_v47 }
  0x20   :  { %vm95_vm2 = vcmp.ge.f32.partialorder %v79_v48, 0.0  ;;  %v111_v56 = vmul.f32 0.2, %v79_v48  ;;  %vm96_vm3 = vcmp.ge.f32.partialorder %v80_v49, 0.0  ;;  %v112_v57 = vmul.f32 0.2, %v80_v49 }
  0x21   :  { %v125_v58 = vsel %vm93_vm0, %v77_v46, %v109_v54  ;;  %v126_v59 = vsel %vm94_vm1, %v78_v47, %v110_v55  ;;  %vm97_vm4 = vcmp.ge.f32.partialorder %v81_v50, 0.0  ;;  %v113_v60 = vmul.f32 0.2, %v81_v50 }
  0x22   :  { %141 = vst [vmem:[%s345_s5] sm:$0xff] %v125_v58  ;;  %142 = vst [vmem:[%s345_s5 + $0x8] sm:$0xff] %v126_v59  ;;  %v127_v61 = vsel %vm95_vm2, %v79_v48, %v111_v56  ;;  %v128_v62 = vsel %vm96_vm3, %v80_v49, %v112_v57  ;;  %vm98_vm5 = vcmp.ge.f32.partialorder %v82_v51, 0.0  ;;  %v114_v63 = vmul.f32 0.2, %v82_v51 }
  0x23   :  { %143 = vst [vmem:[%s345_s5 + $0x10] sm:$0xff] %v127_v61  ;;  %144 = vst [vmem:[%s345_s5 + $0x18] sm:$0xff] %v128_v62  ;;  %v129_v0 = vsel %vm97_vm4, %v81_v50, %v113_v60  ;;  %vm99_vm6 = vcmp.ge.f32.partialorder %v83_v52, 0.0  ;;  %v115_v1 = vmul.f32 0.2, %v83_v52  ;;  %vm100_vm7 = vcmp.ge.f32.partialorder %v84_v53, 0.0 }
  0x24   :  { %145 = vst [vmem:[%s345_s5 + $0x20] sm:$0xff] %v129_v0  ;;  %v130_v2 = vsel %vm98_vm5, %v82_v51, %v114_v63  ;;  %v116_v3 = vmul.f32 0.2, %v84_v53  ;;  %v85_v4 = vadd.f32 %v256_v38, %v63_v40  ;;  %v86_v5 = vadd.f32 %v256_v38, %v64_v41 }
  0x25   :  { %146 = vst [vmem:[%s345_s5 + $0x28] sm:$0xff] %v130_v2  ;;  %v131_v6 = vsel %vm99_vm6, %v83_v52, %v115_v1  ;;  %v87_v7 = vadd.f32 %v256_v38, %v65_v42  ;;  %v88_v8 = vadd.f32 %v256_v38, %v66_v43  ;;  %v89_v9 = vadd.f32 %v256_v38, %v67_v44 }
  0x26   :  { %147 = vst [vmem:[%s345_s5 + $0x30] sm:$0xff] %v131_v6  ;;  %v132_v10 = vsel %vm100_vm7, %v84_v53, %v116_v3  ;;  %vm101_vm8 = vcmp.ge.f32.partialorder %v85_v4, 0.0  ;;  %v117_v11 = vmul.f32 0.2, %v85_v4  ;;  %vm102_vm9 = vcmp.ge.f32.partialorder %v86_v5, 0.0 }
  0x27   :  { %148 = vst [vmem:[%s345_s5 + $0x38] sm:$0xff] %v132_v10  ;;  %v118_v14 = vmul.f32 0.2, %v86_v5  ;;  %vm103_vm10 = vcmp.ge.f32.partialorder %v87_v7, 0.0  ;;  %v119_v15 = vmul.f32 0.2, %v87_v7  ;;  %v90_v22 = vadd.f32 %v256_v38, %v265_v45 }
  0x28   :  { %vm104_vm11 = vcmp.ge.f32.partialorder %v88_v8, 0.0  ;;  %v133_v16 = vsel %vm101_vm8, %v85_v4, %v117_v11  ;;  %v120_v17 = vmul.f32 0.2, %v88_v8  ;;  %vm105_vm12 = vcmp.ge.f32.partialorder %v89_v9, 0.0 }
  0x29   :  { %v121_v18 = vmul.f32 0.2, %v89_v9  ;;  %149 = vst [vmem:[%s345_s5 + $0x40] sm:$0xff] %v133_v16  ;;  %v134_v19 = vsel %vm102_vm9, %v86_v5, %v118_v14  ;;  %v135_v21 = vsel %vm103_vm10, %v87_v7, %v119_v15  ;;  %v69_v23 = vmul.f32 %v220_v20, %v47_v12 }
  0x2a   :  { %150 = vst [vmem:[%s345_s5 + $0x48] sm:$0xff] %v134_v19  ;;  %151 = vst [vmem:[%s345_s5 + $0x50] sm:$0xff] %v135_v21  ;;  %v136_v24 = vsel %vm104_vm11, %v88_v8, %v120_v17  ;;  %v70_v26 = vmul.f32 %v220_v20, %v48_v13  ;;  %vm106_vm13 = vcmp.ge.f32.partialorder %v90_v22, 0.0  ;;  %v122_v27 = vmul.f32 0.2, %v90_v22 }
  0x2b   :  { %v137_v25 = vsel %vm105_vm12, %v89_v9, %v121_v18  ;;  %152 = vst [vmem:[%s345_s5 + $0x58] sm:$0xff] %v136_v24  ;;  %v91_v28 = vadd.f32 %v256_v38, %v69_v23 }
  0x2c   :  { %153 = vst [vmem:[%s345_s5 + $0x60] sm:$0xff] %v137_v25  ;;  %v92_v29 = vadd.f32 %v256_v38, %v70_v26  ;;  %v138_v30 = vsel %vm106_vm13, %v90_v22, %v122_v27 }
  0x2d   :  { %vm107_vm14 = vcmp.ge.f32.partialorder %v91_v28, 0.0  ;;  %v123_v31 = vmul.f32 0.2, %v91_v28  ;;  %154 = vst [vmem:[%s345_s5 + $0x68] sm:$0xff] %v138_v30 }
  0x2e   :  { %vm108_vm15 = vcmp.ge.f32.partialorder %v92_v29, 0.0  ;;  %v124_v20 = vmul.f32 0.2, %v92_v29 }
  0x2f   :  { %v139_v32 = vsel %vm107_vm14, %v91_v28, %v123_v31 }
  0x30   :  { %155 = vst [vmem:[%s345_s5 + $0x70] sm:$0xff] %v139_v32  ;;  %v140_v33 = vsel %vm108_vm15, %v92_v29, %v124_v20 }
  0x31   :  { %156 = vst [vmem:[%s345_s5 + $0x78] sm:$0xff] %v140_v33 }

// kernel: _lambda_.17
= control target key start
LH: loop header
LB: loop body
LE: loop exit
PB: predicated region body
PF: predicated region fallthrough
CT: control target
= control target key end

     0   :  { %v38_v7 = vlaneseq  ;;  %s145_s1 = inlined_call_operand.vmem [shape: f32[1,128], index: 1, kind: input, shape index: {}]   ;;  %s146_s2 = inlined_call_operand.vmem [shape: f32[1,128], index: 2, kind: input, shape index: {}]   ;;  %s147_s3 = inlined_call_operand.vmem [shape: f32[1,128], index: 3, kind: input, shape index: {}]   ;;  %s148_s4 = inlined_call_operand.vmem [shape: f32[1,128], index: 4, kind: input, shape index: {}]   ;;  %s149_s0 = inlined_call_operand.vmem [shape: f32[32,128], index: 0, kind: input, shape index: {}]   ;;  %s150_s5 = inlined_call_operand.vmem [shape: f32[32,128], index: 5, kind: output, shape index: {}]  }
   0x1   :  { %v20_v0 = vld [vmem:[%s145_s1] sm:$0x1]  ;;  %v34_v15 = vld [vmem:[%s149_s0 + $0x8] sm:$0xff]  ;;  %v35_v16 = vld [vmem:[%s149_s0 + $0x10] sm:$0xff] }
   0x2   :  { %v22_v1 = vld [vmem:[%s146_s2] sm:$0x1]  ;;  %v21_v2 = vmul.f32 0.03125, %v20_v0  ;;  %v39_v8 = vshrl.u32 %v38_v7, 7  ;;  %v36_v19 = vld [vmem:[%s149_s0 + $0x18] sm:$0xff] }
   0x3   :  { %v23_v3 = vmul.f32 0.03125, %v22_v1  ;;  %v26_v9 = vld [vmem:[%s147_s3] sm:$0x1] }
   0x4   :  { %v24_v4 = vmul.f32 %v21_v2, %v21_v2  ;;  %v40_v10 = vsub.s32 0, %v39_v8  ;;  %v30_v13 = vld [vmem:[%s148_s4] sm:$0x1] }
   0x5   :  { %v33_v14 = vld [vmem:[%s149_s0] sm:$0xff] }
   0x6   :  { %v25_v5 = vsub.f32 %v23_v3, %v24_v4 }
   0x8   :  { %v27_v6 = vadd.f32 1e-05, %v25_v5 }
   0xa   :  { %77 = vrsqrt.f32 %v27_v6 }
  0x14   :  { %v78_v11 = vpop.eup %77 }
  0x15   :  { %v29_v12 = vmul.f32 %v78_v11, %v26_v9 }
  0x17   :  { %v31_v17 = vmul.f32 %v29_v12, %v21_v2  ;;  %v41_v18 = vrot.slane %v29_v12, %v40_v10 }
  0x19   :  { %v32_v20 = vsub.f32 %v30_v13, %v31_v17  ;;  %v43_v21 = vmul.f32 %v41_v18, %v33_v14  ;;  %v44_v22 = vmul.f32 %v41_v18, %v34_v15  ;;  %v45_v23 = vmul.f32 %v41_v18, %v35_v16 }
  0x1a   :  { %v46_v24 = vmul.f32 %v41_v18, %v36_v19 }
  0x1b   :  { %v51_v25 = vrot.slane %v32_v20, %v40_v10 }
  0x1d   :  { %v53_v26 = vadd.f32 %v51_v25, %v43_v21  ;;  %v54_v27 = vadd.f32 %v51_v25, %v44_v22  ;;  %v55_v28 = vadd.f32 %v51_v25, %v45_v23  ;;  %v56_v29 = vadd.f32 %v51_v25, %v46_v24 }
  0x1f   :  { %vm57_vm0 = vcmp.ge.f32.partialorder %v53_v26, 0.0  ;;  %v61_v30 = vmul.f32 0.2, %v53_v26  ;;  %vm58_vm1 = vcmp.ge.f32.partialorder %v54_v27, 0.0  ;;  %v62_v31 = vmul.f32 0.2, %v54_v27 }
  0x20   :  { %vm59_vm2 = vcmp.ge.f32.partialorder %v55_v28, 0.0  ;;  %v63_v32 = vmul.f32 0.2, %v55_v28  ;;  %vm60_vm3 = vcmp.ge.f32.partialorder %v56_v29, 0.0  ;;  %v64_v33 = vmul.f32 0.2, %v56_v29 }
  0x21   :  { %v65_v34 = vsel %vm57_vm0, %v53_v26, %v61_v30  ;;  %v66_v35 = vsel %vm58_vm1, %v54_v27, %v62_v31 }
  0x22   :  { %69 = vst [vmem:[%s150_s5] sm:$0xff] %v65_v34  ;;  %70 = vst [vmem:[%s150_s5 + $0x8] sm:$0xff] %v66_v35  ;;  %v67_v36 = vsel %vm59_vm2, %v55_v28, %v63_v32  ;;  %v68_v37 = vsel %vm60_vm3, %v56_v29, %v64_v33 }
  0x23   :  { %71 = vst [vmem:[%s150_s5 + $0x10] sm:$0xff] %v67_v36  ;;  %72 = vst [vmem:[%s150_s5 + $0x18] sm:$0xff] %v68_v37 }

// kernel: _lambda_.16
= control target key start
LH: loop header
LB: loop body
LE: loop exit
PB: predicated region body
PF: predicated region fallthrough
CT: control target
= control target key end

     0   :  { %v57_v0 = vmov 0.0   ;;  %s103_s1 = inlined_call_operand.vmem [shape: f32[1,128], index: 1, kind: output, shape index: {0}]   ;;  %s104_s2 = inlined_call_operand.vmem [shape: f32[1,128], index: 2, kind: output, shape index: {1}]   ;;  %s105_s0 = inlined_call_operand.vmem [shape: f32[32,128], index: 0, kind: input, shape index: {}]  }
   0x1   :  { %14 = vst [vmem:[%s103_s1] sm:$0x1] %v57_v0  ;;  %15 = vst [vmem:[%s104_s2] sm:$0x1] %v57_v0  ;;  %v16_v1 = vld [vmem:[%s105_s0] sm:$0xff]  ;;  %v17_v2 = vld [vmem:[%s105_s0 + $0x8] sm:$0xff] }
   0x2   :  { %v18_v3 = vld [vmem:[%s105_s0 + $0x10] sm:$0xff]  ;;  %v19_v4 = vld [vmem:[%s105_s0 + $0x18] sm:$0xff]  ;;  %v21_v5 = vadd.f32 %v17_v2, %v16_v1  ;;  %v33_v6 = vmul.f32 %v16_v1, %v16_v1  ;;  %v34_v7 = vmul.f32 %v17_v2, %v17_v2 }
   0x3   :  { %v35_v8 = vmul.f32 %v18_v3, %v18_v3  ;;  %v36_v10 = vmul.f32 %v19_v4, %v19_v4 }
   0x4   :  { %v22_v9 = vadd.f32 %v21_v5, %v18_v3  ;;  %v37_v11 = vadd.f32 %v34_v7, %v33_v6 }
   0x6   :  { %v23_v12 = vadd.f32 %v22_v9, %v19_v4  ;;  %v38_v13 = vadd.f32 %v37_v11, %v35_v8 }
   0x8   :  { %v24_v14 = vrot.slane %v23_v12, 4  ;;  %v39_v15 = vadd.f32 %v38_v13, %v36_v10  ;;  %v20_v24 = vld [vmem:[%s103_s1] sm:$0x1] }
   0x9   :  { %v32_v27 = vld [vmem:[%s104_s2] sm:$0x1] }
   0xa   :  { %v25_v16 = vadd.f32 %v24_v14, %v23_v12  ;;  %v40_v17 = vrot.slane %v39_v15, 4 }
   0xc   :  { %v26_v18 = vrot.slane %v25_v16, 2  ;;  %v41_v19 = vadd.f32 %v40_v17, %v39_v15 }
   0xe   :  { %v27_v20 = vadd.f32 %v26_v18, %v25_v16  ;;  %v42_v21 = vrot.slane %v41_v19, 2 }
  0x10   :  { %v28_v22 = vrot.slane %v27_v20, 1  ;;  %v43_v23 = vadd.f32 %v42_v21, %v41_v19 }
  0x12   :  { %v29_v25 = vadd.f32 %v28_v22, %v27_v20  ;;  %v44_v26 = vrot.slane %v43_v23, 1 }
  0x14   :  { %v30_v28 = vadd.f32 %v29_v25, %v20_v24  ;;  %v45_v29 = vadd.f32 %v44_v26, %v43_v23 }
  0x16   :  { %31 = vst [vmem:[%s103_s1] sm:$0x1] %v30_v28  ;;  %v46_v30 = vadd.f32 %v45_v29, %v32_v27 }
  0x18   :  { %47 = vst [vmem:[%s104_s2] sm:$0x1] %v46_v30 }

// kernel: _lambda_.15
= control target key start
LH: loop header
LB: loop body
LE: loop exit
PB: predicated region body
PF: predicated region fallthrough
CT: control target
= control target key end

     0   :  { %s707_s1 = inlined_call_operand.vmem [shape: f32[512,128], index: 1, kind: input, shape index: {}]   ;;  %s708_s0 = inlined_call_operand.vmem [shape: f32[32,512], index: 0, kind: input, shape index: {}]   ;;  %s709_s2 = inlined_call_operand.vmem [shape: f32[1,128], index: 2, kind: input, shape index: {}]   ;;  %s710_s3 = inlined_call_operand.vmem [shape: f32[32,128], index: 3, kind: output, shape index: {}]  }
   0x1   :  { %v46_v0 = vld [vmem:[%s707_s1 + $0x80] sm:$0xff]  ;;  %v47_v1 = vld [vmem:[%s707_s1 + $0x88] sm:$0xff]  ;;  %v48_v11 = vld [vmem:[%s707_s1 + $0x90] sm:$0xff] }
   0x2   :  { %v30_v2 = vld [vmem:[%s707_s1] sm:$0xff]  ;;  %v368_v3 = vpack.c.bf16 %v47_v1, %v46_v0  ;;  %v31_v4 = vld [vmem:[%s707_s1 + $0x8] sm:$0xff]  ;;  %v49_v13 = vld [vmem:[%s707_s1 + $0x98] sm:$0xff] }
   0x3   :  { %v78_v5 = vld [vmem:[%s707_s1 + $0x180] sm:$0xff]  ;;  %v79_v6 = vld [vmem:[%s707_s1 + $0x188] sm:$0xff]  ;;  %v370_v7 = vpack.c.bf16 %v31_v4, %v30_v2  ;;  %v32_v14 = vld [vmem:[%s707_s1 + $0x10] sm:$0xff]  ;;  %v372_v16 = vpack.c.bf16 %v49_v13, %v48_v11 }
   0x4   :  { %v400_v8 = vpack.c.bf16 %v79_v6, %v78_v5  ;;  %v62_v9 = vld [vmem:[%s707_s1 + $0x100] sm:$0xff]  ;;  %v63_v10 = vld [vmem:[%s707_s1 + $0x108] sm:$0xff]  ;;  %369 = vmatprep.subr.bf16.mxu0 %v368_v3  ;;  %v33_v15 = vld [vmem:[%s707_s1 + $0x18] sm:$0xff] }
   0x5   :  { %v402_v12 = vpack.c.bf16 %v63_v10, %v62_v9  ;;  %371 = vmatpush3.bf16.msra.mxu0 %v370_v7  ;;  %v374_v17 = vpack.c.bf16 %v33_v15, %v32_v14  ;;  %v80_v18 = vld [vmem:[%s707_s1 + $0x190] sm:$0xff]  ;;  %v81_v19 = vld [vmem:[%s707_s1 + $0x198] sm:$0xff]  ;;  %v50_v23 = vld [vmem:[%s707_s1 + $0xa0] sm:$0xff] }
   0x6   :  { %401 = vmatprep.subr.bf16.mxu1 %v400_v8  ;;  %v64_v20 = vld [vmem:[%s707_s1 + $0x110] sm:$0xff]  ;;  %v404_v21 = vpack.c.bf16 %v81_v19, %v80_v18  ;;  %v65_v22 = vld [vmem:[%s707_s1 + $0x118] sm:$0xff]  ;;  %v51_v24 = vld [vmem:[%s707_s1 + $0xa8] sm:$0xff]  ;;  %373 = vmatprep.subr.bf16.mxu0 %v372_v16 }
   0x7   :  { %403 = vmatpush3.bf16.msra.mxu1 %v402_v12  ;;  %v406_v25 = vpack.c.bf16 %v65_v22, %v64_v20  ;;  %v376_v26 = vpack.c.bf16 %v51_v24, %v50_v23  ;;  %v34_v27 = vld [vmem:[%s707_s1 + $0x20] sm:$0xff]  ;;  %v35_v28 = vld [vmem:[%s707_s1 + $0x28] sm:$0xff]  ;;  %v52_v35 = vld [vmem:[%s707_s1 + $0xb0] sm:$0xff] }
   0x8   :  { %v82_v29 = vld [vmem:[%s707_s1 + $0x1a0] sm:$0xff]  ;;  %405 = vmatprep.subr.bf16.mxu1 %v404_v21  ;;  %v83_v30 = vld [vmem:[%s707_s1 + $0x1a8] sm:$0xff]  ;;  %v378_v33 = vpack.c.bf16 %v35_v28, %v34_v27  ;;  %v53_v36 = vld [vmem:[%s707_s1 + $0xb8] sm:$0xff] }
   0x9   :  { %v66_v31 = vld [vmem:[%s707_s1 + $0x120] sm:$0xff]  ;;  %v67_v32 = vld [vmem:[%s707_s1 + $0x128] sm:$0xff]  ;;  %375 = vmatpush3.bf16.msra.mxu0 %v374_v17  ;;  %v408_v34 = vpack.c.bf16 %v83_v30, %v82_v29  ;;  %v36_v37 = vld [vmem:[%s707_s1 + $0x30] sm:$0xff]  ;;  %v380_v39 = vpack.c.bf16 %v53_v36, %v52_v35 }
   0xa   :  { %377 = vmatprep.subr.bf16.mxu0 %v376_v26  ;;  %v410_v38 = vpack.c.bf16 %v67_v32, %v66_v31  ;;  %v37_v40 = vld [vmem:[%s707_s1 + $0x38] sm:$0xff]  ;;  %v84_v41 = vld [vmem:[%s707_s1 + $0x1b0] sm:$0xff]  ;;  %v54_v46 = vld [vmem:[%s707_s1 + $0xc0] sm:$0xff] }
   0xb   :  { %407 = vmatpush3.bf16.msra.mxu1 %v406_v25  ;;  %v85_v42 = vld [vmem:[%s707_s1 + $0x1b8] sm:$0xff]  ;;  %v68_v44 = vld [vmem:[%s707_s1 + $0x130] sm:$0xff]  ;;  %v55_v47 = vld [vmem:[%s707_s1 + $0xc8] sm:$0xff]  ;;  %v382_v48 = vpack.c.bf16 %v37_v40, %v36_v37 }
   0xc   :  { %409 = vmatprep.subr.bf16.mxu1 %v408_v34  ;;  %v412_v43 = vpack.c.bf16 %v85_v42, %v84_v41  ;;  %v69_v45 = vld [vmem:[%s707_s1 + $0x138] sm:$0xff]  ;;  %v86_v49 = vld [vmem:[%s707_s1 + $0x1c0] sm:$0xff]  ;;  %v87_v50 = vld [vmem:[%s707_s1 + $0x1c8] sm:$0xff]  ;;  %v384_v52 = vpack.c.bf16 %v55_v47, %v54_v46 }
   0xd   :  { %379 = vmatpush3.bf16.msra.mxu0 %v378_v33  ;;  %v414_v51 = vpack.c.bf16 %v69_v45, %v68_v44  ;;  %v38_v53 = vld [vmem:[%s707_s1 + $0x40] sm:$0xff]  ;;  %v39_v54 = vld [vmem:[%s707_s1 + $0x48] sm:$0xff]  ;;  %v416_v56 = vpack.c.bf16 %v87_v50, %v86_v49  ;;  %v56_v58 = vld [vmem:[%s707_s1 + $0xd0] sm:$0xff] }
   0xe   :  { %381 = vmatprep.subr.bf16.mxu0 %v380_v39  ;;  %v70_v55 = vld [vmem:[%s707_s1 + $0x140] sm:$0xff]  ;;  %v71_v57 = vld [vmem:[%s707_s1 + $0x148] sm:$0xff]  ;;  %v57_v59 = vld [vmem:[%s707_s1 + $0xd8] sm:$0xff]  ;;  %v386_v62 = vpack.c.bf16 %v39_v54, %v38_v53 }
   0xf   :  { %411 = vmatpush3.bf16.msra.mxu1 %v410_v38  ;;  %v88_v60 = vld [vmem:[%s707_s1 + $0x1d0] sm:$0xff]  ;;  %v89_v61 = vld [vmem:[%s707_s1 + $0x1d8] sm:$0xff]  ;;  %v418_v63 = vpack.c.bf16 %v71_v57, %v70_v55  ;;  %v388_v0 = vpack.c.bf16 %v57_v59, %v56_v58  ;;  %v58_v6 = vld [vmem:[%s707_s1 + $0xe0] sm:$0xff] }
  0x10   :  { %413 = vmatprep.subr.bf16.mxu1 %v412_v43  ;;  %v40_v1 = vld [vmem:[%s707_s1 + $0x50] sm:$0xff]  ;;  %v41_v2 = vld [vmem:[%s707_s1 + $0x58] sm:$0xff]  ;;  %v420_v4 = vpack.c.bf16 %v89_v61, %v88_v60  ;;  %v59_v7 = vld [vmem:[%s707_s1 + $0xe8] sm:$0xff] }
  0x11   :  { %383 = vmatpush3.bf16.msra.mxu0 %v382_v48  ;;  %v72_v3 = vld [vmem:[%s707_s1 + $0x150] sm:$0xff]  ;;  %v73_v5 = vld [vmem:[%s707_s1 + $0x158] sm:$0xff]  ;;  %v90_v8 = vld [vmem:[%s707_s1 + $0x1e0] sm:$0xff]  ;;  %v390_v10 = vpack.c.bf16 %v41_v2, %v40_v1  ;;  %v392_v14 = vpack.c.bf16 %v59_v7, %v58_v6 }
  0x12   :  { %385 = vmatprep.subr.bf16.mxu0 %v384_v52  ;;  %v91_v9 = vld [vmem:[%s707_s1 + $0x1e8] sm:$0xff]  ;;  %v42_v11 = vld [vmem:[%s707_s1 + $0x60] sm:$0xff]  ;;  %v422_v13 = vpack.c.bf16 %v73_v5, %v72_v3  ;;  %v60_v19 = vld [vmem:[%s707_s1 + $0xf0] sm:$0xff] }
  0x13   :  { %415 = vmatpush3.bf16.msra.mxu1 %v414_v51  ;;  %v43_v12 = vld [vmem:[%s707_s1 + $0x68] sm:$0xff]  ;;  %v74_v15 = vld [vmem:[%s707_s1 + $0x160] sm:$0xff]  ;;  %v424_v18 = vpack.c.bf16 %v91_v9, %v90_v8  ;;  %v61_v20 = vld [vmem:[%s707_s1 + $0xf8] sm:$0xff] }
  0x14   :  { %417 = vmatprep.subr.bf16.mxu1 %v416_v56  ;;  %v75_v16 = vld [vmem:[%s707_s1 + $0x168] sm:$0xff]  ;;  %v17_v21 = vld [vmem:[%s708_s0 + $0x18] sm:$0xff]  ;;  %v92_v22 = vld [vmem:[%s707_s1 + $0x1f0] sm:$0xff]  ;;  %v394_v24 = vpack.c.bf16 %v43_v12, %v42_v11  ;;  %v396_v26 = vpack.c.bf16 %v61_v20, %v60_v19 }
  0x15   :  { %387 = vmatpush3.bf16.msra.mxu0 %v386_v62  ;;  %v15_v17 = vld [vmem:[%s708_s0 + $0x8] sm:$0xff]  ;;  %v93_v23 = vld [vmem:[%s707_s1 + $0x1f8] sm:$0xff]  ;;  %250 = vmatprep.mubr.f32.mxu1 %v17_v21  ;;  %v426_v25 = vpack.c.bf16 %v75_v16, %v74_v15  ;;  %v44_v27 = vld [vmem:[%s707_s1 + $0x70] sm:$0xff] }
  0x16   :  { %389 = vmatprep.subr.bf16.mxu0 %v388_v0  ;;  %165 = vmatprep.mubr.f32.mxu0 %v15_v17  ;;  %v45_v28 = vld [vmem:[%s707_s1 + $0x78] sm:$0xff]  ;;  %v428_v29 = vpack.c.bf16 %v93_v23, %v92_v22  ;;  %v76_v30 = vld [vmem:[%s707_s1 + $0x170] sm:$0xff]  ;;  %v14_v34 = vld [vmem:[%s708_s0] sm:$0xff] }
  0x17   :  { %419 = vmatpush3.bf16.msra.mxu1 %v418_v63  ;;  %v77_v31 = vld [vmem:[%s707_s1 + $0x178] sm:$0xff]  ;;  %v398_v32 = vpack.c.bf16 %v45_v28, %v44_v27  ;;  %v16_v35 = vld [vmem:[%s708_s0 + $0x10] sm:$0xff]  ;;  %v19_v36 = vld [vmem:[%s708_s0 + $0x28] sm:$0xff] }
  0x18   :  { %421 = vmatprep.subr.bf16.mxu1 %v420_v4  ;;  %v430_v33 = vpack.c.bf16 %v77_v31, %v76_v30  ;;  %v21_v37 = vld [vmem:[%s708_s0 + $0x38] sm:$0xff]  ;;  %v18_v38 = vld [vmem:[%s708_s0 + $0x20] sm:$0xff]  ;;  %v20_v39 = vld [vmem:[%s708_s0 + $0x30] sm:$0xff] }
  0x19   :  { %391 = vmatpush3.bf16.msra.mxu0 %v390_v10  ;;  %v23_v40 = vld [vmem:[%s708_s0 + $0x48] sm:$0xff]  ;;  %v25_v41 = vld [vmem:[%s708_s0 + $0x58] sm:$0xff]  ;;  %v22_v42 = vld [vmem:[%s708_s0 + $0x40] sm:$0xff] }
  0x1a   :  { %393 = vmatprep.subr.bf16.mxu0 %v392_v14  ;;  %v24_v43 = vld [vmem:[%s708_s0 + $0x50] sm:$0xff]  ;;  %v27_v44 = vld [vmem:[%s708_s0 + $0x68] sm:$0xff]  ;;  %v29_v45 = vld [vmem:[%s708_s0 + $0x78] sm:$0xff] }
  0x1b   :  { %423 = vmatpush3.bf16.msra.mxu1 %v422_v13  ;;  %v26_v46 = vld [vmem:[%s708_s0 + $0x60] sm:$0xff]  ;;  %v28_v47 = vld [vmem:[%s708_s0 + $0x70] sm:$0xff] }
  0x1c   :  { %425 = vmatprep.subr.bf16.mxu1 %v424_v18  ;;  %v279_v49 = vld [vmem:[%s709_s2] ss:$0 sm:$0xff] }
  0x1d   :  { %395 = vmatpush3.bf16.msra.mxu0 %v394_v24 }
  0x1e   :  { %397 = vmatprep.subr.bf16.mxu0 %v396_v26 }
  0x1f   :  { %427 = vmatpush3.bf16.msra.mxu1 %v426_v25 }
  0x20   :  { %429 = vmatprep.subr.bf16.mxu1 %v428_v29 }
  0x21   :  { %399 = vmatpush3.bf16.msra.mxu0 %v398_v32 }
  0x23   :  { %431 = vmatpush3.bf16.msra.mxu1 %v430_v33 }
  0x24   :  { %166 = vmatmul.mubr.f32.vlgmr.msra.gmra.mrb[0].mxu0 %v14_v34 }
  0x25   :  { %170 = vmatprep.mubr.f32.mxu0 %v19_v36 }
  0x26   :  { %251 = vmatmul.mubr.f32.vlgmr.msra.gmra.mrb[0].mxu1 %v16_v35 }
  0x27   :  { %255 = vmatprep.mubr.f32.mxu1 %v21_v37 }
  0x28   :  { %171 = vmatmul.mubr.f32.gmra.mrb[2].mxu0 %v18_v38 }
  0x29   :  { %175 = vmatprep.mubr.f32.mxu0 %v23_v40 }
  0x2a   :  { %256 = vmatmul.mubr.f32.gmra.mrb[2].mxu1 %v20_v39 }
  0x2b   :  { %260 = vmatprep.mubr.f32.mxu1 %v25_v41 }
  0x2c   :  { %176 = vmatmul.mubr.f32.gmra.mrb[4].mxu0 %v22_v42 }
  0x2d   :  { %180 = vmatprep.mubr.f32.mxu0 %v27_v44 }
  0x2e   :  { %261 = vmatmul.mubr.f32.gmra.mrb[4].mxu1 %v24_v43 }
  0x2f   :  { %265 = vmatprep.mubr.f32.mxu1 %v29_v45 }
  0x30   :  { %181 = vmatmul.mubr.f32.gmra.mrb[6].mxu0 %v26_v46 }
  0x32   :  { %266 = vmatmul.mubr.f32.gmra.mrb[6].mxu1 %v28_v47 }
  0xf7   :  { %v312_v48 = vpop.f32.mrb[0].mxu0 }
  0xf8   :  { %v313_v50 = vpop.f32.mrb[1].mxu0 }
  0xf9   :  { %v356_v51 = vpop.f32.mrb[0].mxu1  ;;  %v314_v52 = vadd.f32 %v313_v50, %v312_v48 }
  0xfa   :  { %v357_v53 = vpop.f32.mrb[1].mxu1 }
  0xfb   :  { %v358_v54 = vadd.f32 %v357_v53, %v356_v51  ;;  %v168_v55 = vadd.f32 %v314_v52, %v279_v49  ;;  %v315_v56 = vpop.f32.mrb[2].mxu0 }
  0xfc   :  { %v316_v57 = vpop.f32.mrb[3].mxu0 }
  0xfd   :  { %v359_v58 = vpop.f32.mrb[2].mxu1  ;;  %v253_v59 = vadd.f32 %v358_v54, %v168_v55  ;;  %v317_v60 = vadd.f32 %v316_v57, %v315_v56 }
  0xfe   :  { %v360_v61 = vpop.f32.mrb[3].mxu1 }
  0xff   :  { %v361_v62 = vadd.f32 %v360_v61, %v359_v58  ;;  %271 = vst [vmem:[%s710_s3] sm:$0xff] %v253_v59  ;;  %v173_v63 = vadd.f32 %v317_v60, %v279_v49  ;;  %v318_v0 = vpop.f32.mrb[4].mxu0 }
 0x100   :  { %v319_v1 = vpop.f32.mrb[5].mxu0 }
 0x101   :  { %v362_v2 = vpop.f32.mrb[4].mxu1  ;;  %v258_v3 = vadd.f32 %v361_v62, %v173_v63  ;;  %v320_v4 = vadd.f32 %v319_v1, %v318_v0 }
 0x102   :  { %v363_v5 = vpop.f32.mrb[5].mxu1 }
 0x103   :  { %v364_v6 = vadd.f32 %v363_v5, %v362_v2  ;;  %272 = vst [vmem:[%s710_s3 + $0x8] sm:$0xff] %v258_v3  ;;  %v178_v7 = vadd.f32 %v320_v4, %v279_v49  ;;  %v321_v8 = vpop.f32.mrb[6].mxu0 }
 0x104   :  { %v322_v9 = vpop.f32.mrb[7].mxu0 }
 0x105   :  { %v365_v10 = vpop.f32.mrb[6].mxu1  ;;  %v263_v11 = vadd.f32 %v364_v6, %v178_v7  ;;  %v323_v12 = vadd.f32 %v322_v9, %v321_v8 }
 0x106   :  { %v366_v13 = vpop.f32.mrb[7].mxu1 }
 0x107   :  { %v367_v14 = vadd.f32 %v366_v13, %v365_v10  ;;  %273 = vst [vmem:[%s710_s3 + $0x10] sm:$0xff] %v263_v11  ;;  %v183_v15 = vadd.f32 %v323_v12, %v279_v49 }
 0x109   :  { %v268_v16 = vadd.f32 %v367_v14, %v183_v15 }
 0x10b   :  { %274 = vst [vmem:[%s710_s3 + $0x18] sm:$0xff] %v268_v16 }

// kernel: _lambda_.19
= control target key start
LH: loop header
LB: loop body
LE: loop exit
PB: predicated region body
PF: predicated region fallthrough
CT: control target
= control target key end

     0   :  { %v53_v0 = vmov 0.0   ;;  %s96_s1 = inlined_call_operand.vmem [shape: f32[1,128], index: 1, kind: output, shape index: {0}]   ;;  %s97_s2 = inlined_call_operand.vmem [shape: f32[1,128], index: 2, kind: output, shape index: {1}]   ;;  %s98_s0 = inlined_call_operand.vmem [shape: f32[24,128], index: 0, kind: input, shape index: {}]  }
   0x1   :  { %14 = vst [vmem:[%s96_s1] sm:$0x1] %v53_v0  ;;  %15 = vst [vmem:[%s97_s2] sm:$0x1] %v53_v0  ;;  %v16_v1 = vld [vmem:[%s98_s0] sm:$0xff]  ;;  %v17_v2 = vld [vmem:[%s98_s0 + $0x8] sm:$0xff] }
   0x2   :  { %v18_v3 = vld [vmem:[%s98_s0 + $0x10] sm:$0xff]  ;;  %v20_v4 = vadd.f32 %v17_v2, %v16_v1  ;;  %v31_v5 = vmul.f32 %v16_v1, %v16_v1  ;;  %v32_v6 = vmul.f32 %v17_v2, %v17_v2 }
   0x3   :  { %v33_v7 = vmul.f32 %v18_v3, %v18_v3 }
   0x4   :  { %v21_v8 = vadd.f32 %v20_v4, %v18_v3  ;;  %v34_v9 = vadd.f32 %v32_v6, %v31_v5 }
   0x6   :  { %v22_v10 = vrot.slane %v21_v8, 4  ;;  %v35_v11 = vadd.f32 %v34_v9, %v33_v7 }
   0x8   :  { %v23_v12 = vadd.f32 %v22_v10, %v21_v8  ;;  %v36_v13 = vrot.slane %v35_v11, 4  ;;  %v19_v20 = vld [vmem:[%s96_s1] sm:$0x1] }
   0x9   :  { %v30_v23 = vld [vmem:[%s97_s2] sm:$0x1] }
   0xa   :  { %v24_v14 = vrot.slane %v23_v12, 2  ;;  %v37_v15 = vadd.f32 %v36_v13, %v35_v11 }
   0xc   :  { %v25_v16 = vadd.f32 %v24_v14, %v23_v12  ;;  %v38_v17 = vrot.slane %v37_v15, 2 }
   0xe   :  { %v26_v18 = vrot.slane %v25_v16, 1  ;;  %v39_v19 = vadd.f32 %v38_v17, %v37_v15 }
  0x10   :  { %v27_v21 = vadd.f32 %v26_v18, %v25_v16  ;;  %v40_v22 = vrot.slane %v39_v19, 1 }
  0x12   :  { %v28_v24 = vadd.f32 %v27_v21, %v19_v20  ;;  %v41_v25 = vadd.f32 %v40_v22, %v39_v19 }
  0x14   :  { %29 = vst [vmem:[%s96_s1] sm:$0x1] %v28_v24  ;;  %v42_v26 = vadd.f32 %v41_v25, %v30_v23 }
  0x16   :  { %43 = vst [vmem:[%s97_s2] sm:$0x1] %v42_v26 }

// kernel: _lambda_.20
= control target key start
LH: loop header
LB: loop body
LE: loop exit
PB: predicated region body
PF: predicated region fallthrough
CT: control target
= control target key end

     0   :  { %v37_v7 = vlaneseq  ;;  %s132_s1 = inlined_call_operand.vmem [shape: f32[1,128], index: 1, kind: input, shape index: {}]   ;;  %s133_s2 = inlined_call_operand.vmem [shape: f32[1,128], index: 2, kind: input, shape index: {}]   ;;  %s134_s3 = inlined_call_operand.vmem [shape: f32[1,128], index: 3, kind: input, shape index: {}]   ;;  %s135_s4 = inlined_call_operand.vmem [shape: f32[1,128], index: 4, kind: input, shape index: {}]   ;;  %s136_s0 = inlined_call_operand.vmem [shape: f32[24,128], index: 0, kind: input, shape index: {}]   ;;  %s137_s5 = inlined_call_operand.vmem [shape: f32[24,128], index: 5, kind: output, shape index: {}]  }
   0x1   :  { %v20_v0 = vld [vmem:[%s132_s1] sm:$0x1]  ;;  %v34_v15 = vld [vmem:[%s136_s0 + $0x8] sm:$0xff]  ;;  %v35_v16 = vld [vmem:[%s136_s0 + $0x10] sm:$0xff] }
   0x2   :  { %v22_v1 = vld [vmem:[%s133_s2] sm:$0x1]  ;;  %v21_v2 = vmul.f32 0.055555556, %v20_v0  ;;  %v38_v8 = vshrl.u32 %v37_v7, 7 }
   0x3   :  { %v23_v3 = vmul.f32 0.055555556, %v22_v1  ;;  %v26_v9 = vld [vmem:[%s134_s3] sm:$0x1] }
   0x4   :  { %v24_v4 = vmul.f32 %v21_v2, %v21_v2  ;;  %v39_v10 = vsub.s32 0, %v38_v8  ;;  %v30_v13 = vld [vmem:[%s135_s4] sm:$0x1] }
   0x5   :  { %v33_v14 = vld [vmem:[%s136_s0] sm:$0xff] }
   0x6   :  { %v25_v5 = vsub.f32 %v23_v3, %v24_v4 }
   0x8   :  { %v27_v6 = vadd.f32 1e-05, %v25_v5 }
   0xa   :  { %70 = vrsqrt.f32 %v27_v6 }
  0x14   :  { %v71_v11 = vpop.eup %70 }
  0x15   :  { %v29_v12 = vmul.f32 %v71_v11, %v26_v9 }
  0x17   :  { %v31_v17 = vmul.f32 %v29_v12, %v21_v2  ;;  %v40_v18 = vrot.slane %v29_v12, %v39_v10 }
  0x19   :  { %v32_v19 = vsub.f32 %v30_v13, %v31_v17  ;;  %v42_v20 = vmul.f32 %v40_v18, %v33_v14  ;;  %v43_v21 = vmul.f32 %v40_v18, %v34_v15  ;;  %v44_v22 = vmul.f32 %v40_v18, %v35_v16 }
  0x1b   :  { %v49_v23 = vrot.slane %v32_v19, %v39_v10 }
  0x1d   :  { %v51_v24 = vadd.f32 %v49_v23, %v42_v20  ;;  %v52_v25 = vadd.f32 %v49_v23, %v43_v21  ;;  %v53_v26 = vadd.f32 %v49_v23, %v44_v22 }
  0x1f   :  { %vm54_vm0 = vcmp.ge.f32.partialorder %v51_v24, 0.0  ;;  %v57_v27 = vmul.f32 0.2, %v51_v24  ;;  %vm55_vm1 = vcmp.ge.f32.partialorder %v52_v25, 0.0  ;;  %v58_v28 = vmul.f32 0.2, %v52_v25 }
  0x20   :  { %vm56_vm2 = vcmp.ge.f32.partialorder %v53_v26, 0.0  ;;  %v59_v29 = vmul.f32 0.2, %v53_v26 }
  0x21   :  { %v60_v30 = vsel %vm54_vm0, %v51_v24, %v57_v27  ;;  %v61_v31 = vsel %vm55_vm1, %v52_v25, %v58_v28 }
  0x22   :  { %63 = vst [vmem:[%s137_s5] sm:$0xff] %v60_v30  ;;  %64 = vst [vmem:[%s137_s5 + $0x8] sm:$0xff] %v61_v31  ;;  %v62_v32 = vsel %vm56_vm2, %v53_v26, %v59_v29 }
  0x23   :  { %65 = vst [vmem:[%s137_s5 + $0x10] sm:$0xff] %v62_v32 }

// kernel: _lambda_.18
= control target key start
LH: loop header
LB: loop body
LE: loop exit
PB: predicated region body
PF: predicated region fallthrough
CT: control target
= control target key end

     0   :  { %s1281_s1 = inlined_call_operand.vmem [shape: f32[1024,128], index: 1, kind: input, shape index: {}]   ;;  %s1282_s0 = inlined_call_operand.vmem [shape: f32[24,1024], index: 0, kind: input, shape index: {}]   ;;  %s1283_s2 = inlined_call_operand.vmem [shape: f32[1,128], index: 2, kind: input, shape index: {}]   ;;  %s1284_s3 = inlined_call_operand.vmem [shape: f32[24,128], index: 3, kind: output, shape index: {}]  }
   0x1   :  { %v54_v0 = vld [vmem:[%s1281_s1 + $0x80] sm:$0xff]  ;;  %v55_v1 = vld [vmem:[%s1281_s1 + $0x88] sm:$0xff]  ;;  %v56_v11 = vld [vmem:[%s1281_s1 + $0x90] sm:$0xff] }
   0x2   :  { %v38_v2 = vld [vmem:[%s1281_s1] sm:$0xff]  ;;  %v665_v3 = vpack.c.bf16 %v55_v1, %v54_v0  ;;  %v39_v4 = vld [vmem:[%s1281_s1 + $0x8] sm:$0xff]  ;;  %v57_v13 = vld [vmem:[%s1281_s1 + $0x98] sm:$0xff] }
   0x3   :  { %v86_v5 = vld [vmem:[%s1281_s1 + $0x180] sm:$0xff]  ;;  %v87_v6 = vld [vmem:[%s1281_s1 + $0x188] sm:$0xff]  ;;  %v667_v7 = vpack.c.bf16 %v39_v4, %v38_v2  ;;  %v40_v14 = vld [vmem:[%s1281_s1 + $0x10] sm:$0xff]  ;;  %v669_v16 = vpack.c.bf16 %v57_v13, %v56_v11 }
   0x4   :  { %v697_v8 = vpack.c.bf16 %v87_v6, %v86_v5  ;;  %v70_v9 = vld [vmem:[%s1281_s1 + $0x100] sm:$0xff]  ;;  %v71_v10 = vld [vmem:[%s1281_s1 + $0x108] sm:$0xff]  ;;  %666 = vmatprep.subr.bf16.mxu0 %v665_v3  ;;  %v41_v15 = vld [vmem:[%s1281_s1 + $0x18] sm:$0xff] }
   0x5   :  { %v699_v12 = vpack.c.bf16 %v71_v10, %v70_v9  ;;  %668 = vmatpush3.bf16.msra.mxu0 %v667_v7  ;;  %v671_v17 = vpack.c.bf16 %v41_v15, %v40_v14  ;;  %v88_v18 = vld [vmem:[%s1281_s1 + $0x190] sm:$0xff]  ;;  %v89_v19 = vld [vmem:[%s1281_s1 + $0x198] sm:$0xff]  ;;  %v58_v23 = vld [vmem:[%s1281_s1 + $0xa0] sm:$0xff] }
   0x6   :  { %698 = vmatprep.subr.bf16.mxu1 %v697_v8  ;;  %v72_v20 = vld [vmem:[%s1281_s1 + $0x110] sm:$0xff]  ;;  %v701_v21 = vpack.c.bf16 %v89_v19, %v88_v18  ;;  %v73_v22 = vld [vmem:[%s1281_s1 + $0x118] sm:$0xff]  ;;  %v59_v24 = vld [vmem:[%s1281_s1 + $0xa8] sm:$0xff]  ;;  %670 = vmatprep.subr.bf16.mxu0 %v669_v16 }
   0x7   :  { %700 = vmatpush3.bf16.msra.mxu1 %v699_v12  ;;  %v703_v25 = vpack.c.bf16 %v73_v22, %v72_v20  ;;  %v673_v26 = vpack.c.bf16 %v59_v24, %v58_v23  ;;  %v42_v27 = vld [vmem:[%s1281_s1 + $0x20] sm:$0xff]  ;;  %v43_v28 = vld [vmem:[%s1281_s1 + $0x28] sm:$0xff]  ;;  %v60_v35 = vld [vmem:[%s1281_s1 + $0xb0] sm:$0xff] }
   0x8   :  { %v90_v29 = vld [vmem:[%s1281_s1 + $0x1a0] sm:$0xff]  ;;  %702 = vmatprep.subr.bf16.mxu1 %v701_v21  ;;  %v91_v30 = vld [vmem:[%s1281_s1 + $0x1a8] sm:$0xff]  ;;  %v675_v33 = vpack.c.bf16 %v43_v28, %v42_v27  ;;  %v61_v36 = vld [vmem:[%s1281_s1 + $0xb8] sm:$0xff] }
   0x9   :  { %v74_v31 = vld [vmem:[%s1281_s1 + $0x120] sm:$0xff]  ;;  %v75_v32 = vld [vmem:[%s1281_s1 + $0x128] sm:$0xff]  ;;  %672 = vmatpush3.bf16.msra.mxu0 %v671_v17  ;;  %v705_v34 = vpack.c.bf16 %v91_v30, %v90_v29  ;;  %v44_v37 = vld [vmem:[%s1281_s1 + $0x30] sm:$0xff]  ;;  %v677_v39 = vpack.c.bf16 %v61_v36, %v60_v35 }
   0xa   :  { %674 = vmatprep.subr.bf16.mxu0 %v673_v26  ;;  %v707_v38 = vpack.c.bf16 %v75_v32, %v74_v31  ;;  %v45_v40 = vld [vmem:[%s1281_s1 + $0x38] sm:$0xff]  ;;  %v92_v41 = vld [vmem:[%s1281_s1 + $0x1b0] sm:$0xff]  ;;  %v62_v46 = vld [vmem:[%s1281_s1 + $0xc0] sm:$0xff] }
   0xb   :  { %704 = vmatpush3.bf16.msra.mxu1 %v703_v25  ;;  %v93_v42 = vld [vmem:[%s1281_s1 + $0x1b8] sm:$0xff]  ;;  %v76_v44 = vld [vmem:[%s1281_s1 + $0x130] sm:$0xff]  ;;  %v63_v47 = vld [vmem:[%s1281_s1 + $0xc8] sm:$0xff]  ;;  %v679_v48 = vpack.c.bf16 %v45_v40, %v44_v37 }
   0xc   :  { %706 = vmatprep.subr.bf16.mxu1 %v705_v34  ;;  %v709_v43 = vpack.c.bf16 %v93_v42, %v92_v41  ;;  %v77_v45 = vld [vmem:[%s1281_s1 + $0x138] sm:$0xff]  ;;  %v94_v49 = vld [vmem:[%s1281_s1 + $0x1c0] sm:$0xff]  ;;  %v95_v50 = vld [vmem:[%s1281_s1 + $0x1c8] sm:$0xff]  ;;  %v681_v52 = vpack.c.bf16 %v63_v47, %v62_v46 }
   0xd   :  { %676 = vmatpush3.bf16.msra.mxu0 %v675_v33  ;;  %v711_v51 = vpack.c.bf16 %v77_v45, %v76_v44  ;;  %v46_v53 = vld [vmem:[%s1281_s1 + $0x40] sm:$0xff]  ;;  %v47_v54 = vld [vmem:[%s1281_s1 + $0x48] sm:$0xff]  ;;  %v713_v56 = vpack.c.bf16 %v95_v50, %v94_v49  ;;  %v64_v58 = vld [vmem:[%s1281_s1 + $0xd0] sm:$0xff] }
   0xe   :  { %678 = vmatprep.subr.bf16.mxu0 %v677_v39  ;;  %v78_v55 = vld [vmem:[%s1281_s1 + $0x140] sm:$0xff]  ;;  %v79_v57 = vld [vmem:[%s1281_s1 + $0x148] sm:$0xff]  ;;  %v65_v59 = vld [vmem:[%s1281_s1 + $0xd8] sm:$0xff]  ;;  %v683_v62 = vpack.c.bf16 %v47_v54, %v46_v53 }
   0xf   :  { %708 = vmatpush3.bf16.msra.mxu1 %v707_v38  ;;  %v96_v60 = vld [vmem:[%s1281_s1 + $0x1d0] sm:$0xff]  ;;  %v97_v61 = vld [vmem:[%s1281_s1 + $0x1d8] sm:$0xff]  ;;  %v715_v63 = vpack.c.bf16 %v79_v57, %v78_v55  ;;  %v685_v0 = vpack.c.bf16 %v65_v59, %v64_v58  ;;  %v66_v6 = vld [vmem:[%s1281_s1 + $0xe0] sm:$0xff] }
  0x10   :  { %710 = vmatprep.subr.bf16.mxu1 %v709_v43  ;;  %v48_v1 = vld [vmem:[%s1281_s1 + $0x50] sm:$0xff]  ;;  %v49_v2 = vld [vmem:[%s1281_s1 + $0x58] sm:$0xff]  ;;  %v717_v4 = vpack.c.bf16 %v97_v61, %v96_v60  ;;  %v67_v7 = vld [vmem:[%s1281_s1 + $0xe8] sm:$0xff] }
  0x11   :  { %680 = vmatpush3.bf16.msra.mxu0 %v679_v48  ;;  %v80_v3 = vld [vmem:[%s1281_s1 + $0x150] sm:$0xff]  ;;  %v81_v5 = vld [vmem:[%s1281_s1 + $0x158] sm:$0xff]  ;;  %v98_v8 = vld [vmem:[%s1281_s1 + $0x1e0] sm:$0xff]  ;;  %v687_v10 = vpack.c.bf16 %v49_v2, %v48_v1  ;;  %v689_v14 = vpack.c.bf16 %v67_v7, %v66_v6 }
  0x12   :  { %682 = vmatprep.subr.bf16.mxu0 %v681_v52  ;;  %v99_v9 = vld [vmem:[%s1281_s1 + $0x1e8] sm:$0xff]  ;;  %v50_v11 = vld [vmem:[%s1281_s1 + $0x60] sm:$0xff]  ;;  %v719_v13 = vpack.c.bf16 %v81_v5, %v80_v3  ;;  %v68_v19 = vld [vmem:[%s1281_s1 + $0xf0] sm:$0xff] }
  0x13   :  { %712 = vmatpush3.bf16.msra.mxu1 %v711_v51  ;;  %v51_v12 = vld [vmem:[%s1281_s1 + $0x68] sm:$0xff]  ;;  %v82_v15 = vld [vmem:[%s1281_s1 + $0x160] sm:$0xff]  ;;  %v721_v18 = vpack.c.bf16 %v99_v9, %v98_v8  ;;  %v69_v20 = vld [vmem:[%s1281_s1 + $0xf8] sm:$0xff] }
  0x14   :  { %714 = vmatprep.subr.bf16.mxu1 %v713_v56  ;;  %v83_v16 = vld [vmem:[%s1281_s1 + $0x168] sm:$0xff]  ;;  %v17_v21 = vld [vmem:[%s1282_s0 + $0x18] sm:$0xff]  ;;  %v100_v22 = vld [vmem:[%s1281_s1 + $0x1f0] sm:$0xff]  ;;  %v691_v24 = vpack.c.bf16 %v51_v12, %v50_v11  ;;  %v693_v26 = vpack.c.bf16 %v69_v20, %v68_v19 }
  0x15   :  { %684 = vmatpush3.bf16.msra.mxu0 %v683_v62  ;;  %v15_v17 = vld [vmem:[%s1282_s0 + $0x8] sm:$0xff]  ;;  %v101_v23 = vld [vmem:[%s1281_s1 + $0x1f8] sm:$0xff]  ;;  %317 = vmatprep.mubr.f32.mxu1 %v17_v21  ;;  %v723_v25 = vpack.c.bf16 %v83_v16, %v82_v15  ;;  %v52_v27 = vld [vmem:[%s1281_s1 + $0x70] sm:$0xff] }
  0x16   :  { %686 = vmatprep.subr.bf16.mxu0 %v685_v0  ;;  %237 = vmatprep.mubr.f32.mxu0 %v15_v17  ;;  %v53_v28 = vld [vmem:[%s1281_s1 + $0x78] sm:$0xff]  ;;  %v84_v29 = vld [vmem:[%s1281_s1 + $0x170] sm:$0xff]  ;;  %v725_v30 = vpack.c.bf16 %v101_v23, %v100_v22  ;;  %v118_v32 = vld [vmem:[%s1281_s1 + $0x280] sm:$0xff] }
  0x17   :  { %716 = vmatpush3.bf16.msra.mxu1 %v715_v63  ;;  %v85_v31 = vld [vmem:[%s1281_s1 + $0x178] sm:$0xff]  ;;  %v119_v33 = vld [vmem:[%s1281_s1 + $0x288] sm:$0xff]  ;;  %v150_v34 = vld [vmem:[%s1281_s1 + $0x380] sm:$0xff]  ;;  %v695_v36 = vpack.c.bf16 %v53_v28, %v52_v27 }
  0x18   :  { %718 = vmatprep.subr.bf16.mxu1 %v717_v4  ;;  %v151_v35 = vld [vmem:[%s1281_s1 + $0x388] sm:$0xff]  ;;  %v727_v37 = vpack.c.bf16 %v85_v31, %v84_v29  ;;  %v729_v38 = vpack.c.bf16 %v119_v33, %v118_v32  ;;  %v102_v39 = vld [vmem:[%s1281_s1 + $0x200] sm:$0xff]  ;;  %v120_v44 = vld [vmem:[%s1281_s1 + $0x290] sm:$0xff] }
  0x19   :  { %688 = vmatpush3.bf16.msra.mxu0 %v687_v10  ;;  %v103_v40 = vld [vmem:[%s1281_s1 + $0x208] sm:$0xff]  ;;  %v134_v41 = vld [vmem:[%s1281_s1 + $0x300] sm:$0xff]  ;;  %v761_v42 = vpack.c.bf16 %v151_v35, %v150_v34  ;;  %v121_v45 = vld [vmem:[%s1281_s1 + $0x298] sm:$0xff] }
  0x1a   :  { %690 = vmatprep.subr.bf16.mxu0 %v689_v14  ;;  %v135_v43 = vld [vmem:[%s1281_s1 + $0x308] sm:$0xff]  ;;  %v152_v46 = vld [vmem:[%s1281_s1 + $0x390] sm:$0xff]  ;;  %v153_v47 = vld [vmem:[%s1281_s1 + $0x398] sm:$0xff]  ;;  %v731_v49 = vpack.c.bf16 %v103_v40, %v102_v39  ;;  %v733_v52 = vpack.c.bf16 %v121_v45, %v120_v44 }
  0x1b   :  { %720 = vmatpush3.bf16.msra.mxu1 %v719_v13  ;;  %v14_v48 = vld [vmem:[%s1282_s0] sm:$0xff]  ;;  %v16_v50 = vld [vmem:[%s1282_s0 + $0x10] sm:$0xff]  ;;  %v763_v51 = vpack.c.bf16 %v135_v43, %v134_v41  ;;  %v105_v54 = vld [vmem:[%s1281_s1 + $0x218] sm:$0xff]  ;;  %v765_v56 = vpack.c.bf16 %v153_v47, %v152_v46 }
  0x1c   :  { %722 = vmatprep.subr.bf16.mxu1 %v721_v18  ;;  %v104_v53 = vld [vmem:[%s1281_s1 + $0x210] sm:$0xff]  ;;  %v137_v57 = vld [vmem:[%s1281_s1 + $0x318] sm:$0xff]  ;;  %v122_v58 = vld [vmem:[%s1281_s1 + $0x2a0] sm:$0xff] }
  0x1d   :  { %692 = vmatpush3.bf16.msra.mxu0 %v691_v24  ;;  %v136_v55 = vld [vmem:[%s1281_s1 + $0x310] sm:$0xff]  ;;  %v123_v59 = vld [vmem:[%s1281_s1 + $0x2a8] sm:$0xff]  ;;  %v154_v60 = vld [vmem:[%s1281_s1 + $0x3a0] sm:$0xff]  ;;  %v735_v62 = vpack.c.bf16 %v105_v54, %v104_v53 }
  0x1e   :  { %694 = vmatprep.subr.bf16.mxu0 %v693_v26  ;;  %v155_v61 = vld [vmem:[%s1281_s1 + $0x3a8] sm:$0xff]  ;;  %v106_v63 = vld [vmem:[%s1281_s1 + $0x220] sm:$0xff]  ;;  %v767_v1 = vpack.c.bf16 %v137_v57, %v136_v55  ;;  %v737_v2 = vpack.c.bf16 %v123_v59, %v122_v58  ;;  %v124_v5 = vld [vmem:[%s1281_s1 + $0x2b0] sm:$0xff] }
  0x1f   :  { %724 = vmatpush3.bf16.msra.mxu1 %v723_v25  ;;  %v107_v0 = vld [vmem:[%s1281_s1 + $0x228] sm:$0xff]  ;;  %v138_v3 = vld [vmem:[%s1281_s1 + $0x320] sm:$0xff]  ;;  %v769_v6 = vpack.c.bf16 %v155_v61, %v154_v60  ;;  %v125_v7 = vld [vmem:[%s1281_s1 + $0x2b8] sm:$0xff] }
  0x20   :  { %726 = vmatprep.subr.bf16.mxu1 %v725_v30  ;;  %v139_v4 = vld [vmem:[%s1281_s1 + $0x328] sm:$0xff]  ;;  %v156_v8 = vld [vmem:[%s1281_s1 + $0x3b0] sm:$0xff]  ;;  %v157_v10 = vld [vmem:[%s1281_s1 + $0x3b8] sm:$0xff]  ;;  %v739_v13 = vpack.c.bf16 %v107_v0, %v106_v63  ;;  %v741_v18 = vpack.c.bf16 %v125_v7, %v124_v5 }
  0x21   :  { %696 = vmatpush3.bf16.msra.mxu0 %v695_v36  ;;  %v23_v9 = vld [vmem:[%s1282_s0 + $0x48] sm:$0xff]  ;;  %v22_v11 = vld [vmem:[%s1282_s0 + $0x40] sm:$0xff]  ;;  %v25_v12 = vld [vmem:[%s1282_s0 + $0x58] sm:$0xff]  ;;  %v771_v17 = vpack.c.bf16 %v139_v4, %v138_v3  ;;  %v773_v22 = vpack.c.bf16 %v157_v10, %v156_v8 }
  0x22   :  { %730 = vmatprep.subr.bf16.mxu0 %v729_v38  ;;  %v108_v14 = vld [vmem:[%s1281_s1 + $0x230] sm:$0xff]  ;;  %v109_v15 = vld [vmem:[%s1281_s1 + $0x238] sm:$0xff]  ;;  %v126_v21 = vld [vmem:[%s1281_s1 + $0x2c0] sm:$0xff] }
  0x23   :  { %728 = vmatpush3.bf16.msra.mxu1 %v727_v37  ;;  %v24_v16 = vld [vmem:[%s1282_s0 + $0x50] sm:$0xff]  ;;  %v141_v20 = vld [vmem:[%s1281_s1 + $0x338] sm:$0xff]  ;;  %v127_v23 = vld [vmem:[%s1281_s1 + $0x2c8] sm:$0xff]  ;;  %v743_v29 = vpack.c.bf16 %v109_v15, %v108_v14 }
  0x24   :  { %762 = vmatprep.subr.bf16.mxu1 %v761_v42  ;;  %238 = vmatmul.mubr.f32.vlgmr.msra.gmra.mrb[0].mxu0 %v14_v48  ;;  %v140_v19 = vld [vmem:[%s1281_s1 + $0x330] sm:$0xff]  ;;  %v158_v24 = vld [vmem:[%s1281_s1 + $0x3c0] sm:$0xff]  ;;  %v31_v25 = vld [vmem:[%s1282_s0 + $0x88] sm:$0xff]  ;;  %v745_v33 = vpack.c.bf16 %v127_v23, %v126_v21 }
  0x25   :  { %732 = vmatpush3.bf16.msra.mxu0 %v731_v49  ;;  %242 = vmatprep.mubr.f32.mxu0 %v23_v9  ;;  %v159_v26 = vld [vmem:[%s1281_s1 + $0x3c8] sm:$0xff]  ;;  %v30_v27 = vld [vmem:[%s1282_s0 + $0x80] sm:$0xff]  ;;  %v33_v28 = vld [vmem:[%s1282_s0 + $0x98] sm:$0xff]  ;;  %v775_v32 = vpack.c.bf16 %v141_v20, %v140_v19 }
  0x26   :  { %318 = vmatmul.mubr.f32.vlgmr.msra.gmra.mrb[0].mxu1 %v16_v50  ;;  %734 = vmatprep.subr.bf16.mxu0 %v733_v52  ;;  %v110_v30 = vld [vmem:[%s1281_s1 + $0x240] sm:$0xff]  ;;  %v32_v31 = vld [vmem:[%s1282_s0 + $0x90] sm:$0xff]  ;;  %v111_v34 = vld [vmem:[%s1281_s1 + $0x248] sm:$0xff]  ;;  %v777_v37 = vpack.c.bf16 %v159_v26, %v158_v24 }
  0x27   :  { %764 = vmatpush3.bf16.msra.mxu1 %v763_v51  ;;  %322 = vmatprep.mubr.f32.mxu1 %v25_v12  ;;  %v142_v35 = vld [vmem:[%s1281_s1 + $0x340] sm:$0xff]  ;;  %v143_v36 = vld [vmem:[%s1281_s1 + $0x348] sm:$0xff]  ;;  %v128_v38 = vld [vmem:[%s1281_s1 + $0x2d0] sm:$0xff]  ;;  %v747_v44 = vpack.c.bf16 %v111_v34, %v110_v30 }
  0x28   :  { %766 = vmatprep.subr.bf16.mxu1 %v765_v56  ;;  %243 = vmatmul.mubr.f32.gmra.mrb[2].mxu0 %v22_v11  ;;  %v129_v39 = vld [vmem:[%s1281_s1 + $0x2d8] sm:$0xff]  ;;  %v19_v40 = vld [vmem:[%s1282_s0 + $0x28] sm:$0xff]  ;;  %v160_v41 = vld [vmem:[%s1281_s1 + $0x3d0] sm:$0xff]  ;;  %v779_v45 = vpack.c.bf16 %v143_v36, %v142_v35 }
  0x29   :  { %736 = vmatpush3.bf16.msra.mxu0 %v735_v62  ;;  %247 = vmatprep.mubr.f32.mxu0 %v31_v25  ;;  %v161_v42 = vld [vmem:[%s1281_s1 + $0x3d8] sm:$0xff]  ;;  %v749_v46 = vpack.c.bf16 %v129_v39, %v128_v38  ;;  %v112_v47 = vld [vmem:[%s1281_s1 + $0x250] sm:$0xff]  ;;  %v130_v52 = vld [vmem:[%s1281_s1 + $0x2e0] sm:$0xff] }
  0x2a   :  { %738 = vmatprep.subr.bf16.mxu0 %v737_v2  ;;  %323 = vmatmul.mubr.f32.gmra.mrb[2].mxu1 %v24_v16  ;;  %v21_v43 = vld [vmem:[%s1282_s0 + $0x38] sm:$0xff]  ;;  %v144_v49 = vld [vmem:[%s1281_s1 + $0x350] sm:$0xff]  ;;  %v781_v50 = vpack.c.bf16 %v161_v42, %v160_v41  ;;  %v131_v53 = vld [vmem:[%s1281_s1 + $0x2e8] sm:$0xff] }
  0x2b   :  { %768 = vmatpush3.bf16.msra.mxu1 %v767_v1  ;;  %327 = vmatprep.mubr.f32.mxu1 %v33_v28  ;;  %v113_v48 = vld [vmem:[%s1281_s1 + $0x258] sm:$0xff]  ;;  %v162_v54 = vld [vmem:[%s1281_s1 + $0x3e0] sm:$0xff]  ;;  %v163_v55 = vld [vmem:[%s1281_s1 + $0x3e8] sm:$0xff]  ;;  %v753_v58 = vpack.c.bf16 %v131_v53, %v130_v52 }
  0x2c   :  { %770 = vmatprep.subr.bf16.mxu1 %v769_v6  ;;  %248 = vmatmul.mubr.f32.gmra.mrb[4].mxu0 %v30_v27  ;;  %v145_v51 = vld [vmem:[%s1281_s1 + $0x358] sm:$0xff]  ;;  %v751_v56 = vpack.c.bf16 %v113_v48, %v112_v47  ;;  %v114_v59 = vld [vmem:[%s1281_s1 + $0x260] sm:$0xff]  ;;  %v115_v60 = vld [vmem:[%s1281_s1 + $0x268] sm:$0xff]  ;;  %v785_v62 = vpack.c.bf16 %v163_v55, %v162_v54 }
  0x2d   :  { %740 = vmatpush3.bf16.msra.mxu0 %v739_v13  ;;  %397 = vmatprep.mubr.f32.mxu0 %v19_v40  ;;  %v783_v57 = vpack.c.bf16 %v145_v51, %v144_v49  ;;  %v146_v61 = vld [vmem:[%s1281_s1 + $0x360] sm:$0xff]  ;;  %v147_v63 = vld [vmem:[%s1281_s1 + $0x368] sm:$0xff]  ;;  %v132_v0 = vld [vmem:[%s1281_s1 + $0x2f0] sm:$0xff]  ;;  %v755_v4 = vpack.c.bf16 %v115_v60, %v114_v59 }
  0x2e   :  { %742 = vmatprep.subr.bf16.mxu0 %v741_v18  ;;  %328 = vmatmul.mubr.f32.gmra.mrb[4].mxu1 %v32_v31  ;;  %v133_v1 = vld [vmem:[%s1281_s1 + $0x2f8] sm:$0xff]  ;;  %v164_v2 = vld [vmem:[%s1281_s1 + $0x3f0] sm:$0xff]  ;;  %v787_v5 = vpack.c.bf16 %v147_v63, %v146_v61  ;;  %v18_v14 = vld [vmem:[%s1282_s0 + $0x20] sm:$0xff] }
  0x2f   :  { %772 = vmatpush3.bf16.msra.mxu1 %v771_v17  ;;  %477 = vmatprep.mubr.f32.mxu1 %v21_v43  ;;  %v165_v3 = vld [vmem:[%s1281_s1 + $0x3f8] sm:$0xff]  ;;  %v757_v6 = vpack.c.bf16 %v133_v1, %v132_v0  ;;  %v116_v7 = vld [vmem:[%s1281_s1 + $0x270] sm:$0xff]  ;;  %v27_v16 = vld [vmem:[%s1282_s0 + $0x68] sm:$0xff] }
  0x30   :  { %774 = vmatprep.subr.bf16.mxu1 %v773_v22  ;;  %v117_v8 = vld [vmem:[%s1281_s1 + $0x278] sm:$0xff]  ;;  %v789_v9 = vpack.c.bf16 %v165_v3, %v164_v2  ;;  %v148_v10 = vld [vmem:[%s1281_s1 + $0x370] sm:$0xff]  ;;  %v26_v18 = vld [vmem:[%s1282_s0 + $0x60] sm:$0xff] }
  0x31   :  { %744 = vmatpush3.bf16.msra.mxu0 %v743_v29  ;;  %v149_v11 = vld [vmem:[%s1281_s1 + $0x378] sm:$0xff]  ;;  %v759_v12 = vpack.c.bf16 %v117_v8, %v116_v7  ;;  %v20_v15 = vld [vmem:[%s1282_s0 + $0x30] sm:$0xff]  ;;  %v35_v20 = vld [vmem:[%s1282_s0 + $0xa8] sm:$0xff] }
  0x32   :  { %746 = vmatprep.subr.bf16.mxu0 %v745_v33  ;;  %v791_v13 = vpack.c.bf16 %v149_v11, %v148_v10  ;;  %v29_v17 = vld [vmem:[%s1282_s0 + $0x78] sm:$0xff]  ;;  %v28_v19 = vld [vmem:[%s1282_s0 + $0x70] sm:$0xff]  ;;  %v34_v22 = vld [vmem:[%s1282_s0 + $0xa0] sm:$0xff] }
  0x33   :  { %776 = vmatpush3.bf16.msra.mxu1 %v775_v32  ;;  %v37_v21 = vld [vmem:[%s1282_s0 + $0xb8] sm:$0xff]  ;;  %v36_v23 = vld [vmem:[%s1282_s0 + $0xb0] sm:$0xff]  ;;  %v500_v25 = vld [vmem:[%s1283_s2] ss:$0 sm:$0xff] }
  0x34   :  { %778 = vmatprep.subr.bf16.mxu1 %v777_v37 }
  0x35   :  { %748 = vmatpush3.bf16.msra.mxu0 %v747_v44 }
  0x36   :  { %750 = vmatprep.subr.bf16.mxu0 %v749_v46 }
  0x37   :  { %780 = vmatpush3.bf16.msra.mxu1 %v779_v45 }
  0x38   :  { %782 = vmatprep.subr.bf16.mxu1 %v781_v50 }
  0x39   :  { %752 = vmatpush3.bf16.msra.mxu0 %v751_v56 }
  0x3a   :  { %754 = vmatprep.subr.bf16.mxu0 %v753_v58 }
  0x3b   :  { %784 = vmatpush3.bf16.msra.mxu1 %v783_v57 }
  0x3c   :  { %786 = vmatprep.subr.bf16.mxu1 %v785_v62 }
  0x3d   :  { %756 = vmatpush3.bf16.msra.mxu0 %v755_v4 }
  0x3e   :  { %758 = vmatprep.subr.bf16.mxu0 %v757_v6 }
  0x3f   :  { %788 = vmatpush3.bf16.msra.mxu1 %v787_v5 }
  0x40   :  { %790 = vmatprep.subr.bf16.mxu1 %v789_v9 }
  0x41   :  { %760 = vmatpush3.bf16.msra.mxu0 %v759_v12 }
  0x43   :  { %792 = vmatpush3.bf16.msra.mxu1 %v791_v13 }
  0x44   :  { %398 = vmatmul.mubr.f32.vlgmr.msra.gmra.mrb[6].mxu0 %v18_v14 }
  0x45   :  { %402 = vmatprep.mubr.f32.mxu0 %v27_v16 }
  0x46   :  { %478 = vmatmul.mubr.f32.vlgmr.msra.gmra.mrb[6].mxu1 %v20_v15 }
  0x47   :  { %482 = vmatprep.mubr.f32.mxu1 %v29_v17 }
  0x48   :  { %403 = vmatmul.mubr.f32.gmra.mrb[8].mxu0 %v26_v18 }
  0x49   :  { %407 = vmatprep.mubr.f32.mxu0 %v35_v20 }
  0x4a   :  { %483 = vmatmul.mubr.f32.gmra.mrb[8].mxu1 %v28_v19 }
  0x4b   :  { %487 = vmatprep.mubr.f32.mxu1 %v37_v21 }
  0x4c   :  { %408 = vmatmul.mubr.f32.gmra.mrb[10].mxu0 %v34_v22 }
  0x4e   :  { %488 = vmatmul.mubr.f32.gmra.mrb[10].mxu1 %v36_v23 }
  0xf7   :  { %v533_v24 = vpop.f32.mrb[0].mxu0 }
  0xf8   :  { %v534_v26 = vpop.f32.mrb[1].mxu0 }
  0xf9   :  { %v574_v27 = vpop.f32.mrb[0].mxu1  ;;  %v535_v28 = vadd.f32 %v534_v26, %v533_v24 }
  0xfa   :  { %v575_v29 = vpop.f32.mrb[1].mxu1 }
  0xfb   :  { %v576_v30 = vadd.f32 %v575_v29, %v574_v27  ;;  %v240_v31 = vadd.f32 %v535_v28, %v500_v25  ;;  %v536_v33 = vpop.f32.mrb[2].mxu0 }
  0xfc   :  { %v537_v34 = vpop.f32.mrb[3].mxu0 }
  0xfd   :  { %v320_v32 = vadd.f32 %v576_v30, %v240_v31  ;;  %v577_v35 = vpop.f32.mrb[2].mxu1  ;;  %v538_v36 = vadd.f32 %v537_v34, %v536_v33 }
  0xfe   :  { %v578_v37 = vpop.f32.mrb[3].mxu1 }
  0xff   :  { %v579_v38 = vadd.f32 %v578_v37, %v577_v35  ;;  %v245_v39 = vadd.f32 %v538_v36, %v500_v25  ;;  %v539_v40 = vpop.f32.mrb[4].mxu0 }
 0x100   :  { %v540_v41 = vpop.f32.mrb[5].mxu0 }
 0x101   :  { %v580_v42 = vpop.f32.mrb[4].mxu1  ;;  %v325_v43 = vadd.f32 %v579_v38, %v245_v39  ;;  %v541_v44 = vadd.f32 %v540_v41, %v539_v40 }
 0x102   :  { %v581_v45 = vpop.f32.mrb[5].mxu1 }
 0x103   :  { %v582_v46 = vadd.f32 %v581_v45, %v580_v42  ;;  %v250_v47 = vadd.f32 %v541_v44, %v500_v25 }
 0x105   :  { %v330_v48 = vadd.f32 %v582_v46, %v250_v47 }
 0x117   :  { %v615_v49 = vpop.f32.mrb[6].mxu0 }
 0x118   :  { %v616_v50 = vpop.f32.mrb[7].mxu0 }
 0x119   :  { %v656_v51 = vpop.f32.mrb[6].mxu1  ;;  %v617_v52 = vadd.f32 %v616_v50, %v615_v49 }
 0x11a   :  { %v657_v53 = vpop.f32.mrb[7].mxu1 }
 0x11b   :  { %v658_v54 = vadd.f32 %v657_v53, %v656_v51  ;;  %v400_v55 = vadd.f32 %v617_v52, %v320_v32  ;;  %v618_v56 = vpop.f32.mrb[8].mxu0 }
 0x11c   :  { %v619_v57 = vpop.f32.mrb[9].mxu0 }
 0x11d   :  { %v659_v58 = vpop.f32.mrb[8].mxu1  ;;  %v480_v59 = vadd.f32 %v658_v54, %v400_v55  ;;  %v620_v60 = vadd.f32 %v619_v57, %v618_v56 }
 0x11e   :  { %v660_v61 = vpop.f32.mrb[9].mxu1 }
 0x11f   :  { %v661_v62 = vadd.f32 %v660_v61, %v659_v58  ;;  %493 = vst [vmem:[%s1284_s3] sm:$0xff] %v480_v59  ;;  %v405_v63 = vadd.f32 %v620_v60, %v325_v43  ;;  %v621_v0 = vpop.f32.mrb[10].mxu0 }
 0x120   :  { %v622_v1 = vpop.f32.mrb[11].mxu0 }
 0x121   :  { %v662_v2 = vpop.f32.mrb[10].mxu1  ;;  %v485_v3 = vadd.f32 %v661_v62, %v405_v63  ;;  %v623_v4 = vadd.f32 %v622_v1, %v621_v0 }
 0x122   :  { %v663_v5 = vpop.f32.mrb[11].mxu1 }
 0x123   :  { %v664_v6 = vadd.f32 %v663_v5, %v662_v2  ;;  %494 = vst [vmem:[%s1284_s3 + $0x8] sm:$0xff] %v485_v3  ;;  %v410_v7 = vadd.f32 %v623_v4, %v330_v48 }
 0x125   :  { %v490_v8 = vadd.f32 %v664_v6, %v410_v7 }
 0x127   :  { %495 = vst [vmem:[%s1284_s3 + $0x10] sm:$0xff] %v490_v8 }

// kernel: _lambda_.21
= control target key start
LH: loop header
LB: loop body
LE: loop exit
PB: predicated region body
PF: predicated region fallthrough
CT: control target
= control target key end

     0   :  { %s2237_s1 = inlined_call_operand.vmem [shape: f32[2048,128], index: 1, kind: input, shape index: {}]   ;;  %s2238_s0 = inlined_call_operand.vmem [shape: f32[8,2048], index: 0, kind: input, shape index: {}]   ;;  %s2239_s2 = inlined_call_operand.vmem [shape: f32[1,128], index: 2, kind: input, shape index: {}]   ;;  %s2240_s3 = inlined_call_operand.vmem [shape: f32[8,128], index: 3, kind: output, shape index: {}]  }
   0x1   :  { %v46_v0 = vld [vmem:[%s2237_s1 + $0x80] sm:$0xff]  ;;  %v47_v1 = vld [vmem:[%s2237_s1 + $0x88] sm:$0xff]  ;;  %v48_v11 = vld [vmem:[%s2237_s1 + $0x90] sm:$0xff] }
   0x2   :  { %v30_v2 = vld [vmem:[%s2237_s1] sm:$0xff]  ;;  %v1139_v3 = vpack.c.bf16 %v47_v1, %v46_v0  ;;  %v31_v4 = vld [vmem:[%s2237_s1 + $0x8] sm:$0xff]  ;;  %v49_v13 = vld [vmem:[%s2237_s1 + $0x98] sm:$0xff] }
   0x3   :  { %v78_v5 = vld [vmem:[%s2237_s1 + $0x180] sm:$0xff]  ;;  %v79_v6 = vld [vmem:[%s2237_s1 + $0x188] sm:$0xff]  ;;  %v1141_v7 = vpack.c.bf16 %v31_v4, %v30_v2  ;;  %v32_v14 = vld [vmem:[%s2237_s1 + $0x10] sm:$0xff]  ;;  %v1143_v16 = vpack.c.bf16 %v49_v13, %v48_v11 }
   0x4   :  { %v1171_v8 = vpack.c.bf16 %v79_v6, %v78_v5  ;;  %v62_v9 = vld [vmem:[%s2237_s1 + $0x100] sm:$0xff]  ;;  %v63_v10 = vld [vmem:[%s2237_s1 + $0x108] sm:$0xff]  ;;  %1140 = vmatprep.subr.bf16.mxu0 %v1139_v3  ;;  %v33_v15 = vld [vmem:[%s2237_s1 + $0x18] sm:$0xff] }
   0x5   :  { %v1173_v12 = vpack.c.bf16 %v63_v10, %v62_v9  ;;  %1142 = vmatpush3.bf16.msra.mxu0 %v1141_v7  ;;  %v1145_v17 = vpack.c.bf16 %v33_v15, %v32_v14  ;;  %v80_v18 = vld [vmem:[%s2237_s1 + $0x190] sm:$0xff]  ;;  %v81_v19 = vld [vmem:[%s2237_s1 + $0x198] sm:$0xff]  ;;  %v50_v23 = vld [vmem:[%s2237_s1 + $0xa0] sm:$0xff] }
   0x6   :  { %1172 = vmatprep.subr.bf16.mxu1 %v1171_v8  ;;  %v64_v20 = vld [vmem:[%s2237_s1 + $0x110] sm:$0xff]  ;;  %v1175_v21 = vpack.c.bf16 %v81_v19, %v80_v18  ;;  %v65_v22 = vld [vmem:[%s2237_s1 + $0x118] sm:$0xff]  ;;  %v51_v24 = vld [vmem:[%s2237_s1 + $0xa8] sm:$0xff]  ;;  %1144 = vmatprep.subr.bf16.mxu0 %v1143_v16 }
   0x7   :  { %1174 = vmatpush3.bf16.msra.mxu1 %v1173_v12  ;;  %v1177_v25 = vpack.c.bf16 %v65_v22, %v64_v20  ;;  %v1147_v26 = vpack.c.bf16 %v51_v24, %v50_v23  ;;  %v34_v27 = vld [vmem:[%s2237_s1 + $0x20] sm:$0xff]  ;;  %v35_v28 = vld [vmem:[%s2237_s1 + $0x28] sm:$0xff]  ;;  %v52_v35 = vld [vmem:[%s2237_s1 + $0xb0] sm:$0xff] }
   0x8   :  { %v82_v29 = vld [vmem:[%s2237_s1 + $0x1a0] sm:$0xff]  ;;  %1176 = vmatprep.subr.bf16.mxu1 %v1175_v21  ;;  %v83_v30 = vld [vmem:[%s2237_s1 + $0x1a8] sm:$0xff]  ;;  %v1149_v33 = vpack.c.bf16 %v35_v28, %v34_v27  ;;  %v53_v36 = vld [vmem:[%s2237_s1 + $0xb8] sm:$0xff] }
   0x9   :  { %v66_v31 = vld [vmem:[%s2237_s1 + $0x120] sm:$0xff]  ;;  %v67_v32 = vld [vmem:[%s2237_s1 + $0x128] sm:$0xff]  ;;  %1146 = vmatpush3.bf16.msra.mxu0 %v1145_v17  ;;  %v1179_v34 = vpack.c.bf16 %v83_v30, %v82_v29  ;;  %v36_v37 = vld [vmem:[%s2237_s1 + $0x30] sm:$0xff]  ;;  %v1151_v39 = vpack.c.bf16 %v53_v36, %v52_v35 }
   0xa   :  { %1148 = vmatprep.subr.bf16.mxu0 %v1147_v26  ;;  %v1181_v38 = vpack.c.bf16 %v67_v32, %v66_v31  ;;  %v37_v40 = vld [vmem:[%s2237_s1 + $0x38] sm:$0xff]  ;;  %v84_v41 = vld [vmem:[%s2237_s1 + $0x1b0] sm:$0xff]  ;;  %v54_v46 = vld [vmem:[%s2237_s1 + $0xc0] sm:$0xff] }
   0xb   :  { %1178 = vmatpush3.bf16.msra.mxu1 %v1177_v25  ;;  %v85_v42 = vld [vmem:[%s2237_s1 + $0x1b8] sm:$0xff]  ;;  %v68_v44 = vld [vmem:[%s2237_s1 + $0x130] sm:$0xff]  ;;  %v55_v47 = vld [vmem:[%s2237_s1 + $0xc8] sm:$0xff]  ;;  %v1153_v48 = vpack.c.bf16 %v37_v40, %v36_v37 }
   0xc   :  { %1180 = vmatprep.subr.bf16.mxu1 %v1179_v34  ;;  %v1183_v43 = vpack.c.bf16 %v85_v42, %v84_v41  ;;  %v69_v45 = vld [vmem:[%s2237_s1 + $0x138] sm:$0xff]  ;;  %v86_v49 = vld [vmem:[%s2237_s1 + $0x1c0] sm:$0xff]  ;;  %v87_v50 = vld [vmem:[%s2237_s1 + $0x1c8] sm:$0xff]  ;;  %v1155_v52 = vpack.c.bf16 %v55_v47, %v54_v46 }
   0xd   :  { %1150 = vmatpush3.bf16.msra.mxu0 %v1149_v33  ;;  %v1185_v51 = vpack.c.bf16 %v69_v45, %v68_v44  ;;  %v38_v53 = vld [vmem:[%s2237_s1 + $0x40] sm:$0xff]  ;;  %v39_v54 = vld [vmem:[%s2237_s1 + $0x48] sm:$0xff]  ;;  %v1187_v56 = vpack.c.bf16 %v87_v50, %v86_v49  ;;  %v56_v58 = vld [vmem:[%s2237_s1 + $0xd0] sm:$0xff] }
   0xe   :  { %1152 = vmatprep.subr.bf16.mxu0 %v1151_v39  ;;  %v70_v55 = vld [vmem:[%s2237_s1 + $0x140] sm:$0xff]  ;;  %v71_v57 = vld [vmem:[%s2237_s1 + $0x148] sm:$0xff]  ;;  %v57_v59 = vld [vmem:[%s2237_s1 + $0xd8] sm:$0xff]  ;;  %v1157_v62 = vpack.c.bf16 %v39_v54, %v38_v53 }
   0xf   :  { %1182 = vmatpush3.bf16.msra.mxu1 %v1181_v38  ;;  %v88_v60 = vld [vmem:[%s2237_s1 + $0x1d0] sm:$0xff]  ;;  %v89_v61 = vld [vmem:[%s2237_s1 + $0x1d8] sm:$0xff]  ;;  %v1189_v63 = vpack.c.bf16 %v71_v57, %v70_v55  ;;  %v1159_v0 = vpack.c.bf16 %v57_v59, %v56_v58  ;;  %v58_v6 = vld [vmem:[%s2237_s1 + $0xe0] sm:$0xff] }
  0x10   :  { %1184 = vmatprep.subr.bf16.mxu1 %v1183_v43  ;;  %v40_v1 = vld [vmem:[%s2237_s1 + $0x50] sm:$0xff]  ;;  %v41_v2 = vld [vmem:[%s2237_s1 + $0x58] sm:$0xff]  ;;  %v1191_v4 = vpack.c.bf16 %v89_v61, %v88_v60  ;;  %v59_v7 = vld [vmem:[%s2237_s1 + $0xe8] sm:$0xff] }
  0x11   :  { %1154 = vmatpush3.bf16.msra.mxu0 %v1153_v48  ;;  %v72_v3 = vld [vmem:[%s2237_s1 + $0x150] sm:$0xff]  ;;  %v73_v5 = vld [vmem:[%s2237_s1 + $0x158] sm:$0xff]  ;;  %v90_v8 = vld [vmem:[%s2237_s1 + $0x1e0] sm:$0xff]  ;;  %v1161_v10 = vpack.c.bf16 %v41_v2, %v40_v1  ;;  %v1163_v14 = vpack.c.bf16 %v59_v7, %v58_v6 }
  0x12   :  { %1156 = vmatprep.subr.bf16.mxu0 %v1155_v52  ;;  %v91_v9 = vld [vmem:[%s2237_s1 + $0x1e8] sm:$0xff]  ;;  %v42_v11 = vld [vmem:[%s2237_s1 + $0x60] sm:$0xff]  ;;  %v1193_v13 = vpack.c.bf16 %v73_v5, %v72_v3  ;;  %v60_v19 = vld [vmem:[%s2237_s1 + $0xf0] sm:$0xff] }
  0x13   :  { %1186 = vmatpush3.bf16.msra.mxu1 %v1185_v51  ;;  %v43_v12 = vld [vmem:[%s2237_s1 + $0x68] sm:$0xff]  ;;  %v74_v15 = vld [vmem:[%s2237_s1 + $0x160] sm:$0xff]  ;;  %v1195_v18 = vpack.c.bf16 %v91_v9, %v90_v8  ;;  %v61_v20 = vld [vmem:[%s2237_s1 + $0xf8] sm:$0xff] }
  0x14   :  { %1188 = vmatprep.subr.bf16.mxu1 %v1187_v56  ;;  %v75_v16 = vld [vmem:[%s2237_s1 + $0x168] sm:$0xff]  ;;  %v17_v21 = vld [vmem:[%s2238_s0 + $0x18] sm:$0xff]  ;;  %v92_v22 = vld [vmem:[%s2237_s1 + $0x1f0] sm:$0xff]  ;;  %v1165_v24 = vpack.c.bf16 %v43_v12, %v42_v11  ;;  %v1167_v26 = vpack.c.bf16 %v61_v20, %v60_v19 }
  0x15   :  { %1158 = vmatpush3.bf16.msra.mxu0 %v1157_v62  ;;  %v15_v17 = vld [vmem:[%s2238_s0 + $0x8] sm:$0xff]  ;;  %v93_v23 = vld [vmem:[%s2237_s1 + $0x1f8] sm:$0xff]  ;;  %427 = vmatprep.mubr.f32.mxu1 %v17_v21  ;;  %v1197_v25 = vpack.c.bf16 %v75_v16, %v74_v15  ;;  %v44_v27 = vld [vmem:[%s2237_s1 + $0x70] sm:$0xff] }
  0x16   :  { %1160 = vmatprep.subr.bf16.mxu0 %v1159_v0  ;;  %357 = vmatprep.mubr.f32.mxu0 %v15_v17  ;;  %v45_v28 = vld [vmem:[%s2237_s1 + $0x78] sm:$0xff]  ;;  %v76_v29 = vld [vmem:[%s2237_s1 + $0x170] sm:$0xff]  ;;  %v1199_v30 = vpack.c.bf16 %v93_v23, %v92_v22  ;;  %v110_v32 = vld [vmem:[%s2237_s1 + $0x280] sm:$0xff] }
  0x17   :  { %1190 = vmatpush3.bf16.msra.mxu1 %v1189_v63  ;;  %v77_v31 = vld [vmem:[%s2237_s1 + $0x178] sm:$0xff]  ;;  %v111_v33 = vld [vmem:[%s2237_s1 + $0x288] sm:$0xff]  ;;  %v142_v34 = vld [vmem:[%s2237_s1 + $0x380] sm:$0xff]  ;;  %v1169_v36 = vpack.c.bf16 %v45_v28, %v44_v27 }
  0x18   :  { %1192 = vmatprep.subr.bf16.mxu1 %v1191_v4  ;;  %v143_v35 = vld [vmem:[%s2237_s1 + $0x388] sm:$0xff]  ;;  %v1201_v37 = vpack.c.bf16 %v77_v31, %v76_v29  ;;  %v1203_v38 = vpack.c.bf16 %v111_v33, %v110_v32  ;;  %v94_v39 = vld [vmem:[%s2237_s1 + $0x200] sm:$0xff]  ;;  %v112_v44 = vld [vmem:[%s2237_s1 + $0x290] sm:$0xff] }
  0x19   :  { %1162 = vmatpush3.bf16.msra.mxu0 %v1161_v10  ;;  %v95_v40 = vld [vmem:[%s2237_s1 + $0x208] sm:$0xff]  ;;  %v126_v41 = vld [vmem:[%s2237_s1 + $0x300] sm:$0xff]  ;;  %v1235_v42 = vpack.c.bf16 %v143_v35, %v142_v34  ;;  %v113_v45 = vld [vmem:[%s2237_s1 + $0x298] sm:$0xff] }
  0x1a   :  { %1164 = vmatprep.subr.bf16.mxu0 %v1163_v14  ;;  %v127_v43 = vld [vmem:[%s2237_s1 + $0x308] sm:$0xff]  ;;  %v144_v46 = vld [vmem:[%s2237_s1 + $0x390] sm:$0xff]  ;;  %v145_v47 = vld [vmem:[%s2237_s1 + $0x398] sm:$0xff]  ;;  %v1205_v49 = vpack.c.bf16 %v95_v40, %v94_v39  ;;  %v1207_v52 = vpack.c.bf16 %v113_v45, %v112_v44 }
  0x1b   :  { %1194 = vmatpush3.bf16.msra.mxu1 %v1193_v13  ;;  %v14_v48 = vld [vmem:[%s2238_s0] sm:$0xff]  ;;  %v16_v50 = vld [vmem:[%s2238_s0 + $0x10] sm:$0xff]  ;;  %v1237_v51 = vpack.c.bf16 %v127_v43, %v126_v41  ;;  %v97_v54 = vld [vmem:[%s2237_s1 + $0x218] sm:$0xff]  ;;  %v1239_v56 = vpack.c.bf16 %v145_v47, %v144_v46 }
  0x1c   :  { %1196 = vmatprep.subr.bf16.mxu1 %v1195_v18  ;;  %v96_v53 = vld [vmem:[%s2237_s1 + $0x210] sm:$0xff]  ;;  %v129_v57 = vld [vmem:[%s2237_s1 + $0x318] sm:$0xff]  ;;  %v114_v58 = vld [vmem:[%s2237_s1 + $0x2a0] sm:$0xff] }
  0x1d   :  { %1166 = vmatpush3.bf16.msra.mxu0 %v1165_v24  ;;  %v128_v55 = vld [vmem:[%s2237_s1 + $0x310] sm:$0xff]  ;;  %v115_v59 = vld [vmem:[%s2237_s1 + $0x2a8] sm:$0xff]  ;;  %v146_v60 = vld [vmem:[%s2237_s1 + $0x3a0] sm:$0xff]  ;;  %v1209_v62 = vpack.c.bf16 %v97_v54, %v96_v53 }
  0x1e   :  { %1168 = vmatprep.subr.bf16.mxu0 %v1167_v26  ;;  %v147_v61 = vld [vmem:[%s2237_s1 + $0x3a8] sm:$0xff]  ;;  %v1241_v63 = vpack.c.bf16 %v129_v57, %v128_v55  ;;  %v1211_v0 = vpack.c.bf16 %v115_v59, %v114_v58  ;;  %v98_v1 = vld [vmem:[%s2237_s1 + $0x220] sm:$0xff]  ;;  %v116_v6 = vld [vmem:[%s2237_s1 + $0x2b0] sm:$0xff] }
  0x1f   :  { %1198 = vmatpush3.bf16.msra.mxu1 %v1197_v25  ;;  %v99_v2 = vld [vmem:[%s2237_s1 + $0x228] sm:$0xff]  ;;  %v130_v3 = vld [vmem:[%s2237_s1 + $0x320] sm:$0xff]  ;;  %v1243_v4 = vpack.c.bf16 %v147_v61, %v146_v60  ;;  %v117_v7 = vld [vmem:[%s2237_s1 + $0x2b8] sm:$0xff] }
  0x20   :  { %1200 = vmatprep.subr.bf16.mxu1 %v1199_v30  ;;  %v131_v5 = vld [vmem:[%s2237_s1 + $0x328] sm:$0xff]  ;;  %v148_v8 = vld [vmem:[%s2237_s1 + $0x3b0] sm:$0xff]  ;;  %v149_v9 = vld [vmem:[%s2237_s1 + $0x3b8] sm:$0xff]  ;;  %v1213_v10 = vpack.c.bf16 %v99_v2, %v98_v1  ;;  %v1215_v12 = vpack.c.bf16 %v117_v7, %v116_v6 }
  0x21   :  { %1170 = vmatpush3.bf16.msra.mxu0 %v1169_v36  ;;  %v1245_v11 = vpack.c.bf16 %v131_v5, %v130_v3  ;;  %v100_v13 = vld [vmem:[%s2237_s1 + $0x230] sm:$0xff]  ;;  %v101_v14 = vld [vmem:[%s2237_s1 + $0x238] sm:$0xff]  ;;  %v1247_v16 = vpack.c.bf16 %v149_v9, %v148_v8  ;;  %v118_v18 = vld [vmem:[%s2237_s1 + $0x2c0] sm:$0xff] }
  0x22   :  { %1204 = vmatprep.subr.bf16.mxu0 %v1203_v38  ;;  %v132_v15 = vld [vmem:[%s2237_s1 + $0x330] sm:$0xff]  ;;  %v133_v17 = vld [vmem:[%s2237_s1 + $0x338] sm:$0xff]  ;;  %v119_v19 = vld [vmem:[%s2237_s1 + $0x2c8] sm:$0xff]  ;;  %v1217_v22 = vpack.c.bf16 %v101_v14, %v100_v13 }
  0x23   :  { %1202 = vmatpush3.bf16.msra.mxu1 %v1201_v37  ;;  %v150_v20 = vld [vmem:[%s2237_s1 + $0x3c0] sm:$0xff]  ;;  %v151_v21 = vld [vmem:[%s2237_s1 + $0x3c8] sm:$0xff]  ;;  %v1249_v25 = vpack.c.bf16 %v133_v17, %v132_v15  ;;  %v1219_v26 = vpack.c.bf16 %v119_v19, %v118_v18  ;;  %v21_v29 = vld [vmem:[%s2238_s0 + $0x38] sm:$0xff] }
  0x24   :  { %1236 = vmatprep.subr.bf16.mxu1 %v1235_v42  ;;  %358 = vmatmul.mubr.f32.vlgmr.msra.gmra.mrb[0].mxu0 %v14_v48  ;;  %v102_v23 = vld [vmem:[%s2237_s1 + $0x240] sm:$0xff]  ;;  %v19_v24 = vld [vmem:[%s2238_s0 + $0x28] sm:$0xff]  ;;  %v1251_v30 = vpack.c.bf16 %v151_v21, %v150_v20  ;;  %v120_v32 = vld [vmem:[%s2237_s1 + $0x2d0] sm:$0xff] }
  0x25   :  { %1206 = vmatpush3.bf16.msra.mxu0 %v1205_v49  ;;  %v103_v27 = vld [vmem:[%s2237_s1 + $0x248] sm:$0xff]  ;;  %v134_v28 = vld [vmem:[%s2237_s1 + $0x340] sm:$0xff]  ;;  %v121_v33 = vld [vmem:[%s2237_s1 + $0x2d8] sm:$0xff]  ;;  %497 = vmatprep.mubr.f32.mxu0 %v19_v24 }
  0x26   :  { %428 = vmatmul.mubr.f32.vlgmr.msra.gmra.mrb[0].mxu1 %v16_v50  ;;  %1208 = vmatprep.subr.bf16.mxu0 %v1207_v52  ;;  %v135_v31 = vld [vmem:[%s2237_s1 + $0x348] sm:$0xff]  ;;  %v152_v34 = vld [vmem:[%s2237_s1 + $0x3d0] sm:$0xff]  ;;  %v153_v35 = vld [vmem:[%s2237_s1 + $0x3d8] sm:$0xff]  ;;  %v1221_v36 = vpack.c.bf16 %v103_v27, %v102_v23  ;;  %v1223_v38 = vpack.c.bf16 %v121_v33, %v120_v32 }
  0x27   :  { %1238 = vmatpush3.bf16.msra.mxu1 %v1237_v51  ;;  %567 = vmatprep.mubr.f32.mxu1 %v21_v29  ;;  %v1253_v37 = vpack.c.bf16 %v135_v31, %v134_v28  ;;  %v104_v39 = vld [vmem:[%s2237_s1 + $0x250] sm:$0xff]  ;;  %v105_v40 = vld [vmem:[%s2237_s1 + $0x258] sm:$0xff]  ;;  %v1255_v42 = vpack.c.bf16 %v153_v35, %v152_v34  ;;  %v122_v44 = vld [vmem:[%s2237_s1 + $0x2e0] sm:$0xff] }
  0x28   :  { %1240 = vmatprep.subr.bf16.mxu1 %v1239_v56  ;;  %v136_v41 = vld [vmem:[%s2237_s1 + $0x350] sm:$0xff]  ;;  %v137_v43 = vld [vmem:[%s2237_s1 + $0x358] sm:$0xff]  ;;  %v123_v45 = vld [vmem:[%s2237_s1 + $0x2e8] sm:$0xff]  ;;  %v1225_v48 = vpack.c.bf16 %v105_v40, %v104_v39 }
  0x29   :  { %1210 = vmatpush3.bf16.msra.mxu0 %v1209_v62  ;;  %v154_v46 = vld [vmem:[%s2237_s1 + $0x3e0] sm:$0xff]  ;;  %v155_v47 = vld [vmem:[%s2237_s1 + $0x3e8] sm:$0xff]  ;;  %v1257_v49 = vpack.c.bf16 %v137_v43, %v136_v41  ;;  %v1227_v50 = vpack.c.bf16 %v123_v45, %v122_v44  ;;  %v124_v56 = vld [vmem:[%s2237_s1 + $0x2f0] sm:$0xff] }
  0x2a   :  { %1212 = vmatprep.subr.bf16.mxu0 %v1211_v0  ;;  %v106_v51 = vld [vmem:[%s2237_s1 + $0x260] sm:$0xff]  ;;  %v107_v52 = vld [vmem:[%s2237_s1 + $0x268] sm:$0xff]  ;;  %v1259_v54 = vpack.c.bf16 %v155_v47, %v154_v46  ;;  %v125_v57 = vld [vmem:[%s2237_s1 + $0x2f8] sm:$0xff] }
  0x2b   :  { %1242 = vmatpush3.bf16.msra.mxu1 %v1241_v63  ;;  %v138_v53 = vld [vmem:[%s2237_s1 + $0x360] sm:$0xff]  ;;  %v139_v55 = vld [vmem:[%s2237_s1 + $0x368] sm:$0xff]  ;;  %v156_v58 = vld [vmem:[%s2237_s1 + $0x3f0] sm:$0xff]  ;;  %v1229_v60 = vpack.c.bf16 %v107_v52, %v106_v51  ;;  %v1231_v62 = vpack.c.bf16 %v125_v57, %v124_v56 }
  0x2c   :  { %1244 = vmatprep.subr.bf16.mxu1 %v1243_v4  ;;  %v157_v59 = vld [vmem:[%s2237_s1 + $0x3f8] sm:$0xff]  ;;  %v1261_v61 = vpack.c.bf16 %v139_v55, %v138_v53  ;;  %v108_v63 = vld [vmem:[%s2237_s1 + $0x270] sm:$0xff]  ;;  %v174_v4 = vld [vmem:[%s2237_s1 + $0x480] sm:$0xff] }
  0x2d   :  { %1214 = vmatpush3.bf16.msra.mxu0 %v1213_v10  ;;  %v109_v0 = vld [vmem:[%s2237_s1 + $0x278] sm:$0xff]  ;;  %v140_v1 = vld [vmem:[%s2237_s1 + $0x370] sm:$0xff]  ;;  %v1263_v2 = vpack.c.bf16 %v157_v59, %v156_v58  ;;  %v175_v5 = vld [vmem:[%s2237_s1 + $0x488] sm:$0xff] }
  0x2e   :  { %1216 = vmatprep.subr.bf16.mxu0 %v1215_v12  ;;  %v141_v3 = vld [vmem:[%s2237_s1 + $0x378] sm:$0xff]  ;;  %v206_v6 = vld [vmem:[%s2237_s1 + $0x580] sm:$0xff]  ;;  %v207_v7 = vld [vmem:[%s2237_s1 + $0x588] sm:$0xff]  ;;  %v1233_v8 = vpack.c.bf16 %v109_v0, %v108_v63  ;;  %v1267_v10 = vpack.c.bf16 %v175_v5, %v174_v4 }
  0x2f   :  { %1246 = vmatpush3.bf16.msra.mxu1 %v1245_v11  ;;  %v1265_v9 = vpack.c.bf16 %v141_v3, %v140_v1  ;;  %v158_v11 = vld [vmem:[%s2237_s1 + $0x400] sm:$0xff]  ;;  %v159_v12 = vld [vmem:[%s2237_s1 + $0x408] sm:$0xff]  ;;  %v1299_v14 = vpack.c.bf16 %v207_v7, %v206_v6  ;;  %v177_v17 = vld [vmem:[%s2237_s1 + $0x498] sm:$0xff] }
  0x30   :  { %1248 = vmatprep.subr.bf16.mxu1 %v1247_v16  ;;  %v190_v13 = vld [vmem:[%s2237_s1 + $0x500] sm:$0xff]  ;;  %v191_v15 = vld [vmem:[%s2237_s1 + $0x508] sm:$0xff]  ;;  %v176_v16 = vld [vmem:[%s2237_s1 + $0x490] sm:$0xff]  ;;  %v1269_v21 = vpack.c.bf16 %v159_v12, %v158_v11 }
  0x31   :  { %1218 = vmatpush3.bf16.msra.mxu0 %v1217_v22  ;;  %v208_v18 = vld [vmem:[%s2237_s1 + $0x590] sm:$0xff]  ;;  %v209_v19 = vld [vmem:[%s2237_s1 + $0x598] sm:$0xff]  ;;  %v18_v20 = vld [vmem:[%s2238_s0 + $0x20] sm:$0xff]  ;;  %v1301_v23 = vpack.c.bf16 %v191_v15, %v190_v13  ;;  %v1271_v24 = vpack.c.bf16 %v177_v17, %v176_v16 }
  0x32   :  { %1220 = vmatprep.subr.bf16.mxu0 %v1219_v26  ;;  %v20_v22 = vld [vmem:[%s2238_s0 + $0x30] sm:$0xff]  ;;  %v161_v26 = vld [vmem:[%s2237_s1 + $0x418] sm:$0xff]  ;;  %v1303_v28 = vpack.c.bf16 %v209_v19, %v208_v18  ;;  %v179_v31 = vld [vmem:[%s2237_s1 + $0x4a8] sm:$0xff] }
  0x33   :  { %1250 = vmatpush3.bf16.msra.mxu1 %v1249_v25  ;;  %v160_v25 = vld [vmem:[%s2237_s1 + $0x410] sm:$0xff]  ;;  %v193_v29 = vld [vmem:[%s2237_s1 + $0x518] sm:$0xff]  ;;  %v210_v32 = vld [vmem:[%s2237_s1 + $0x5a0] sm:$0xff] }
  0x34   :  { %1252 = vmatprep.subr.bf16.mxu1 %v1251_v30  ;;  %v192_v27 = vld [vmem:[%s2237_s1 + $0x510] sm:$0xff]  ;;  %v178_v30 = vld [vmem:[%s2237_s1 + $0x4a0] sm:$0xff]  ;;  %v211_v33 = vld [vmem:[%s2237_s1 + $0x5a8] sm:$0xff]  ;;  %v1273_v35 = vpack.c.bf16 %v161_v26, %v160_v25 }
  0x35   :  { %1222 = vmatpush3.bf16.msra.mxu0 %v1221_v36  ;;  %v23_v34 = vld [vmem:[%s2238_s0 + $0x48] sm:$0xff]  ;;  %v25_v36 = vld [vmem:[%s2238_s0 + $0x58] sm:$0xff]  ;;  %v162_v39 = vld [vmem:[%s2237_s1 + $0x420] sm:$0xff] }
  0x36   :  { %1224 = vmatprep.subr.bf16.mxu0 %v1223_v38  ;;  %v1275_v38 = vpack.c.bf16 %v179_v31, %v178_v30  ;;  %v163_v40 = vld [vmem:[%s2237_s1 + $0x428] sm:$0xff]  ;;  %v194_v41 = vld [vmem:[%s2237_s1 + $0x520] sm:$0xff]  ;;  %v180_v44 = vld [vmem:[%s2237_s1 + $0x4b0] sm:$0xff] }
  0x37   :  { %1254 = vmatpush3.bf16.msra.mxu1 %v1253_v37  ;;  %v1305_v37 = vpack.c.bf16 %v193_v29, %v192_v27  ;;  %v195_v43 = vld [vmem:[%s2237_s1 + $0x528] sm:$0xff]  ;;  %v181_v45 = vld [vmem:[%s2237_s1 + $0x4b8] sm:$0xff]  ;;  %v212_v46 = vld [vmem:[%s2237_s1 + $0x5b0] sm:$0xff] }
  0x38   :  { %1256 = vmatprep.subr.bf16.mxu1 %v1255_v42  ;;  %v1307_v42 = vpack.c.bf16 %v211_v33, %v210_v32  ;;  %v213_v47 = vld [vmem:[%s2237_s1 + $0x5b8] sm:$0xff]  ;;  %v164_v51 = vld [vmem:[%s2237_s1 + $0x430] sm:$0xff]  ;;  %v182_v56 = vld [vmem:[%s2237_s1 + $0x4c0] sm:$0xff] }
  0x39   :  { %1226 = vmatpush3.bf16.msra.mxu0 %v1225_v48  ;;  %v1277_v48 = vpack.c.bf16 %v163_v40, %v162_v39  ;;  %v165_v52 = vld [vmem:[%s2237_s1 + $0x438] sm:$0xff]  ;;  %v196_v53 = vld [vmem:[%s2237_s1 + $0x530] sm:$0xff]  ;;  %v183_v57 = vld [vmem:[%s2237_s1 + $0x4c8] sm:$0xff] }
  0x3a   :  { %1228 = vmatprep.subr.bf16.mxu0 %v1227_v50  ;;  %v1279_v50 = vpack.c.bf16 %v181_v45, %v180_v44  ;;  %v197_v55 = vld [vmem:[%s2237_s1 + $0x538] sm:$0xff]  ;;  %v214_v58 = vld [vmem:[%s2237_s1 + $0x5c0] sm:$0xff]  ;;  %v215_v59 = vld [vmem:[%s2237_s1 + $0x5c8] sm:$0xff] }
  0x3b   :  { %1258 = vmatpush3.bf16.msra.mxu1 %v1257_v49  ;;  %v1309_v49 = vpack.c.bf16 %v195_v43, %v194_v41  ;;  %v166_v63 = vld [vmem:[%s2237_s1 + $0x440] sm:$0xff]  ;;  %v167_v0 = vld [vmem:[%s2237_s1 + $0x448] sm:$0xff]  ;;  %v184_v4 = vld [vmem:[%s2237_s1 + $0x4d0] sm:$0xff] }
  0x3c   :  { %1260 = vmatprep.subr.bf16.mxu1 %v1259_v54  ;;  %v1311_v54 = vpack.c.bf16 %v213_v47, %v212_v46  ;;  %v198_v1 = vld [vmem:[%s2237_s1 + $0x540] sm:$0xff]  ;;  %v199_v3 = vld [vmem:[%s2237_s1 + $0x548] sm:$0xff]  ;;  %v185_v5 = vld [vmem:[%s2237_s1 + $0x4d8] sm:$0xff] }
  0x3d   :  { %1230 = vmatpush3.bf16.msra.mxu0 %v1229_v60  ;;  %v1281_v60 = vpack.c.bf16 %v165_v52, %v164_v51  ;;  %v216_v6 = vld [vmem:[%s2237_s1 + $0x5d0] sm:$0xff]  ;;  %v217_v7 = vld [vmem:[%s2237_s1 + $0x5d8] sm:$0xff]  ;;  %v186_v16 = vld [vmem:[%s2237_s1 + $0x4e0] sm:$0xff] }
  0x3e   :  { %1232 = vmatprep.subr.bf16.mxu0 %v1231_v62  ;;  %v1283_v62 = vpack.c.bf16 %v183_v57, %v182_v56  ;;  %v168_v11 = vld [vmem:[%s2237_s1 + $0x450] sm:$0xff]  ;;  %v169_v12 = vld [vmem:[%s2237_s1 + $0x458] sm:$0xff]  ;;  %v187_v17 = vld [vmem:[%s2237_s1 + $0x4e8] sm:$0xff] }
  0x3f   :  { %1262 = vmatpush3.bf16.msra.mxu1 %v1261_v61  ;;  %v1313_v61 = vpack.c.bf16 %v197_v55, %v196_v53  ;;  %v200_v13 = vld [vmem:[%s2237_s1 + $0x550] sm:$0xff]  ;;  %v201_v15 = vld [vmem:[%s2237_s1 + $0x558] sm:$0xff]  ;;  %v218_v18 = vld [vmem:[%s2237_s1 + $0x5e0] sm:$0xff] }
  0x40   :  { %1264 = vmatprep.subr.bf16.mxu1 %v1263_v2  ;;  %v1315_v2 = vpack.c.bf16 %v215_v59, %v214_v58  ;;  %v219_v19 = vld [vmem:[%s2237_s1 + $0x5e8] sm:$0xff]  ;;  %v202_v25 = vld [vmem:[%s2237_s1 + $0x560] sm:$0xff]  ;;  %v189_v29 = vld [vmem:[%s2237_s1 + $0x4f8] sm:$0xff] }
  0x41   :  { %1234 = vmatpush3.bf16.msra.mxu0 %v1233_v8  ;;  %v1285_v8 = vpack.c.bf16 %v167_v0, %v166_v63  ;;  %v1323_v26 = vpack.c.bf16 %v219_v19, %v218_v18  ;;  %v203_v27 = vld [vmem:[%s2237_s1 + $0x568] sm:$0xff]  ;;  %v220_v30 = vld [vmem:[%s2237_s1 + $0x5f0] sm:$0xff]  ;;  %v221_v31 = vld [vmem:[%s2237_s1 + $0x5f8] sm:$0xff] }
  0x42   :  { %1268 = vmatprep.subr.bf16.mxu0 %v1267_v10  ;;  %v1287_v10 = vpack.c.bf16 %v185_v5, %v184_v4  ;;  %v1325_v33 = vpack.c.bf16 %v203_v27, %v202_v25  ;;  %v205_v39 = vld [vmem:[%s2237_s1 + $0x578] sm:$0xff]  ;;  %v238_v40 = vld [vmem:[%s2237_s1 + $0x680] sm:$0xff]  ;;  %v239_v41 = vld [vmem:[%s2237_s1 + $0x688] sm:$0xff] }
  0x43   :  { %1266 = vmatpush3.bf16.msra.mxu1 %v1265_v9  ;;  %v1317_v9 = vpack.c.bf16 %v199_v3, %v198_v1  ;;  %v271_v43 = vld [vmem:[%s2237_s1 + $0x788] sm:$0xff]  ;;  %v1331_v46 = vpack.c.bf16 %v239_v41, %v238_v40  ;;  %v222_v47 = vld [vmem:[%s2237_s1 + $0x600] sm:$0xff]  ;;  %v240_v52 = vld [vmem:[%s2237_s1 + $0x690] sm:$0xff] }
  0x44   :  { %1300 = vmatprep.subr.bf16.mxu1 %v1299_v14  ;;  %498 = vmatmul.mubr.f32.vlgmr.msra.gmra.mrb[2].mxu0 %v18_v20  ;;  %v1319_v14 = vpack.c.bf16 %v217_v7, %v216_v6  ;;  %v1289_v20 = vpack.c.bf16 %v169_v12, %v168_v11  ;;  %v255_v51 = vld [vmem:[%s2237_s1 + $0x708] sm:$0xff]  ;;  %v241_v53 = vld [vmem:[%s2237_s1 + $0x698] sm:$0xff]  ;;  %v22_v56 = vld [vmem:[%s2238_s0 + $0x40] sm:$0xff] }
  0x45   :  { %1270 = vmatpush3.bf16.msra.mxu0 %v1269_v21  ;;  %637 = vmatprep.mubr.f32.mxu0 %v23_v34  ;;  %v1321_v21 = vpack.c.bf16 %v201_v15, %v200_v13  ;;  %v273_v55 = vld [vmem:[%s2237_s1 + $0x798] sm:$0xff]  ;;  %v24_v58 = vld [vmem:[%s2238_s0 + $0x50] sm:$0xff]  ;;  %v243_v3 = vld [vmem:[%s2237_s1 + $0x6a8] sm:$0xff] }
  0x46   :  { %568 = vmatmul.mubr.f32.vlgmr.msra.gmra.mrb[2].mxu1 %v20_v22  ;;  %1272 = vmatprep.subr.bf16.mxu0 %v1271_v24  ;;  %v1291_v22 = vpack.c.bf16 %v187_v17, %v186_v16  ;;  %v171_v24 = vld [vmem:[%s2237_s1 + $0x468] sm:$0xff]  ;;  %v256_v63 = vld [vmem:[%s2237_s1 + $0x710] sm:$0xff]  ;;  %v257_v1 = vld [vmem:[%s2237_s1 + $0x718] sm:$0xff] }
  0x47   :  { %1302 = vmatpush3.bf16.msra.mxu1 %v1301_v23  ;;  %707 = vmatprep.mubr.f32.mxu1 %v25_v36  ;;  %v170_v23 = vld [vmem:[%s2237_s1 + $0x460] sm:$0xff]  ;;  %v173_v36 = vld [vmem:[%s2237_s1 + $0x478] sm:$0xff]  ;;  %v275_v5 = vld [vmem:[%s2237_s1 + $0x7a8] sm:$0xff] }
  0x48   :  { %1304 = vmatprep.subr.bf16.mxu1 %v1303_v28  ;;  %v188_v28 = vld [vmem:[%s2237_s1 + $0x4f0] sm:$0xff]  ;;  %v1293_v32 = vpack.c.bf16 %v171_v24, %v170_v23  ;;  %v274_v4 = vld [vmem:[%s2237_s1 + $0x7a0] sm:$0xff]  ;;  %v27_v6 = vld [vmem:[%s2238_s0 + $0x68] sm:$0xff] }
  0x49   :  { %1274 = vmatpush3.bf16.msra.mxu0 %v1273_v35  ;;  %v1295_v34 = vpack.c.bf16 %v189_v29, %v188_v28  ;;  %v172_v35 = vld [vmem:[%s2237_s1 + $0x470] sm:$0xff]  ;;  %v226_v11 = vld [vmem:[%s2237_s1 + $0x620] sm:$0xff]  ;;  %v227_v12 = vld [vmem:[%s2237_s1 + $0x628] sm:$0xff] }
  0x4a   :  { %1276 = vmatprep.subr.bf16.mxu0 %v1275_v38  ;;  %v1327_v38 = vpack.c.bf16 %v221_v31, %v220_v30  ;;  %v1297_v44 = vpack.c.bf16 %v173_v36, %v172_v35  ;;  %v258_v13 = vld [vmem:[%s2237_s1 + $0x720] sm:$0xff]  ;;  %v259_v15 = vld [vmem:[%s2237_s1 + $0x728] sm:$0xff]  ;;  %v244_v16 = vld [vmem:[%s2237_s1 + $0x6b0] sm:$0xff] }
  0x4b   :  { %1306 = vmatpush3.bf16.msra.mxu1 %v1305_v37  ;;  %v204_v37 = vld [vmem:[%s2237_s1 + $0x570] sm:$0xff]  ;;  %v245_v17 = vld [vmem:[%s2237_s1 + $0x6b8] sm:$0xff]  ;;  %v246_v28 = vld [vmem:[%s2237_s1 + $0x6c0] sm:$0xff] }
  0x4c   :  { %1308 = vmatprep.subr.bf16.mxu1 %v1307_v42  ;;  %v270_v42 = vld [vmem:[%s2237_s1 + $0x780] sm:$0xff]  ;;  %v1329_v45 = vpack.c.bf16 %v205_v39, %v204_v37  ;;  %v276_v18 = vld [vmem:[%s2237_s1 + $0x7b0] sm:$0xff]  ;;  %v277_v19 = vld [vmem:[%s2237_s1 + $0x7b8] sm:$0xff] }
  0x4d   :  { %1278 = vmatpush3.bf16.msra.mxu0 %v1277_v48  ;;  %v223_v48 = vld [vmem:[%s2237_s1 + $0x608] sm:$0xff]  ;;  %v228_v23 = vld [vmem:[%s2237_s1 + $0x630] sm:$0xff]  ;;  %v229_v24 = vld [vmem:[%s2237_s1 + $0x638] sm:$0xff] }
  0x4e   :  { %1280 = vmatprep.subr.bf16.mxu0 %v1279_v50  ;;  %v1363_v50 = vpack.c.bf16 %v271_v43, %v270_v42  ;;  %v1333_v57 = vpack.c.bf16 %v223_v48, %v222_v47  ;;  %v260_v25 = vld [vmem:[%s2237_s1 + $0x730] sm:$0xff]  ;;  %v261_v27 = vld [vmem:[%s2237_s1 + $0x738] sm:$0xff]  ;;  %v247_v29 = vld [vmem:[%s2237_s1 + $0x6c8] sm:$0xff] }
  0x4f   :  { %1310 = vmatpush3.bf16.msra.mxu1 %v1309_v49  ;;  %v254_v49 = vld [vmem:[%s2237_s1 + $0x700] sm:$0xff]  ;;  %v279_v31 = vld [vmem:[%s2237_s1 + $0x7c8] sm:$0xff]  ;;  %v248_v40 = vld [vmem:[%s2237_s1 + $0x6d0] sm:$0xff] }
  0x50   :  { %1312 = vmatprep.subr.bf16.mxu1 %v1311_v54  ;;  %v272_v54 = vld [vmem:[%s2237_s1 + $0x790] sm:$0xff]  ;;  %v1365_v59 = vpack.c.bf16 %v255_v51, %v254_v49  ;;  %v278_v30 = vld [vmem:[%s2237_s1 + $0x7c0] sm:$0xff]  ;;  %v231_v36 = vld [vmem:[%s2237_s1 + $0x648] sm:$0xff] }
  0x51   :  { %1282 = vmatpush3.bf16.msra.mxu0 %v1281_v60  ;;  %v1335_v60 = vpack.c.bf16 %v241_v53, %v240_v52  ;;  %v1367_v0 = vpack.c.bf16 %v273_v55, %v272_v54  ;;  %v230_v35 = vld [vmem:[%s2237_s1 + $0x640] sm:$0xff]  ;;  %v263_v39 = vld [vmem:[%s2237_s1 + $0x748] sm:$0xff]  ;;  %v249_v41 = vld [vmem:[%s2237_s1 + $0x6d8] sm:$0xff] }
  0x52   :  { %1284 = vmatprep.subr.bf16.mxu0 %v1283_v62  ;;  %v225_v62 = vld [vmem:[%s2237_s1 + $0x618] sm:$0xff]  ;;  %v262_v37 = vld [vmem:[%s2237_s1 + $0x740] sm:$0xff]  ;;  %v280_v42 = vld [vmem:[%s2237_s1 + $0x7d0] sm:$0xff] }
  0x53   :  { %1314 = vmatpush3.bf16.msra.mxu1 %v1313_v61  ;;  %v224_v61 = vld [vmem:[%s2237_s1 + $0x610] sm:$0xff]  ;;  %v281_v43 = vld [vmem:[%s2237_s1 + $0x7d8] sm:$0xff]  ;;  %v250_v52 = vld [vmem:[%s2237_s1 + $0x6e0] sm:$0xff] }
  0x54   :  { %1316 = vmatprep.subr.bf16.mxu1 %v1315_v2  ;;  %v242_v2 = vld [vmem:[%s2237_s1 + $0x6a0] sm:$0xff]  ;;  %v1337_v7 = vpack.c.bf16 %v225_v62, %v224_v61  ;;  %v232_v47 = vld [vmem:[%s2237_s1 + $0x650] sm:$0xff]  ;;  %v233_v48 = vld [vmem:[%s2237_s1 + $0x658] sm:$0xff] }
  0x55   :  { %1286 = vmatpush3.bf16.msra.mxu0 %v1285_v8  ;;  %v29_v8 = vld [vmem:[%s2238_s0 + $0x78] sm:$0xff]  ;;  %v264_v49 = vld [vmem:[%s2237_s1 + $0x750] sm:$0xff]  ;;  %v251_v53 = vld [vmem:[%s2237_s1 + $0x6e8] sm:$0xff] }
  0x56   :  { %1288 = vmatprep.subr.bf16.mxu0 %v1287_v10  ;;  %v1339_v10 = vpack.c.bf16 %v243_v3, %v242_v2  ;;  %v265_v51 = vld [vmem:[%s2237_s1 + $0x758] sm:$0xff]  ;;  %v282_v54 = vld [vmem:[%s2237_s1 + $0x7e0] sm:$0xff]  ;;  %v283_v55 = vld [vmem:[%s2237_s1 + $0x7e8] sm:$0xff] }
  0x57   :  { %1318 = vmatpush3.bf16.msra.mxu1 %v1317_v9  ;;  %v1369_v9 = vpack.c.bf16 %v257_v1, %v256_v63  ;;  %v266_v61 = vld [vmem:[%s2237_s1 + $0x760] sm:$0xff]  ;;  %v1387_v62 = vpack.c.bf16 %v283_v55, %v282_v54  ;;  %v267_v63 = vld [vmem:[%s2237_s1 + $0x768] sm:$0xff]  ;;  %v253_v1 = vld [vmem:[%s2237_s1 + $0x6f8] sm:$0xff] }
  0x58   :  { %1320 = vmatprep.subr.bf16.mxu1 %v1319_v14  ;;  %v1371_v14 = vpack.c.bf16 %v275_v5, %v274_v4  ;;  %v284_v2 = vld [vmem:[%s2237_s1 + $0x7f0] sm:$0xff]  ;;  %v285_v3 = vld [vmem:[%s2237_s1 + $0x7f8] sm:$0xff]  ;;  %v1389_v5 = vpack.c.bf16 %v267_v63, %v266_v61 }
  0x59   :  { %1290 = vmatpush3.bf16.msra.mxu0 %v1289_v20  ;;  %v1341_v20 = vpack.c.bf16 %v227_v12, %v226_v11  ;;  %v269_v11 = vld [vmem:[%s2237_s1 + $0x778] sm:$0xff] }
  0x5a   :  { %1292 = vmatprep.subr.bf16.mxu0 %v1291_v22  ;;  %v1343_v22 = vpack.c.bf16 %v245_v17, %v244_v16  ;;  %v858_v17 = vld [vmem:[%s2239_s2] ss:$0 sm:$0xff] }
  0x5b   :  { %1322 = vmatpush3.bf16.msra.mxu1 %v1321_v21  ;;  %v1373_v21 = vpack.c.bf16 %v259_v15, %v258_v13  ;;  %v28_v15 = vld [vmem:[%s2238_s0 + $0x70] sm:$0xff] }
  0x5c   :  { %1324 = vmatprep.subr.bf16.mxu1 %v1323_v26  ;;  %v1375_v26 = vpack.c.bf16 %v277_v19, %v276_v18 }
  0x5d   :  { %1294 = vmatpush3.bf16.msra.mxu0 %v1293_v32  ;;  %v1345_v32 = vpack.c.bf16 %v229_v24, %v228_v23 }
  0x5e   :  { %1296 = vmatprep.subr.bf16.mxu0 %v1295_v34  ;;  %v1347_v34 = vpack.c.bf16 %v247_v29, %v246_v28 }
  0x5f   :  { %1326 = vmatpush3.bf16.msra.mxu1 %v1325_v33  ;;  %v1377_v33 = vpack.c.bf16 %v261_v27, %v260_v25 }
  0x60   :  { %1328 = vmatprep.subr.bf16.mxu1 %v1327_v38  ;;  %v1379_v38 = vpack.c.bf16 %v279_v31, %v278_v30 }
  0x61   :  { %1298 = vmatpush3.bf16.msra.mxu0 %v1297_v44  ;;  %v1349_v44 = vpack.c.bf16 %v231_v36, %v230_v35 }
  0x62   :  { %1332 = vmatprep.subr.bf16.mxu0 %v1331_v46  ;;  %v1351_v46 = vpack.c.bf16 %v249_v41, %v248_v40 }
  0x63   :  { %1330 = vmatpush3.bf16.msra.mxu1 %v1329_v45  ;;  %v1381_v45 = vpack.c.bf16 %v263_v39, %v262_v37 }
  0x64   :  { %1364 = vmatprep.subr.bf16.mxu1 %v1363_v50  ;;  %638 = vmatmul.mubr.f32.vlgmr.msra.gmra.mrb[4].mxu0 %v22_v56  ;;  %v1383_v50 = vpack.c.bf16 %v281_v43, %v280_v42  ;;  %v1353_v56 = vpack.c.bf16 %v233_v48, %v232_v47 }
  0x65   :  { %1334 = vmatpush3.bf16.msra.mxu0 %v1333_v57  ;;  %777 = vmatprep.mubr.f32.mxu0 %v27_v6  ;;  %v1385_v57 = vpack.c.bf16 %v265_v51, %v264_v49 }
  0x66   :  { %708 = vmatmul.mubr.f32.vlgmr.msra.gmra.mrb[4].mxu1 %v24_v58  ;;  %1336 = vmatprep.subr.bf16.mxu0 %v1335_v60  ;;  %v1355_v58 = vpack.c.bf16 %v251_v53, %v250_v52  ;;  %v235_v60 = vld [vmem:[%s2237_s1 + $0x668] sm:$0xff] }
  0x67   :  { %1366 = vmatpush3.bf16.msra.mxu1 %v1365_v59  ;;  %847 = vmatprep.mubr.f32.mxu1 %v29_v8  ;;  %v234_v59 = vld [vmem:[%s2237_s1 + $0x660] sm:$0xff]  ;;  %v237_v8 = vld [vmem:[%s2237_s1 + $0x678] sm:$0xff] }
  0x68   :  { %1368 = vmatprep.subr.bf16.mxu1 %v1367_v0  ;;  %v252_v0 = vld [vmem:[%s2237_s1 + $0x6f0] sm:$0xff]  ;;  %v1357_v4 = vpack.c.bf16 %v235_v60, %v234_v59 }
  0x69   :  { %1338 = vmatpush3.bf16.msra.mxu0 %v1337_v7  ;;  %v1359_v6 = vpack.c.bf16 %v253_v1, %v252_v0  ;;  %v236_v7 = vld [vmem:[%s2237_s1 + $0x670] sm:$0xff] }
  0x6a   :  { %1340 = vmatprep.subr.bf16.mxu0 %v1339_v10  ;;  %v268_v10 = vld [vmem:[%s2237_s1 + $0x770] sm:$0xff]  ;;  %v1361_v12 = vpack.c.bf16 %v237_v8, %v236_v7 }
  0x6b   :  { %1370 = vmatpush3.bf16.msra.mxu1 %v1369_v9  ;;  %v1391_v9 = vpack.c.bf16 %v285_v3, %v284_v2  ;;  %v1393_v13 = vpack.c.bf16 %v269_v11, %v268_v10 }
  0x6c   :  { %1372 = vmatprep.subr.bf16.mxu1 %v1371_v14  ;;  %v26_v14 = vld [vmem:[%s2238_s0 + $0x60] sm:$0xff] }
  0x6d   :  { %1342 = vmatpush3.bf16.msra.mxu0 %v1341_v20 }
  0x6e   :  { %1344 = vmatprep.subr.bf16.mxu0 %v1343_v22 }
  0x6f   :  { %1374 = vmatpush3.bf16.msra.mxu1 %v1373_v21 }
  0x70   :  { %1376 = vmatprep.subr.bf16.mxu1 %v1375_v26 }
  0x71   :  { %1346 = vmatpush3.bf16.msra.mxu0 %v1345_v32 }
  0x72   :  { %1348 = vmatprep.subr.bf16.mxu0 %v1347_v34 }
  0x73   :  { %1378 = vmatpush3.bf16.msra.mxu1 %v1377_v33 }
  0x74   :  { %1380 = vmatprep.subr.bf16.mxu1 %v1379_v38 }
  0x75   :  { %1350 = vmatpush3.bf16.msra.mxu0 %v1349_v44 }
  0x76   :  { %1352 = vmatprep.subr.bf16.mxu0 %v1351_v46 }
  0x77   :  { %1382 = vmatpush3.bf16.msra.mxu1 %v1381_v45 }
  0x78   :  { %1384 = vmatprep.subr.bf16.mxu1 %v1383_v50 }
  0x79   :  { %1354 = vmatpush3.bf16.msra.mxu0 %v1353_v56 }
  0x7a   :  { %1356 = vmatprep.subr.bf16.mxu0 %v1355_v58 }
  0x7b   :  { %1386 = vmatpush3.bf16.msra.mxu1 %v1385_v57 }
  0x7c   :  { %1388 = vmatprep.subr.bf16.mxu1 %v1387_v62 }
  0x7d   :  { %1358 = vmatpush3.bf16.msra.mxu0 %v1357_v4 }
  0x7e   :  { %1360 = vmatprep.subr.bf16.mxu0 %v1359_v6 }
  0x7f   :  { %1390 = vmatpush3.bf16.msra.mxu1 %v1389_v5 }
  0x80   :  { %1392 = vmatprep.subr.bf16.mxu1 %v1391_v9 }
  0x81   :  { %1362 = vmatpush3.bf16.msra.mxu0 %v1361_v12 }
  0x83   :  { %1394 = vmatpush3.bf16.msra.mxu1 %v1393_v13 }
  0x84   :  { %778 = vmatmul.mubr.f32.vlgmr.msra.gmra.mrb[6].mxu0 %v26_v14 }
  0x86   :  { %848 = vmatmul.mubr.f32.vlgmr.msra.gmra.mrb[6].mxu1 %v28_v15 }
  0xf7   :  { %v891_v16 = vpop.f32.mrb[0].mxu0 }
  0xf8   :  { %v892_v18 = vpop.f32.mrb[1].mxu0 }
  0xf9   :  { %v926_v19 = vpop.f32.mrb[0].mxu1  ;;  %v893_v20 = vadd.f32 %v892_v18, %v891_v16 }
  0xfa   :  { %v927_v21 = vpop.f32.mrb[1].mxu1 }
  0xfb   :  { %v928_v22 = vadd.f32 %v927_v21, %v926_v19  ;;  %v360_v23 = vadd.f32 %v893_v20, %v858_v17 }
  0xfd   :  { %v430_v24 = vadd.f32 %v928_v22, %v360_v23 }
 0x117   :  { %v961_v25 = vpop.f32.mrb[2].mxu0 }
 0x118   :  { %v962_v26 = vpop.f32.mrb[3].mxu0 }
 0x119   :  { %v996_v27 = vpop.f32.mrb[2].mxu1  ;;  %v963_v28 = vadd.f32 %v962_v26, %v961_v25 }
 0x11a   :  { %v997_v29 = vpop.f32.mrb[3].mxu1 }
 0x11b   :  { %v998_v30 = vadd.f32 %v997_v29, %v996_v27  ;;  %v500_v31 = vadd.f32 %v963_v28, %v430_v24 }
 0x11d   :  { %v570_v32 = vadd.f32 %v998_v30, %v500_v31 }
 0x137   :  { %v1031_v33 = vpop.f32.mrb[4].mxu0 }
 0x138   :  { %v1032_v34 = vpop.f32.mrb[5].mxu0 }
 0x139   :  { %v1066_v35 = vpop.f32.mrb[4].mxu1  ;;  %v1033_v36 = vadd.f32 %v1032_v34, %v1031_v33 }
 0x13a   :  { %v1067_v37 = vpop.f32.mrb[5].mxu1 }
 0x13b   :  { %v1068_v38 = vadd.f32 %v1067_v37, %v1066_v35  ;;  %v640_v39 = vadd.f32 %v1033_v36, %v570_v32 }
 0x13d   :  { %v710_v40 = vadd.f32 %v1068_v38, %v640_v39 }
 0x157   :  { %v1101_v41 = vpop.f32.mrb[6].mxu0 }
 0x158   :  { %v1102_v42 = vpop.f32.mrb[7].mxu0 }
 0x159   :  { %v1136_v43 = vpop.f32.mrb[6].mxu1  ;;  %v1103_v44 = vadd.f32 %v1102_v42, %v1101_v41 }
 0x15a   :  { %v1137_v45 = vpop.f32.mrb[7].mxu1 }
 0x15b   :  { %v1138_v46 = vadd.f32 %v1137_v45, %v1136_v43  ;;  %v780_v47 = vadd.f32 %v1103_v44, %v710_v40 }
 0x15d   :  { %v850_v48 = vadd.f32 %v1138_v46, %v780_v47 }
 0x15f   :  { %853 = vst [vmem:[%s2240_s3] sm:$0xff] %v850_v48 }

</bundles_post_ra>
